<compile_context>
chip_gen: v7x
topology: tpu7x:2x2x1
jax: 0.10.0
libtpu: 0.0.40
codegen_flags: <defaults>
</compile_context>

<pallas_src>
import jax
import jax.numpy as jnp
from jax.experimental import pallas as pl
from jax.experimental.pallas import tpu as pltpu


def _round_up(n, m):
    return (n + m - 1) // m * m


def _sigmoid_f32(x):
    # Safe in f32: exp(-x) may overflow to +inf for very negative x, but 1/inf == 0.
    return 1.0 / (1.0 + jnp.exp(-x))


def net_kernel(x_ref, w1_ref, b1_ref, w4_ref, b4_ref, o_ref):
    # Cast the f32 tile to bf16 for the MXU (VPU pack; hides under the x DMA).
    x = x_ref[...].astype(jnp.bfloat16)
    # fc1 on the MXU with f32 accumulation (K = 3780 is unaligned; Mosaic masks
    # the contraction-dim padding).
    h = jnp.dot(x, w1_ref[...], preferred_element_type=jnp.float32)
    # Bias + activation in f32 (VPU adds + EUP exp sit in otherwise-idle slots).
    h = _sigmoid_f32(h + b1_ref[...])
    # fc4 with a single output column: VPU multiply + lane reduction instead of
    # a second MXU push / result-FIFO drain.
    y = jnp.sum(h * w4_ref[...], axis=-1, keepdims=True) + b4_ref[...]
    o_ref[...] = _sigmoid_f32(y)


def prepare_params(w1, b1, w4, b4):
    """One-time parameter repack (hoisted out of the per-call hot path).

    w1 is stored (in, out) = PyTorch fc1.weight.T. Returns arrays ready to be
    fed to `net_forward` on every call without further work.
    """
    w1_p = jnp.asarray(w1, jnp.bfloat16)                       # (D, H) bf16 in HBM
    H = w1_p.shape[1]
    b1_p = jnp.asarray(b1, jnp.float32).reshape(1, H)          # (1, H) f32
    # forward() returns column 0 only, so only w4[:, 0] / b4[0] matter.
    w4_arr = jnp.asarray(w4, jnp.float32)
    if w4_arr.ndim == 1:
        w4_row = w4_arr.reshape(1, -1)
    elif w4_arr.shape[0] == H:          # (H, classes) = fc4.weight.T layout
        w4_row = w4_arr[:, 0].reshape(1, H)
    else:                               # (classes, H) = PyTorch fc4.weight layout
        w4_row = w4_arr[0].reshape(1, H)
    b4_s = jnp.asarray(b4, jnp.float32).reshape(-1)[0].reshape(1, 1)
    return w1_p, b1_p, w4_row, b4_s


def _choose_tile(B, block_b):
    """Pick a batch tile: multiple of 8, <= block_b, and >=2 tiles when the
    batch is large enough so v7x's two TensorCores both get work."""
    if B <= 16:
        return _round_up(B, 8)
    tb = min(block_b, _round_up(B, 8))
    if pl.cdiv(B, tb) < 2 and B >= 32:
        tb = _round_up(pl.cdiv(B, 2), 8)
    return tb


def net_forward(x, params, *, block_b=256):
    """Pallas implementation of Net.forward. Returns shape (B,) == out[:, 0].

    block_b=256 keeps the double-buffered f32 x tile + resident bf16 w1 within
    v5e's 16 MiB default scoped VMEM; raise it (and vmem_limit_bytes) on
    v6e/v7x for very large batches.
    """
    w1_p, b1_p, w4_row, b4_s = params
    B, D = x.shape
    H = w1_p.shape[1]
    assert w1_p.shape[0] == D, (w1_p.shape, D)

    x = x.astype(jnp.float32)
    tb = _choose_tile(B, block_b)
    nb = pl.cdiv(B, tb)

    cost = pl.CostEstimate(
        flops=2 * B * D * H + 3 * B * H,
        transcendentals=B * H + B,
        bytes_accessed=4 * B * D + 2 * D * H + 4 * (2 * H + 1) + 4 * B,
    )

    out = pl.pallas_call(
        net_kernel,
        out_shape=jax.ShapeDtypeStruct((B, 1), jnp.float32),
        grid=(nb,),
        in_specs=[
            pl.BlockSpec((tb, D), lambda i: (i, 0)),   # x: one batch tile per step (f32)
            pl.BlockSpec((D, H), lambda i: (0, 0)),    # w1: VMEM-resident (bf16)
            pl.BlockSpec((1, H), lambda i: (0, 0)),    # b1: VMEM-resident
            pl.BlockSpec((1, H), lambda i: (0, 0)),    # w4 column 0 (as a row)
            pl.BlockSpec((1, 1), lambda i: (0, 0)),    # b4 element 0
        ],
        out_specs=pl.BlockSpec((tb, 1), lambda i: (i, 0)),
        compiler_params=pltpu.CompilerParams(
            dimension_semantics=("parallel",)),
        cost_estimate=cost,
    )(x, w1_p, b1_p, w4_row, b4_s)

    return out[:, 0]


def init_params(key, input_size=3780, hidden_size=128, classes=1):
    """Deterministic nn.Linear-style init: U(-1/sqrt(fan_in), 1/sqrt(fan_in)).

    Weights are stored as (in, out) - the transpose of PyTorch's (out, in)."""
    k1, k2, k3, k4 = jax.random.split(key, 4)
    bound1 = 1.0 / jnp.sqrt(input_size)
    bound4 = 1.0 / jnp.sqrt(hidden_size)
    w1 = jax.random.uniform(k1, (input_size, hidden_size), jnp.float32, -bound1, bound1)
    b1 = jax.random.uniform(k2, (1, hidden_size), jnp.float32, -bound1, bound1)
    w4 = jax.random.uniform(k3, (hidden_size, classes), jnp.float32, -bound4, bound4)
    b4 = jax.random.uniform(k4, (1, classes), jnp.float32, -bound4, bound4)
    return w1, b1, w4, b4


if __name__ == "__main__":
    key = jax.random.PRNGKey(0)
    kx, kp = jax.random.split(key)

    batch = 256            # -> 2 batch tiles of 128 on the "parallel" grid axis
    input_size = 3780
    hidden_size = 128
    classes = 1

    x = jax.random.normal(kx, (batch, input_size), jnp.float32)
    w1, b1, w4, b4 = init_params(kp, input_size, hidden_size, classes)

    # One-time parameter repack, reused across every forward call.
    params = prepare_params(w1, b1, w4, b4)

    fwd = jax.jit(net_forward)
    out = fwd(x, params)
    out = jax.block_until_ready(out)

    # Reference in plain f32 JAX (kernel uses bf16 weights/activations on the
    # MXU, hence the tolerance).
    h_ref = jax.nn.sigmoid(x @ w1 + b1)
    ref = jax.nn.sigmoid(h_ref @ w4 + b4)[:, 0]

    assert out.shape == (batch,), out.shape
    assert jnp.allclose(out, ref, atol=2e-3), float(jnp.max(jnp.abs(out - ref)))

    print("KERNEL_OK")
</pallas_src>

<mosaic_0001>
module attributes {stable_mosaic.version = 11 : i64} {
  func.func @net_kernel(%arg0: i32, %arg1: memref<128x3780xf32, #tpu.memory_space<vmem>>, %arg2: memref<3780x128xbf16, #tpu.memory_space<vmem>>, %arg3: memref<1x128xf32, #tpu.memory_space<vmem>>, %arg4: memref<1x128xf32, #tpu.memory_space<vmem>>, %arg5: memref<1x1xf32, #tpu.memory_space<vmem>>, %arg6: memref<128x1xf32, #tpu.memory_space<vmem>>) attributes {dimension_semantics = [#tpu.dimension_semantics<parallel>], iteration_bounds = array<i64: 2>, scalar_prefetch = 0 : i64, scratch_operands = 0 : i64, tpu.core_type = #tpu.core_type<tc>, window_params = [{transform_indices = @transform_0, window_bounds = array<i64: 128, 3780>}, {pipeline_mode = #tpu.pipeline_mode<synchronous>, transform_indices = @transform_1, window_bounds = array<i64: 3780, 128>}, {pipeline_mode = #tpu.pipeline_mode<synchronous>, transform_indices = @transform_2, window_bounds = array<i64: 1, 128>}, {pipeline_mode = #tpu.pipeline_mode<synchronous>, transform_indices = @transform_3, window_bounds = array<i64: 1, 128>}, {pipeline_mode = #tpu.pipeline_mode<synchronous>, transform_indices = @transform_4, window_bounds = array<i64: 1, 1>}, {transform_indices = @transform_5, window_bounds = array<i64: 128, 1>}]} {
    %c0 = arith.constant 0 : index
    %c0_0 = arith.constant 0 : index
    %0 = vector.load %arg1[%c0, %c0_0] : memref<128x3780xf32, #tpu.memory_space<vmem>>, vector<128x3780xf32>
    %1 = arith.truncf %0 : vector<128x3780xf32> to vector<128x3780xbf16>
    %c0_1 = arith.constant 0 : index
    %c0_2 = arith.constant 0 : index
    %2 = vector.load %arg2[%c0_1, %c0_2] : memref<3780x128xbf16, #tpu.memory_space<vmem>>, vector<3780x128xbf16>
    %cst = arith.constant dense<0.000000e+00> : vector<128x128xf32>
    %3 = tpu.matmul %1, %2, %cst {dimension_numbers = #tpu.dot_dimension_numbers<[1], [0], [0], [1], [0, 0, 1, 1], [], []>} : vector<128x3780xbf16>, vector<3780x128xbf16>, vector<128x128xf32> -> vector<128x128xf32>
    %c0_3 = arith.constant 0 : index
    %c0_4 = arith.constant 0 : index
    %4 = vector.load %arg3[%c0_3, %c0_4] : memref<1x128xf32, #tpu.memory_space<vmem>>, vector<1x128xf32>
    %5 = vector.broadcast %4 : vector<1x128xf32> to vector<128x128xf32>
    %6 = arith.addf %3, %5 : vector<128x128xf32>
    %cst_5 = arith.constant 0.000000e+00 : f32
    %7 = vector.broadcast %cst_5 : f32 to vector<128x128xf32>
    %8 = arith.subf %7, %6 : vector<128x128xf32>
    %9 = math.exp %8 : vector<128x128xf32>
    %cst_6 = arith.constant 1.000000e+00 : f32
    %10 = vector.broadcast %cst_6 : f32 to vector<128x128xf32>
    %11 = arith.addf %10, %9 : vector<128x128xf32>
    %cst_7 = arith.constant 1.000000e+00 : f32
    %12 = vector.broadcast %cst_7 : f32 to vector<128x128xf32>
    %13 = arith.divf %12, %11 : vector<128x128xf32>
    %c0_8 = arith.constant 0 : index
    %c0_9 = arith.constant 0 : index
    %14 = vector.load %arg4[%c0_8, %c0_9] : memref<1x128xf32, #tpu.memory_space<vmem>>, vector<1x128xf32>
    %15 = vector.broadcast %14 : vector<1x128xf32> to vector<128x128xf32>
    %16 = arith.mulf %13, %15 : vector<128x128xf32>
    %cst_10 = arith.constant dense<0.000000e+00> : vector<128xf32>
    %17 = vector.multi_reduction <add>, %16, %cst_10 [1] : vector<128x128xf32> to vector<128xf32>
    %18 = vector.shape_cast %17 : vector<128xf32> to vector<128x1xf32>
    %c0_11 = arith.constant 0 : index
    %c0_12 = arith.constant 0 : index
    %19 = vector.load %arg5[%c0_11, %c0_12] : memref<1x1xf32, #tpu.memory_space<vmem>>, vector<1x1xf32>
    %20 = vector.broadcast %19 : vector<1x1xf32> to vector<128x1xf32>
    %21 = arith.addf %18, %20 : vector<128x1xf32>
    %cst_13 = arith.constant 0.000000e+00 : f32
    %22 = vector.broadcast %cst_13 : f32 to vector<128x1xf32>
    %23 = arith.subf %22, %21 : vector<128x1xf32>
    %24 = math.exp %23 : vector<128x1xf32>
    %cst_14 = arith.constant 1.000000e+00 : f32
    %25 = vector.broadcast %cst_14 : f32 to vector<128x1xf32>
    %26 = arith.addf %25, %24 : vector<128x1xf32>
    %cst_15 = arith.constant 1.000000e+00 : f32
    %27 = vector.broadcast %cst_15 : f32 to vector<128x1xf32>
    %28 = arith.divf %27, %26 : vector<128x1xf32>
    %c0_16 = arith.constant 0 : index
    %c0_17 = arith.constant 0 : index
    %29 = vector.load %arg6[%c0_16, %c0_17] : memref<128x1xf32, #tpu.memory_space<vmem>>, vector<128x1xf32>
    tpu.vector_store %arg6[%c0_16, %c0_17], %28 {strides = array<i32>} : memref<128x1xf32, #tpu.memory_space<vmem>>, vector<128x1xf32>,
    return
  }
  func.func @transform_0(%arg0: i32) -> (i32, i32) {
    %c0_i32 = arith.constant 0 : i32
    %c0_i32_0 = arith.constant 0 : i32
    return %arg0, %c0_i32 : i32, i32
  }
  func.func @transform_1(%arg0: i32) -> (i32, i32) {
    %c0_i32 = arith.constant 0 : i32
    %c0_i32_0 = arith.constant 0 : i32
    %c0_i32_1 = arith.constant 0 : i32
    return %c0_i32, %c0_i32_0 : i32, i32
  }
  func.func @transform_2(%arg0: i32) -> (i32, i32) {
    %c0_i32 = arith.constant 0 : i32
    %c0_i32_0 = arith.constant 0 : i32
    %c0_i32_1 = arith.constant 0 : i32
    return %c0_i32, %c0_i32_0 : i32, i32
  }
  func.func @transform_3(%arg0: i32) -> (i32, i32) {
    %c0_i32 = arith.constant 0 : i32
    %c0_i32_0 = arith.constant 0 : i32
    %c0_i32_1 = arith.constant 0 : i32
    return %c0_i32, %c0_i32_0 : i32, i32
  }
  func.func @transform_4(%arg0: i32) -> (i32, i32) {
    %c0_i32 = arith.constant 0 : i32
    %c0_i32_0 = arith.constant 0 : i32
    %c0_i32_1 = arith.constant 0 : i32
    return %c0_i32, %c0_i32_0 : i32, i32
  }
  func.func @transform_5(%arg0: i32) -> (i32, i32) {
    %c0_i32 = arith.constant 0 : i32
    %c0_i32_0 = arith.constant 0 : i32
    return %arg0, %c0_i32 : i32, i32
  }
}

</mosaic_0001>

<bundles_post_ra>
// kernel: net_forward.1
= control target key start
LH: loop header
LB: loop body
LE: loop exit
PB: predicated region body
PF: predicated region fallthrough
CT: control target
= control target key end

     0   :  { %s6268_s20 = smov 0   ;;  %s7933_s0 = inlined_call_operand.vmem [shape: f32[256,3780], index: 0, kind: input, shape index: {}]   ;;  %s7934_s1 = inlined_call_operand.vmem [shape: bf16[3780,128], index: 1, kind: input, shape index: {}]   ;;  %s7935_s2 = inlined_call_operand.vmem [shape: f32[1,128], index: 2, kind: input, shape index: {}]   ;;  %s7936_s3 = inlined_call_operand.vmem [shape: f32[1,128], index: 3, kind: input, shape index: {}]   ;;  %s7937_s4 = inlined_call_operand.<no memory space> [shape: f32[1,1], index: 4, kind: input, shape index: {}]   ;;  %s7938_s5 = inlined_call_operand.vmem [shape: f32[256,1], index: 5, kind: output, shape index: {}]  }
   0x1   :  { %v10_v0 = vstv %s7937_s4 }
   0x2   :  { %11 = vst [vmem:[#allocation2] sm:$0x1] %v10_v0 }
   0x3 LB: > { %s4680_s21 = sadd.s32 4294967295, %s6232_s20   ;;  %p4684_p0 = scmp.ge.s32.totalorder %s6232_s20, 1  ;;  %s6232_s20 = sphi %s6268_s20, %s17_s20  }
   0x4   : > { %p191_p1 = scmp.lt.s32.totalorder %s6232_s20, 3 }
   0x6   : > { %p192_p2 = pnand %p4684_p0, %p191_p1 }
   0x7   : > { %v5861_v1 = vld [vmem:[%s7934_s1 + $0x40] sm:$0xff] (!%p192_p2)   ;;  %s4685_s4 = sshll.u32 (!%p192_p2), %s4680_s21, 4  ;;  %v5863_v3 = vld [vmem:[%s7934_s1 + $0x48] sm:$0xff] (!%p192_p2)   ;;  %v5865_v5 = vld [vmem:[%s7934_s1 + $0x50] sm:$0xff] (!%p192_p2)   ;;  %vm2878_vm0 = vcmask (!%p192_p2), 1041408   ;;  %vm2853_vm1 = vcmask (!%p192_p2), 556032  }
   0x8   : > { %195 = sbr.rel (%p192_p2) target bundleno = 937 (0x3a9), region = 40  ;;  %v5862_v2 = vld [vmem:[%s7934_s1] sm:$0xff] (!%p192_p2)   ;;  %p221_p3 = scmp.lt.s32.totalorder (!%p192_p2), %s4685_s4, 31  ;;  %5835 = vmatprep.subr.bf16.mxu1 (!%p192_p2), %v5861_v1  ;;  %4939 = vmatprep.subr.bf16.mxu0 (!%p192_p2), %v5861_v1  ;;  %v5864_v4 = vld [vmem:[%s7934_s1 + $0x8] sm:$0xff] (!%p192_p2)   ;;  %v5866_v6 = vld [vmem:[%s7934_s1 + $0x10] sm:$0xff] (!%p192_p2)   ;;  %vm4607_vm2 = vcmask (!%p192_p2), 7168  }
   0x9   : > { %5843 = vmatpush3.bf16.msra.mxu1 (!%p192_p2), %v5862_v2  ;;  %4940 = vmatpush3.bf16.msra.mxu0 (!%p192_p2), %v5862_v2  ;;  %v5867_v7 = vld [vmem:[%s7934_s1 + $0x58] sm:$0xff] (!%p192_p2)   ;;  %v5869_v9 = vld [vmem:[%s7934_s1 + $0x60] sm:$0xff] (!%p192_p2)   ;;  %v5871_v11 = vld [vmem:[%s7934_s1 + $0x68] sm:$0xff] (!%p192_p2)  }
   0xa   : > { %5836 = vmatprep.subr.bf16.mxu1 (!%p192_p2), %v5863_v3  ;;  %4941 = vmatprep.subr.bf16.mxu0 (!%p192_p2), %v5863_v3  ;;  %v5868_v8 = vld [vmem:[%s7934_s1 + $0x18] sm:$0xff] (!%p192_p2)   ;;  %v5870_v10 = vld [vmem:[%s7934_s1 + $0x20] sm:$0xff] (!%p192_p2)   ;;  %v5872_v17 = vld [vmem:[%s7934_s1 + $0x28] sm:$0xff] (!%p192_p2)  }
   0xb   : > { %v5873_v19 = vld [vmem:[%s7934_s1 + $0x70] sm:$0xff] (!%p192_p2)   ;;  %v5875_v21 = vld [vmem:[%s7934_s1 + $0x78] sm:$0xff] (!%p192_p2)   ;;  %v5877_v25 = vld [vmem:[%s7934_s1 + $0xc0] sm:$0xff] (!%p192_p2)  }
   0xc   : > { %v5874_v20 = vld [vmem:[%s7934_s1 + $0x30] sm:$0xff] (!%p192_p2)   ;;  %v5876_v22 = vld [vmem:[%s7934_s1 + $0x38] sm:$0xff] (!%p192_p2)   ;;  %v5879_v28 = vld [vmem:[%s7934_s1 + $0x140] sm:$0xff] (!%p192_p2)  }
   0xd   : > { %5844 = vmatpush3.bf16.msra.mxu1 (!%p192_p2), %v5864_v4  ;;  %4942 = vmatpush3.bf16.msra.mxu0 (!%p192_p2), %v5864_v4  ;;  %v5878_v29 = vld [vmem:[%s7934_s1 + $0x80] sm:$0xff] (!%p192_p2)   ;;  %v5881_v37 = vld [vmem:[%s7934_s1 + $0xc8] sm:$0xff] (!%p192_p2)   ;;  %v5885_v47 = vld [vmem:[%s7934_s1 + $0xd0] sm:$0xff] (!%p192_p2)  }
   0xe   : > { %5837 = vmatprep.subr.bf16.mxu1 (!%p192_p2), %v5865_v5  ;;  %4943 = vmatprep.subr.bf16.mxu0 (!%p192_p2), %v5865_v5  ;;  %v5880_v30 = vld [vmem:[%s7934_s1 + $0x100] sm:$0xff] (!%p192_p2)   ;;  %v5883_v38 = vld [vmem:[%s7934_s1 + $0x148] sm:$0xff] (!%p192_p2)   ;;  %v5887_v48 = vld [vmem:[%s7934_s1 + $0x150] sm:$0xff] (!%p192_p2)  }
   0xf   : > { %s7940_s4 = smov (!%p221_p3, %s4685_s4), 31  ;;  %v5882_v39 = vld [vmem:[%s7934_s1 + $0x88] sm:$0xff]   ;;  %v5886_v49 = vld [vmem:[%s7934_s1 + $0x90] sm:$0xff]   ;;  %v5889_v53 = vld [vmem:[%s7934_s1 + $0xd8] sm:$0xff]  }
  0x10   : > { %s5851_s11 = smul.u32 240, %s7940_s4  ;;  %v5884_v41 = vld [vmem:[%s7934_s1 + $0x108] sm:$0xff]   ;;  %v5888_v50 = vld [vmem:[%s7934_s1 + $0x110] sm:$0xff]   ;;  %v5891_v56 = vld [vmem:[%s7934_s1 + $0x158] sm:$0xff]   ;;  %s4688_s17 = sshll.u32 %s7940_s4, 3 }
  0x11   : > { %5845 = vmatpush3.bf16.msra.mxu1 %v5866_v6  ;;  %4944 = vmatpush3.bf16.msra.mxu0 %v5866_v6  ;;  %v5890_v59 = vld [vmem:[%s7934_s1 + $0x98] sm:$0xff]   ;;  %v5893_v1 = vld [vmem:[%s7934_s1 + $0xe0] sm:$0xff]   ;;  %s7888_s22 = scalar_lea.vmem %s7938_s5, %s4688_s17 }
  0x12   : > { %5838 = vmatprep.subr.bf16.mxu1 %v5867_v7  ;;  %4945 = vmatprep.subr.bf16.mxu0 %v5867_v7  ;;  %s6309_s18 = scalar_lea.vmem %s7933_s0, %s5851_s11  ;;  %v5892_v61 = vld [vmem:[%s7934_s1 + $0x118] sm:$0xff]   ;;  %v5895_v4 = vld [vmem:[%s7934_s1 + $0x160] sm:$0xff]  }
  0x13   : > { %v475_v12 = vld [vmem:[%s6309_s18 + $0x788] sm:$0xff]  ;;  %v505_v13 = vld [vmem:[%s6309_s18 + $0x878] sm:$0xff]  ;;  %v474_v23 = vld [vmem:[%s6309_s18 + $0x780] sm:$0xff] }
  0x14   : > { %v835_v14 = vpack.c.bf16 %v505_v13, %v475_v12  ;;  %v235_v15 = vld [vmem:[%s6309_s18 + $0x8] sm:$0xff]  ;;  %v265_v16 = vld [vmem:[%s6309_s18 + $0xf8] sm:$0xff]  ;;  %v504_v24 = vld [vmem:[%s6309_s18 + $0x870] sm:$0xff] }
  0x15   : > { %5846 = vmatpush3.bf16.msra.mxu1 %v5868_v8  ;;  %4946 = vmatpush3.bf16.msra.mxu0 %v5868_v8  ;;  %v715_v18 = vpack.c.bf16 %v265_v16, %v235_v15  ;;  %v234_v26 = vld [vmem:[%s6309_s18] sm:$0xff]  ;;  %v264_v27 = vld [vmem:[%s6309_s18 + $0xf0] sm:$0xff]  ;;  %v535_v31 = vld [vmem:[%s6309_s18 + $0x968] sm:$0xff]  ;;  %v834_v33 = vpack.c.bf16 %v504_v24, %v474_v23 }
  0x16   : > { %5839 = vmatprep.subr.bf16.mxu1 %v5869_v9  ;;  %4947 = vmatprep.subr.bf16.mxu0 %v5869_v9  ;;  %v565_v32 = vld [vmem:[%s6309_s18 + $0xa58] sm:$0xff]  ;;  %v714_v34 = vpack.c.bf16 %v264_v27, %v234_v26  ;;  %v295_v35 = vld [vmem:[%s6309_s18 + $0x1e8] sm:$0xff]  ;;  %v534_v42 = vld [vmem:[%s6309_s18 + $0x960] sm:$0xff] }
  0x17   : > { %2946 = vmatprep.mubr.bf16.mxu1 %v835_v14  ;;  %2914 = vmatprep.mubr.bf16.mxu0 %v715_v18  ;;  %v325_v36 = vld [vmem:[%s6309_s18 + $0x2d8] sm:$0xff]  ;;  %v865_v40 = vpack.c.bf16 %v565_v32, %v535_v31  ;;  %v564_v43 = vld [vmem:[%s6309_s18 + $0xa50] sm:$0xff]  ;;  %v294_v45 = vld [vmem:[%s6309_s18 + $0x1e0] sm:$0xff] }
  0x18   : > { %v745_v44 = vpack.c.bf16 %v325_v36, %v295_v35  ;;  %v324_v46 = vld [vmem:[%s6309_s18 + $0x2d0] sm:$0xff]  ;;  %v864_v51 = vpack.c.bf16 %v564_v43, %v534_v42  ;;  %v595_v54 = vld [vmem:[%s6309_s18 + $0xb48] sm:$0xff]  ;;  %v625_v55 = vld [vmem:[%s6309_s18 + $0xc38] sm:$0xff] }
  0x19   : > { %5847 = vmatpush3.bf16.msra.mxu1 %v5870_v10  ;;  %4948 = vmatpush3.bf16.msra.mxu0 %v5870_v10  ;;  %v744_v52 = vpack.c.bf16 %v324_v46, %v294_v45  ;;  %v355_v57 = vld [vmem:[%s6309_s18 + $0x3c8] sm:$0xff]  ;;  %v385_v58 = vld [vmem:[%s6309_s18 + $0x4b8] sm:$0xff]  ;;  %v895_v60 = vpack.c.bf16 %v625_v55, %v595_v54  ;;  %v594_v62 = vld [vmem:[%s6309_s18 + $0xb40] sm:$0xff] }
  0x1a   : > { %5840 = vmatprep.subr.bf16.mxu1 %v5871_v11  ;;  %4949 = vmatprep.subr.bf16.mxu0 %v5871_v11  ;;  %v624_v63 = vld [vmem:[%s6309_s18 + $0xc30] sm:$0xff]  ;;  %v775_v0 = vpack.c.bf16 %v385_v58, %v355_v57  ;;  %v354_v2 = vld [vmem:[%s6309_s18 + $0x3c0] sm:$0xff]  ;;  %v655_v9 = vld [vmem:[%s6309_s18 + $0xd28] sm:$0xff] }
  0x1b   : > { %v384_v3 = vld [vmem:[%s6309_s18 + $0x4b0] sm:$0xff]  ;;  %v5894_v5 = vld [vmem:[%s7934_s1 + $0xa0] sm:$0xff]   ;;  %v894_v6 = vpack.c.bf16 %v624_v63, %v594_v62  ;;  %v685_v10 = vld [vmem:[%s6309_s18 + $0xe18] sm:$0xff] }
  0x1c   : > { %v774_v7 = vpack.c.bf16 %v384_v3, %v354_v2  ;;  %v5896_v8 = vld [vmem:[%s7934_s1 + $0x120] sm:$0xff]   ;;  %v5897_v11 = vld [vmem:[%s7934_s1 + $0xe8] sm:$0xff]   ;;  %v925_v14 = vpack.c.bf16 %v685_v10, %v655_v9  ;;  %v444_v23 = vld [vmem:[%s6309_s18 + $0x690] sm:$0xff] }
  0x1d   : > { %5848 = vmatpush3.bf16.msra.mxu1 %v5872_v17  ;;  %4950 = vmatpush3.bf16.msra.mxu0 %v5872_v17  ;;  %v5899_v12 = vld [vmem:[%s7934_s1 + $0x168] sm:$0xff]   ;;  %v654_v16 = vld [vmem:[%s6309_s18 + $0xd20] sm:$0xff]  ;;  %v684_v17 = vld [vmem:[%s6309_s18 + $0xe10] sm:$0xff] }
  0x1e   : > { %5841 = vmatprep.subr.bf16.mxu1 %v5873_v19  ;;  %4951 = vmatprep.subr.bf16.mxu0 %v5873_v19  ;;  %v5898_v13 = vld [vmem:[%s7934_s1 + $0xa8] sm:$0xff]   ;;  %v445_v19 = vld [vmem:[%s6309_s18 + $0x698] sm:$0xff]  ;;  %v5903_v24 = vld [vmem:[%s7934_s1 + $0x170] sm:$0xff]  }
  0x1f   : > { %v5900_v15 = vld [vmem:[%s7934_s1 + $0x128] sm:$0xff]   ;;  %v5902_v26 = vld [vmem:[%s7934_s1 + $0xb0] sm:$0xff]   ;;  %v5907_v31 = vld [vmem:[%s7934_s1 + $0x178] sm:$0xff]  }
  0x20   : > { %v415_v18 = vld [vmem:[%s6309_s18 + $0x5a8] sm:$0xff]  ;;  %v237_v32 = vld [vmem:[%s6309_s18 + $0x18] sm:$0xff]  ;;  %v236_v36 = vld [vmem:[%s6309_s18 + $0x10] sm:$0xff] }
  0x21   : > { %5849 = vmatpush3.bf16.msra.mxu1 %v5874_v20  ;;  %4952 = vmatpush3.bf16.msra.mxu0 %v5874_v20  ;;  %v5901_v20 = vld [vmem:[%s7934_s1 + $0xf0] sm:$0xff]   ;;  %v5908_v35 = vld [vmem:[%s7934_s1 + $0x138] sm:$0xff]   ;;  %v5910_v43 = vld [vmem:[%s7934_s1 + $0x180] sm:$0xff]  }
  0x22   : > { %5842 = vmatprep.subr.bf16.mxu1 %v5875_v21  ;;  %4953 = vmatprep.subr.bf16.mxu0 %v5875_v21  ;;  %v805_v21 = vpack.c.bf16 %v445_v19, %v415_v18  ;;  %v268_v45 = vld [vmem:[%s6309_s18 + $0x110] sm:$0xff]  ;;  %v5913_v54 = vld [vmem:[%s7934_s1 + $0x1c8] sm:$0xff]  }
  0x23   : > { %v299_v55 = vld [vmem:[%s6309_s18 + $0x208] sm:$0xff]  ;;  %v5918_v10 = vld [vmem:[%s7934_s1 + $0x190] sm:$0xff]  }
  0x24   : > { %v5914_v58 = vld [vmem:[%s7934_s1 + $0x188] sm:$0xff]  }
  0x25   : > { %5850 = vmatpush3.bf16.msra.mxu1 %v5876_v22  ;;  %4954 = vmatpush3.bf16.msra.mxu0 %v5876_v22  ;;  %v414_v22 = vld [vmem:[%s6309_s18 + $0x5a0] sm:$0xff]  ;;  %v5915_v63 = vld [vmem:[%s7934_s1 + $0x248] sm:$0xff]  }
  0x26   : > { %5003 = vmatprep.subr.bf16.mxu1 %v5877_v25  ;;  %5067 = vmatprep.subr.bf16.mxu0 %v5879_v28  ;;  %v924_v25 = vpack.c.bf16 %v684_v17, %v654_v16  ;;  %v804_v27 = vpack.c.bf16 %v444_v23, %v414_v22  ;;  %v5904_v28 = vld [vmem:[%s7934_s1 + $0x130] sm:$0xff]   ;;  %v387_v2 = vld [vmem:[%s6309_s18 + $0x4c8] sm:$0xff]  ;;  %v417_v17 = vld [vmem:[%s6309_s18 + $0x5b8] sm:$0xff] }
  0x27   : > { %v5920_v16 = vld [vmem:[%s7934_s1 + $0x210] sm:$0xff]   ;;  %v447_v18 = vld [vmem:[%s6309_s18 + $0x6a8] sm:$0xff]  ;;  %v446_v22 = vld [vmem:[%s6309_s18 + $0x6a0] sm:$0xff] }
  0x28   : > { %2947 = vmatmul.mubr.bf16.vlgmr.msra.gmra.mrb[0].mxu1 %v834_v33  ;;  %2915 = vmatmul.mubr.bf16.vlgmr.msra.gmra.mrb[0].mxu0 %v714_v34  ;;  %v267_v33 = vld [vmem:[%s6309_s18 + $0x108] sm:$0xff]  ;;  %v807_v19 = vpack.c.bf16 %v447_v18, %v417_v17  ;;  %v5937_v17 = vld [vmem:[%s7934_s1 + $0x1f8] sm:$0xff]  }
  0x29   : > { %5004 = vmatpush3.bf16.msra.mxu1 %v5878_v29  ;;  %5068 = vmatpush3.bf16.msra.mxu0 %v5880_v30  ;;  %v5905_v29 = vld [vmem:[%s7934_s1 + $0xf8] sm:$0xff]   ;;  %v717_v34 = vpack.c.bf16 %v267_v33, %v237_v32  ;;  %v419_v23 = vld [vmem:[%s6309_s18 + $0x5c8] sm:$0xff] }
  0x2a   : > { %5005 = vmatprep.subr.bf16.mxu1 %v5881_v37  ;;  %5069 = vmatprep.subr.bf16.mxu0 %v5883_v38  ;;  %v5906_v30 = vld [vmem:[%s7934_s1 + $0xb8] sm:$0xff]   ;;  %v266_v37 = vld [vmem:[%s6309_s18 + $0x100] sm:$0xff]  ;;  %v507_v32 = vld [vmem:[%s6309_s18 + $0x888] sm:$0xff] }
  0x2b   : > { %2954 = vmatprep.mubr.bf16.mxu1 %v865_v40  ;;  %2922 = vmatprep.mubr.bf16.mxu0 %v745_v44  ;;  %v5909_v38 = vld [vmem:[%s7934_s1 + $0x1c0] sm:$0xff]   ;;  %v269_v40 = vld [vmem:[%s6309_s18 + $0x118] sm:$0xff]  ;;  %v659_v18 = vld [vmem:[%s6309_s18 + $0xd48] sm:$0xff] }
  0x2c   : > { %v238_v44 = vld [vmem:[%s6309_s18 + $0x20] sm:$0xff] }
  0x2d   : > { %5006 = vmatpush3.bf16.msra.mxu1 %v5882_v39  ;;  %5070 = vmatpush3.bf16.msra.mxu0 %v5884_v41  ;;  %v239_v39 = vld [vmem:[%s6309_s18 + $0x28] sm:$0xff]  ;;  %v716_v41 = vpack.c.bf16 %v266_v37, %v236_v36  ;;  %v718_v46 = vpack.c.bf16 %v268_v45, %v238_v44  ;;  %v5925_v36 = vld [vmem:[%s7934_s1 + $0x1e0] sm:$0xff]   ;;  %v508_v44 = vld [vmem:[%s6309_s18 + $0x890] sm:$0xff] }
  0x2e   : > { %5007 = vmatprep.subr.bf16.mxu1 %v5885_v47  ;;  %5071 = vmatprep.subr.bf16.mxu0 %v5887_v48  ;;  %v719_v42 = vpack.c.bf16 %v269_v40, %v239_v39  ;;  %v5911_v47 = vld [vmem:[%s7934_s1 + $0x240] sm:$0xff]   ;;  %v479_v37 = vld [vmem:[%s6309_s18 + $0x7a8] sm:$0xff]  ;;  %v476_v39 = vld [vmem:[%s6309_s18 + $0x790] sm:$0xff] }
  0x2f   : > { %v5912_v48 = vld [vmem:[%s7934_s1 + $0x200] sm:$0xff]  }
  0x30   : > { %2955 = vmatmul.mubr.bf16.gmra.mrb[4].mxu1 %v864_v51  ;;  %2923 = vmatmul.mubr.bf16.gmra.mrb[4].mxu0 %v744_v52  ;;  %v296_v52 = vld [vmem:[%s6309_s18 + $0x1f0] sm:$0xff]  ;;  %v506_v40 = vld [vmem:[%s6309_s18 + $0x880] sm:$0xff] }
  0x31   : > { %5008 = vmatpush3.bf16.msra.mxu1 %v5886_v49  ;;  %5072 = vmatpush3.bf16.msra.mxu0 %v5888_v50  ;;  %v297_v49 = vld [vmem:[%s6309_s18 + $0x1f8] sm:$0xff]  ;;  %v327_v50 = vld [vmem:[%s6309_s18 + $0x2e8] sm:$0xff]  ;;  %v5927_v45 = vld [vmem:[%s7934_s1 + $0x260] sm:$0xff]  }
  0x32   : > { %5009 = vmatprep.subr.bf16.mxu1 %v5889_v53  ;;  %5073 = vmatprep.subr.bf16.mxu0 %v5891_v56  ;;  %v747_v51 = vpack.c.bf16 %v327_v50, %v297_v49  ;;  %v326_v53 = vld [vmem:[%s6309_s18 + $0x2e0] sm:$0xff]  ;;  %v329_v56 = vld [vmem:[%s6309_s18 + $0x2f8] sm:$0xff]  ;;  %v836_v49 = vpack.c.bf16 %v506_v40, %v476_v39 }
  0x33   : > { %2962 = vmatprep.mubr.bf16.mxu1 %v895_v60  ;;  %2930 = vmatprep.mubr.bf16.mxu0 %v775_v0  ;;  %v749_v57 = vpack.c.bf16 %v329_v56, %v299_v55  ;;  %v328_v60 = vld [vmem:[%s6309_s18 + $0x2f0] sm:$0xff]  ;;  %v5916_v0 = vld [vmem:[%s7934_s1 + $0x208] sm:$0xff]  }
  0x34   : > { %v5930_v56 = vld [vmem:[%s7934_s1 + $0x1a8] sm:$0xff]  }
  0x35   : > { %5010 = vmatpush3.bf16.msra.mxu1 %v5890_v59  ;;  %5074 = vmatpush3.bf16.msra.mxu0 %v5892_v61  ;;  %v298_v59 = vld [vmem:[%s6309_s18 + $0x200] sm:$0xff]  ;;  %v746_v61 = vpack.c.bf16 %v326_v53, %v296_v52  ;;  %v539_v52 = vld [vmem:[%s6309_s18 + $0x988] sm:$0xff]  ;;  %v569_v53 = vld [vmem:[%s6309_s18 + $0xa78] sm:$0xff] }
  0x36   : > { %5011 = vmatprep.subr.bf16.mxu1 %v5893_v1  ;;  %5075 = vmatprep.subr.bf16.mxu0 %v5895_v4  ;;  %v748_v62 = vpack.c.bf16 %v328_v60, %v298_v59  ;;  %v357_v1 = vld [vmem:[%s6309_s18 + $0x3d8] sm:$0xff]  ;;  %v356_v4 = vld [vmem:[%s6309_s18 + $0x3d0] sm:$0xff]  ;;  %v869_v55 = vpack.c.bf16 %v569_v53, %v539_v52  ;;  %v5931_v59 = vld [vmem:[%s7934_s1 + $0x268] sm:$0xff]  }
  0x37   : > { %v777_v3 = vpack.c.bf16 %v387_v2, %v357_v1  ;;  %v538_v60 = vld [vmem:[%s6309_s18 + $0x980] sm:$0xff]  ;;  %v5933_v1 = vld [vmem:[%s7934_s1 + $0x1f0] sm:$0xff]   ;;  %v599_v2 = vld [vmem:[%s6309_s18 + $0xb68] sm:$0xff] }
  0x38   : > { %2963 = vmatmul.mubr.bf16.gmra.mrb[8].mxu1 %v894_v6  ;;  %2931 = vmatmul.mubr.bf16.gmra.mrb[8].mxu0 %v774_v7  ;;  %v5917_v6 = vld [vmem:[%s7934_s1 + $0x1d0] sm:$0xff]   ;;  %v359_v7 = vld [vmem:[%s6309_s18 + $0x3e8] sm:$0xff]  ;;  %v5944_v52 = vld [vmem:[%s7934_s1 + $0x300] sm:$0xff]  }
  0x39   : > { %5012 = vmatpush3.bf16.msra.mxu1 %v5894_v5  ;;  %5076 = vmatpush3.bf16.msra.mxu0 %v5896_v8  ;;  %v386_v5 = vld [vmem:[%s6309_s18 + $0x4c0] sm:$0xff]  ;;  %v389_v8 = vld [vmem:[%s6309_s18 + $0x4d8] sm:$0xff] }
  0x3a   : > { %5013 = vmatprep.subr.bf16.mxu1 %v5897_v11  ;;  %5077 = vmatprep.subr.bf16.mxu0 %v5899_v12  ;;  %v779_v9 = vpack.c.bf16 %v389_v8, %v359_v7  ;;  %v358_v11 = vld [vmem:[%s6309_s18 + $0x3e0] sm:$0xff]  ;;  %v388_v12 = vld [vmem:[%s6309_s18 + $0x4d0] sm:$0xff] }
  0x3b   : > { %2970 = vmatprep.mubr.bf16.mxu1 %v925_v14  ;;  %2938 = vmatprep.mubr.bf16.mxu0 %v805_v21  ;;  %v776_v14 = vpack.c.bf16 %v386_v5, %v356_v4  ;;  %v416_v21 = vld [vmem:[%s6309_s18 + $0x5b0] sm:$0xff] }
  0x3c   : > { %v806_v33 = vpack.c.bf16 %v446_v22, %v416_v21 }
  0x3d   : > { %5014 = vmatpush3.bf16.msra.mxu1 %v5898_v13  ;;  %5078 = vmatpush3.bf16.msra.mxu0 %v5900_v15  ;;  %v5919_v13 = vld [vmem:[%s7934_s1 + $0x250] sm:$0xff]   ;;  %v778_v15 = vpack.c.bf16 %v388_v12, %v358_v11  ;;  %v626_v11 = vld [vmem:[%s6309_s18 + $0xc40] sm:$0xff] }
  0x3e   : > { %5015 = vmatprep.subr.bf16.mxu1 %v5901_v20  ;;  %5079 = vmatprep.subr.bf16.mxu0 %v5903_v24  ;;  %v5921_v20 = vld [vmem:[%s7934_s1 + $0x1d8] sm:$0xff]   ;;  %v598_v12 = vld [vmem:[%s6309_s18 + $0xb60] sm:$0xff] }
  0x3f   : > { %v449_v24 = vld [vmem:[%s6309_s18 + $0x6b8] sm:$0xff] }
  0x40   : > { %2971 = vmatmul.mubr.bf16.gmra.mrb[12].mxu1 %v924_v25  ;;  %2939 = vmatmul.mubr.bf16.gmra.mrb[12].mxu0 %v804_v27  ;;  %v809_v25 = vpack.c.bf16 %v449_v24, %v419_v23  ;;  %v418_v27 = vld [vmem:[%s6309_s18 + $0x5c0] sm:$0xff]  ;;  %v5939_v23 = vld [vmem:[%s7934_s1 + $0x278] sm:$0xff]  }
  0x41   : > { %5016 = vmatpush3.bf16.msra.mxu1 %v5902_v26  ;;  %5080 = vmatpush3.bf16.msra.mxu0 %v5904_v28  ;;  %v5922_v26 = vld [vmem:[%s7934_s1 + $0x198] sm:$0xff]   ;;  %v448_v28 = vld [vmem:[%s6309_s18 + $0x6b0] sm:$0xff] }
  0x42   : > { %5017 = vmatprep.subr.bf16.mxu1 %v5905_v29  ;;  %5081 = vmatprep.subr.bf16.mxu0 %v5907_v31  ;;  %v5923_v29 = vld [vmem:[%s7934_s1 + $0x258] sm:$0xff]  }
  0x43   : > { %3011 = vmatprep.mubr.bf16.mxu1 %v717_v34  ;;  %3108 = vmatprep.mubr.bf16.mxu0 %v719_v42  ;;  %v477_v31 = vld [vmem:[%s6309_s18 + $0x798] sm:$0xff]  ;;  %v808_v34 = vpack.c.bf16 %v448_v28, %v418_v27  ;;  %v5926_v42 = vld [vmem:[%s7934_s1 + $0x1a0] sm:$0xff]   ;;  %v656_v27 = vld [vmem:[%s6309_s18 + $0xd30] sm:$0xff] }
  0x44   : > { %v686_v28 = vld [vmem:[%s6309_s18 + $0xe20] sm:$0xff] }
  0x45   : > { %5018 = vmatpush3.bf16.msra.mxu1 %v5906_v30  ;;  %5082 = vmatpush3.bf16.msra.mxu0 %v5908_v35  ;;  %v5924_v30 = vld [vmem:[%s7934_s1 + $0x218] sm:$0xff]   ;;  %v837_v35 = vpack.c.bf16 %v507_v32, %v477_v31  ;;  %v5941_v32 = vld [vmem:[%s7934_s1 + $0x2c0] sm:$0xff]  }
  0x46   : > { %5131 = vmatprep.subr.bf16.mxu1 %v5909_v38  ;;  %5195 = vmatprep.subr.bf16.mxu0 %v5911_v47  ;;  %v509_v38 = vld [vmem:[%s6309_s18 + $0x898] sm:$0xff] }
  0x47   : > { %v537_v47 = vld [vmem:[%s6309_s18 + $0x978] sm:$0xff] }
  0x48   : > { %3012 = vmatmul.mubr.bf16.vlgmr.msra.gmra.mrb[16].mxu1 %v716_v41  ;;  %3109 = vmatmul.mubr.bf16.vlgmr.msra.gmra.mrb[16].mxu0 %v718_v46  ;;  %v839_v41 = vpack.c.bf16 %v509_v38, %v479_v37  ;;  %v5928_v46 = vld [vmem:[%s7934_s1 + $0x220] sm:$0xff]   ;;  %v241_v31 = vld [vmem:[%s6309_s18 + $0x38] sm:$0xff]  ;;  %v926_v37 = vpack.c.bf16 %v686_v28, %v656_v27 }
  0x49   : > { %5132 = vmatpush3.bf16.msra.mxu1 %v5910_v43  ;;  %5196 = vmatpush3.bf16.msra.mxu0 %v5912_v48  ;;  %v478_v43 = vld [vmem:[%s6309_s18 + $0x7a0] sm:$0xff]  ;;  %v567_v48 = vld [vmem:[%s6309_s18 + $0xa68] sm:$0xff] }
  0x4a   : > { %3019 = vmatprep.mubr.bf16.mxu1 %v747_v51  ;;  %5133 = vmatprep.subr.bf16.mxu1 %v5913_v54  ;;  %v838_v50 = vpack.c.bf16 %v508_v44, %v478_v43  ;;  %v5929_v51 = vld [vmem:[%s7934_s1 + $0x1e8] sm:$0xff]   ;;  %v867_v54 = vpack.c.bf16 %v567_v48, %v537_v47  ;;  %v242_v43 = vld [vmem:[%s6309_s18 + $0x40] sm:$0xff]  ;;  %v272_v44 = vld [vmem:[%s6309_s18 + $0x130] sm:$0xff] }
  0x4b   : > { %3116 = vmatprep.mubr.bf16.mxu0 %v749_v57  ;;  %5197 = vmatprep.subr.bf16.mxu0 %v5915_v63  ;;  %v536_v57 = vld [vmem:[%s6309_s18 + $0x970] sm:$0xff]  ;;  %v597_v63 = vld [vmem:[%s6309_s18 + $0xb58] sm:$0xff]  ;;  %v722_v48 = vpack.c.bf16 %v272_v44, %v242_v43  ;;  %v5958_v28 = vld [vmem:[%s7934_s1 + $0x2a0] sm:$0xff]  }
  0x4c   : > { %v5963_v43 = vld [vmem:[%s7934_s1 + $0x368] sm:$0xff]  }
  0x4d   : > { %5134 = vmatpush3.bf16.msra.mxu1 %v5914_v58  ;;  %5198 = vmatpush3.bf16.msra.mxu0 %v5916_v0  ;;  %v566_v58 = vld [vmem:[%s6309_s18 + $0xa60] sm:$0xff]  ;;  %v627_v0 = vld [vmem:[%s6309_s18 + $0xc48] sm:$0xff] }
  0x4e   : > { %5135 = vmatprep.subr.bf16.mxu1 %v5917_v6  ;;  %5199 = vmatprep.subr.bf16.mxu0 %v5919_v13  ;;  %v866_v4 = vpack.c.bf16 %v566_v58, %v536_v57  ;;  %v5934_v6 = vld [vmem:[%s7934_s1 + $0x1b0] sm:$0xff]   ;;  %v897_v7 = vpack.c.bf16 %v627_v0, %v597_v63  ;;  %v5946_v58 = vld [vmem:[%s7934_s1 + $0x288] sm:$0xff]   ;;  %v361_v63 = vld [vmem:[%s6309_s18 + $0x3f8] sm:$0xff] }
  0x4f   : > { %v628_v13 = vld [vmem:[%s6309_s18 + $0xc50] sm:$0xff]  ;;  %v391_v0 = vld [vmem:[%s6309_s18 + $0x4e8] sm:$0xff] }
  0x50   : > { %3020 = vmatmul.mubr.bf16.gmra.mrb[20].mxu1 %v746_v61  ;;  %3117 = vmatmul.mubr.bf16.gmra.mrb[20].mxu0 %v748_v62  ;;  %v5932_v61 = vld [vmem:[%s7934_s1 + $0x228] sm:$0xff]   ;;  %v568_v62 = vld [vmem:[%s6309_s18 + $0xa70] sm:$0xff]  ;;  %v898_v22 = vpack.c.bf16 %v628_v13, %v598_v12  ;;  %v390_v13 = vld [vmem:[%s6309_s18 + $0x4e0] sm:$0xff] }
  0x51   : > { %3027 = vmatprep.mubr.bf16.mxu1 %v777_v3  ;;  %3124 = vmatprep.mubr.bf16.mxu0 %v779_v9  ;;  %v629_v3 = vld [vmem:[%s6309_s18 + $0xc58] sm:$0xff]  ;;  %v868_v5 = vpack.c.bf16 %v568_v62, %v538_v60  ;;  %v5935_v9 = vld [vmem:[%s7934_s1 + $0x270] sm:$0xff]   ;;  %v5948_v62 = vld [vmem:[%s7934_s1 + $0x308] sm:$0xff]  }
  0x52   : > { %5136 = vmatpush3.bf16.msra.mxu1 %v5918_v10  ;;  %5200 = vmatpush3.bf16.msra.mxu0 %v5920_v16  ;;  %v899_v8 = vpack.c.bf16 %v629_v3, %v599_v2  ;;  %v596_v10 = vld [vmem:[%s6309_s18 + $0xb50] sm:$0xff]  ;;  %v687_v16 = vld [vmem:[%s6309_s18 + $0xe28] sm:$0xff]  ;;  %v393_v3 = vld [vmem:[%s6309_s18 + $0x4f8] sm:$0xff] }
  0x53   : > { %5137 = vmatprep.subr.bf16.mxu1 %v5921_v20  ;;  %5201 = vmatprep.subr.bf16.mxu0 %v5923_v29  ;;  %v5938_v20 = vld [vmem:[%s7934_s1 + $0x1b8] sm:$0xff]   ;;  %v896_v21 = vpack.c.bf16 %v626_v11, %v596_v10  ;;  %v658_v29 = vld [vmem:[%s6309_s18 + $0xd40] sm:$0xff]  ;;  %v332_v60 = vld [vmem:[%s6309_s18 + $0x310] sm:$0xff] }
  0x54   : > { %v363_v2 = vld [vmem:[%s6309_s18 + $0x408] sm:$0xff]  ;;  %v5952_v10 = vld [vmem:[%s7934_s1 + $0x310] sm:$0xff]   ;;  %v5953_v11 = vld [vmem:[%s7934_s1 + $0x2d8] sm:$0xff]  }
  0x55   : > { %v360_v12 = vld [vmem:[%s6309_s18 + $0x3f0] sm:$0xff] }
  0x56   : > { %5138 = vmatpush3.bf16.msra.mxu1 %v5922_v26  ;;  %5202 = vmatpush3.bf16.msra.mxu0 %v5924_v30  ;;  %v5940_v26 = vld [vmem:[%s7934_s1 + $0x238] sm:$0xff]   ;;  %v688_v30 = vld [vmem:[%s6309_s18 + $0xe30] sm:$0xff] }
  0x57   : > { %5139 = vmatprep.subr.bf16.mxu1 %v5925_v36  ;;  %5203 = vmatprep.subr.bf16.mxu0 %v5927_v45  ;;  %v5943_v36 = vld [vmem:[%s7934_s1 + $0x340] sm:$0xff]   ;;  %v928_v38 = vpack.c.bf16 %v688_v30, %v658_v29  ;;  %v301_v45 = vld [vmem:[%s6309_s18 + $0x218] sm:$0xff]  ;;  %v420_v30 = vld [vmem:[%s6309_s18 + $0x5d0] sm:$0xff] }
  0x58   : > { %3028 = vmatmul.mubr.bf16.gmra.mrb[24].mxu1 %v776_v14  ;;  %3125 = vmatmul.mubr.bf16.gmra.mrb[24].mxu0 %v778_v15  ;;  %v5936_v14 = vld [vmem:[%s7934_s1 + $0x230] sm:$0xff]   ;;  %v657_v15 = vld [vmem:[%s6309_s18 + $0xd38] sm:$0xff]  ;;  %v5959_v29 = vld [vmem:[%s7934_s1 + $0x360] sm:$0xff]  }
  0x59   : > { %3035 = vmatprep.mubr.bf16.mxu1 %v807_v19  ;;  %3132 = vmatprep.mubr.bf16.mxu0 %v809_v25  ;;  %v689_v19 = vld [vmem:[%s6309_s18 + $0xe38] sm:$0xff]  ;;  %v927_v24 = vpack.c.bf16 %v687_v16, %v657_v15  ;;  %v392_v15 = vld [vmem:[%s6309_s18 + $0x4f0] sm:$0xff] }
  0x5a   : > { %5140 = vmatpush3.bf16.msra.mxu1 %v5926_v42  ;;  %5204 = vmatpush3.bf16.msra.mxu0 %v5928_v46  ;;  %v929_v25 = vpack.c.bf16 %v689_v19, %v659_v18  ;;  %v270_v42 = vld [vmem:[%s6309_s18 + $0x120] sm:$0xff]  ;;  %v331_v46 = vld [vmem:[%s6309_s18 + $0x308] sm:$0xff]  ;;  %v5955_v16 = vld [vmem:[%s7934_s1 + $0x358] sm:$0xff]  }
  0x5b   : > { %5141 = vmatprep.subr.bf16.mxu1 %v5929_v51  ;;  %5205 = vmatprep.subr.bf16.mxu0 %v5931_v59  ;;  %v5942_v51 = vld [vmem:[%s7934_s1 + $0x280] sm:$0xff]   ;;  %v751_v53 = vpack.c.bf16 %v331_v46, %v301_v45  ;;  %v451_v18 = vld [vmem:[%s6309_s18 + $0x6c8] sm:$0xff] }
  0x5c   : > { %v302_v59 = vld [vmem:[%s6309_s18 + $0x220] sm:$0xff]  ;;  %v423_v19 = vld [vmem:[%s6309_s18 + $0x5e8] sm:$0xff] }
  0x5d   : > { %v5964_v46 = vld [vmem:[%s7934_s1 + $0x328] sm:$0xff]  }
  0x5e   : > { %5142 = vmatpush3.bf16.msra.mxu1 %v5930_v56  ;;  %5206 = vmatpush3.bf16.msra.mxu0 %v5932_v61  ;;  %v330_v56 = vld [vmem:[%s6309_s18 + $0x300] sm:$0xff]  ;;  %v5947_v61 = vld [vmem:[%s7934_s1 + $0x348] sm:$0xff]  }
  0x5f   : > { %5143 = vmatprep.subr.bf16.mxu1 %v5933_v1  ;;  %5207 = vmatprep.subr.bf16.mxu0 %v5935_v9  ;;  %v5949_v1 = vld [vmem:[%s7934_s1 + $0x2d0] sm:$0xff]  }
  0x60   : > { %3036 = vmatmul.mubr.bf16.gmra.mrb[28].mxu1 %v806_v33  ;;  %3133 = vmatmul.mubr.bf16.gmra.mrb[28].mxu0 %v808_v34  ;;  %v271_v33 = vld [vmem:[%s6309_s18 + $0x128] sm:$0xff]  ;;  %v5950_v9 = vld [vmem:[%s7934_s1 + $0x290] sm:$0xff]  }
  0x61   : > { %3043 = vmatprep.mubr.bf16.mxu1 %v837_v35  ;;  %3140 = vmatprep.mubr.bf16.mxu0 %v839_v41  ;;  %v243_v34 = vld [vmem:[%s6309_s18 + $0x48] sm:$0xff]  ;;  %v273_v35 = vld [vmem:[%s6309_s18 + $0x138] sm:$0xff]  ;;  %v721_v39 = vpack.c.bf16 %v271_v33, %v241_v31  ;;  %v240_v41 = vld [vmem:[%s6309_s18 + $0x30] sm:$0xff] }
  0x62   : > { %5144 = vmatpush3.bf16.msra.mxu1 %v5934_v6  ;;  %5208 = vmatpush3.bf16.msra.mxu0 %v5936_v14  ;;  %v723_v40 = vpack.c.bf16 %v273_v35, %v243_v34  ;;  %v720_v47 = vpack.c.bf16 %v270_v42, %v240_v41  ;;  %v752_v6 = vpack.c.bf16 %v332_v60, %v302_v59  ;;  %v362_v14 = vld [vmem:[%s6309_s18 + $0x400] sm:$0xff]  ;;  %v452_v33 = vld [vmem:[%s6309_s18 + $0x6d0] sm:$0xff]  ;;  %v481_v35 = vld [vmem:[%s6309_s18 + $0x7b8] sm:$0xff] }
  0x63   : > { %5145 = vmatprep.subr.bf16.mxu1 %v5937_v17  ;;  %5209 = vmatprep.subr.bf16.mxu0 %v5939_v23  ;;  %v421_v17 = vld [vmem:[%s6309_s18 + $0x5d8] sm:$0xff]  ;;  %v5957_v23 = vld [vmem:[%s7934_s1 + $0x2e0] sm:$0xff]   ;;  %v5968_v60 = vld [vmem:[%s7934_s1 + $0x330] sm:$0xff]  }
  0x64   : > { %v450_v31 = vld [vmem:[%s6309_s18 + $0x6c0] sm:$0xff] }
  0x65   : > { %v5960_v34 = vld [vmem:[%s7934_s1 + $0x320] sm:$0xff]   ;;  %v810_v41 = vpack.c.bf16 %v450_v31, %v420_v30 }
  0x66   : > { %5146 = vmatpush3.bf16.msra.mxu1 %v5938_v20  ;;  %5210 = vmatpush3.bf16.msra.mxu0 %v5940_v26  ;;  %v453_v20 = vld [vmem:[%s6309_s18 + $0x6d8] sm:$0xff]  ;;  %v811_v26 = vpack.c.bf16 %v451_v18, %v421_v17  ;;  %v630_v17 = vld [vmem:[%s6309_s18 + $0xc60] sm:$0xff] }
  0x67   : > { %5259 = vmatprep.subr.bf16.mxu1 %v5941_v32  ;;  %5323 = vmatprep.subr.bf16.mxu0 %v5943_v36  ;;  %v813_v27 = vpack.c.bf16 %v453_v20, %v423_v19  ;;  %v422_v32 = vld [vmem:[%s6309_s18 + $0x5e0] sm:$0xff]  ;;  %v511_v36 = vld [vmem:[%s6309_s18 + $0x8a8] sm:$0xff]  ;;  %v632_v19 = vld [vmem:[%s6309_s18 + $0xc70] sm:$0xff] }
  0x68   : > { %3044 = vmatmul.mubr.bf16.gmra.mrb[32].mxu1 %v836_v49  ;;  %3141 = vmatmul.mubr.bf16.gmra.mrb[32].mxu0 %v838_v50  ;;  %v303_v49 = vld [vmem:[%s6309_s18 + $0x228] sm:$0xff]  ;;  %v333_v50 = vld [vmem:[%s6309_s18 + $0x318] sm:$0xff]  ;;  %v812_v42 = vpack.c.bf16 %v452_v33, %v422_v32  ;;  %v841_v44 = vpack.c.bf16 %v511_v36, %v481_v35  ;;  %v602_v18 = vld [vmem:[%s6309_s18 + $0xb80] sm:$0xff] }
  0x69   : > { %3051 = vmatprep.mubr.bf16.mxu1 %v867_v54  ;;  %3148 = vmatprep.mubr.bf16.mxu0 %v869_v55  ;;  %v5945_v54 = vld [vmem:[%s7934_s1 + $0x2c8] sm:$0xff]   ;;  %v300_v55 = vld [vmem:[%s6309_s18 + $0x210] sm:$0xff]  ;;  %v753_v57 = vpack.c.bf16 %v333_v50, %v303_v49  ;;  %v482_v49 = vld [vmem:[%s6309_s18 + $0x7c0] sm:$0xff] }
  0x6a   : > { %v512_v50 = vld [vmem:[%s6309_s18 + $0x8b0] sm:$0xff]  ;;  %v5975_v20 = vld [vmem:[%s7934_s1 + $0x440] sm:$0xff]   ;;  %v245_v33 = vld [vmem:[%s6309_s18 + $0x58] sm:$0xff] }
  0x6b   : > { %v842_v59 = vpack.c.bf16 %v512_v50, %v482_v49  ;;  %v690_v30 = vld [vmem:[%s6309_s18 + $0xe40] sm:$0xff]  ;;  %v692_v32 = vld [vmem:[%s6309_s18 + $0xe50] sm:$0xff]  ;;  %v247_v35 = vld [vmem:[%s6309_s18 + $0x68] sm:$0xff] }
  0x6c   : > { %v662_v31 = vld [vmem:[%s6309_s18 + $0xd60] sm:$0xff]  ;;  %v277_v36 = vld [vmem:[%s6309_s18 + $0x158] sm:$0xff] }
  0x70   : > { %3052 = vmatmul.mubr.bf16.gmra.mrb[36].mxu1 %v866_v4  ;;  %3149 = vmatmul.mubr.bf16.gmra.mrb[36].mxu0 %v868_v5  ;;  %v5951_v4 = vld [vmem:[%s7934_s1 + $0x350] sm:$0xff]   ;;  %v750_v5 = vpack.c.bf16 %v330_v56, %v300_v55  ;;  %v543_v55 = vld [vmem:[%s6309_s18 + $0x9a8] sm:$0xff]  ;;  %v573_v56 = vld [vmem:[%s6309_s18 + $0xa98] sm:$0xff] }
  0x71   : > { %3059 = vmatprep.mubr.bf16.mxu1 %v897_v7  ;;  %3156 = vmatprep.mubr.bf16.mxu0 %v899_v8  ;;  %v781_v7 = vpack.c.bf16 %v391_v0, %v361_v63  ;;  %v783_v8 = vpack.c.bf16 %v393_v3, %v363_v2  ;;  %v5969_v63 = vld [vmem:[%s7934_s1 + $0x2f8] sm:$0xff]   ;;  %v540_v0 = vld [vmem:[%s6309_s18 + $0x990] sm:$0xff]  ;;  %v542_v2 = vld [vmem:[%s6309_s18 + $0x9a0] sm:$0xff] }
  0x72   : > { %v572_v3 = vld [vmem:[%s6309_s18 + $0xa90] sm:$0xff] }
  0x78   : > { %3060 = vmatmul.mubr.bf16.gmra.mrb[40].mxu1 %v896_v21  ;;  %3157 = vmatmul.mubr.bf16.gmra.mrb[40].mxu0 %v898_v22  ;;  %v5954_v21 = vld [vmem:[%s7934_s1 + $0x298] sm:$0xff]  }
  0x79   : > { %3067 = vmatprep.mubr.bf16.mxu1 %v927_v24  ;;  %3164 = vmatprep.mubr.bf16.mxu0 %v929_v25  ;;  %v5956_v22 = vld [vmem:[%s7934_s1 + $0x318] sm:$0xff]   ;;  %v780_v24 = vpack.c.bf16 %v390_v13, %v360_v12  ;;  %v782_v25 = vpack.c.bf16 %v392_v15, %v362_v14  ;;  %v872_v12 = vpack.c.bf16 %v572_v3, %v542_v2  ;;  %v5973_v15 = vld [vmem:[%s7934_s1 + $0x3c0] sm:$0xff]   ;;  %v367_v2 = vld [vmem:[%s6309_s18 + $0x428] sm:$0xff] }
  0x7a   : > { %v397_v3 = vld [vmem:[%s6309_s18 + $0x518] sm:$0xff] }
  0x80   : > { %3068 = vmatmul.mubr.bf16.gmra.mrb[44].mxu1 %v926_v37  ;;  %3165 = vmatmul.mubr.bf16.gmra.mrb[44].mxu0 %v928_v38  ;;  %v483_v37 = vld [vmem:[%s6309_s18 + $0x7c8] sm:$0xff] }
  0x81   : > { %3205 = vmatprep.mubr.bf16.mxu1 %v721_v39  ;;  %3302 = vmatprep.mubr.bf16.mxu0 %v723_v40  ;;  %v5961_v38 = vld [vmem:[%s7934_s1 + $0x2e8] sm:$0xff]   ;;  %v513_v39 = vld [vmem:[%s6309_s18 + $0x8b8] sm:$0xff] }
  0x82   : > { %v5962_v40 = vld [vmem:[%s7934_s1 + $0x2a8] sm:$0xff]   ;;  %v843_v45 = vpack.c.bf16 %v513_v39, %v483_v37 }
  0x88   : > { %3206 = vmatmul.mubr.bf16.vlgmr.msra.gmra.mrb[48].mxu1 %v720_v47  ;;  %3303 = vmatmul.mubr.bf16.vlgmr.msra.gmra.mrb[48].mxu0 %v722_v48  ;;  %v480_v47 = vld [vmem:[%s6309_s18 + $0x7b0] sm:$0xff]  ;;  %v510_v48 = vld [vmem:[%s6309_s18 + $0x8a0] sm:$0xff] }
  0x89   : > { %5260 = vmatpush3.bf16.msra.mxu1 %v5942_v51  ;;  %5324 = vmatpush3.bf16.msra.mxu0 %v5944_v52  ;;  %v541_v51 = vld [vmem:[%s6309_s18 + $0x998] sm:$0xff]  ;;  %v571_v52 = vld [vmem:[%s6309_s18 + $0xa88] sm:$0xff] }
  0x8a   : > { %3213 = vmatprep.mubr.bf16.mxu1 %v751_v53  ;;  %5261 = vmatprep.subr.bf16.mxu1 %v5945_v54  ;;  %v5965_v53 = vld [vmem:[%s7934_s1 + $0x2f0] sm:$0xff]  }
  0x8b   : > { %3310 = vmatprep.mubr.bf16.mxu0 %v753_v57  ;;  %5325 = vmatprep.subr.bf16.mxu0 %v5947_v61  ;;  %v5966_v54 = vld [vmem:[%s7934_s1 + $0x2b0] sm:$0xff]   ;;  %v871_v61 = vpack.c.bf16 %v571_v52, %v541_v51  ;;  %v337_v51 = vld [vmem:[%s6309_s18 + $0x338] sm:$0xff]  ;;  %v5976_v52 = vld [vmem:[%s7934_s1 + $0x400] sm:$0xff]  }
  0x8c   : > { %v5967_v57 = vld [vmem:[%s7934_s1 + $0x370] sm:$0xff]  }
  0x8d   : > { %5262 = vmatpush3.bf16.msra.mxu1 %v5946_v58  ;;  %5326 = vmatpush3.bf16.msra.mxu0 %v5948_v62  ;;  %v840_v58 = vpack.c.bf16 %v510_v48, %v480_v47  ;;  %v873_v62 = vpack.c.bf16 %v573_v56, %v543_v55  ;;  %v335_v47 = vld [vmem:[%s6309_s18 + $0x328] sm:$0xff]  ;;  %v304_v56 = vld [vmem:[%s6309_s18 + $0x230] sm:$0xff] }
  0x8e   : > { %5263 = vmatprep.subr.bf16.mxu1 %v5949_v1  ;;  %5327 = vmatprep.subr.bf16.mxu0 %v5951_v4  ;;  %v570_v1 = vld [vmem:[%s6309_s18 + $0xa80] sm:$0xff]  ;;  %v601_v4 = vld [vmem:[%s6309_s18 + $0xb78] sm:$0xff]  ;;  %v307_v48 = vld [vmem:[%s6309_s18 + $0x248] sm:$0xff] }
  0x8f   : > { %v5979_v55 = vld [vmem:[%s7934_s1 + $0x448] sm:$0xff]  }
  0x90   : > { %3214 = vmatmul.mubr.bf16.gmra.mrb[52].mxu1 %v750_v5  ;;  %3311 = vmatmul.mubr.bf16.gmra.mrb[52].mxu0 %v752_v6  ;;  %v631_v5 = vld [vmem:[%s6309_s18 + $0xc68] sm:$0xff] }
  0x91   : > { %3221 = vmatprep.mubr.bf16.mxu1 %v781_v7  ;;  %3318 = vmatprep.mubr.bf16.mxu0 %v783_v8  ;;  %v603_v6 = vld [vmem:[%s6309_s18 + $0xb88] sm:$0xff]  ;;  %v5970_v7 = vld [vmem:[%s7934_s1 + $0x2b8] sm:$0xff]   ;;  %v901_v13 = vpack.c.bf16 %v631_v5, %v601_v4  ;;  %v5983_v4 = vld [vmem:[%s7934_s1 + $0x450] sm:$0xff]  }
  0x92   : > { %5264 = vmatpush3.bf16.msra.mxu1 %v5950_v9  ;;  %5328 = vmatpush3.bf16.msra.mxu0 %v5952_v10  ;;  %v633_v8 = vld [vmem:[%s6309_s18 + $0xc78] sm:$0xff] }
  0x93   : > { %5265 = vmatprep.subr.bf16.mxu1 %v5953_v11  ;;  %5329 = vmatprep.subr.bf16.mxu0 %v5955_v16  ;;  %v5971_v9 = vld [vmem:[%s7934_s1 + $0x378] sm:$0xff]   ;;  %v870_v11 = vpack.c.bf16 %v570_v1, %v540_v0  ;;  %v903_v14 = vpack.c.bf16 %v633_v8, %v603_v6  ;;  %v600_v16 = vld [vmem:[%s6309_s18 + $0xb70] sm:$0xff]  ;;  %v395_v0 = vld [vmem:[%s6309_s18 + $0x508] sm:$0xff]  ;;  %v787_v8 = vpack.c.bf16 %v397_v3, %v367_v2 }
  0x94   : > { %v5972_v10 = vld [vmem:[%s7934_s1 + $0x338] sm:$0xff]   ;;  %v5981_v1 = vld [vmem:[%s7934_s1 + $0x3d0] sm:$0xff]  }
  0x96   : > { %5266 = vmatpush3.bf16.msra.mxu1 %v5954_v21  ;;  %5330 = vmatpush3.bf16.msra.mxu0 %v5956_v22  ;;  %v661_v21 = vld [vmem:[%s6309_s18 + $0xd58] sm:$0xff]  ;;  %v691_v22 = vld [vmem:[%s6309_s18 + $0xe48] sm:$0xff] }
  0x97   : > { %5267 = vmatprep.subr.bf16.mxu1 %v5957_v23  ;;  %5331 = vmatprep.subr.bf16.mxu0 %v5959_v29  ;;  %v663_v23 = vld [vmem:[%s6309_s18 + $0xd68] sm:$0xff]  ;;  %v660_v29 = vld [vmem:[%s6309_s18 + $0xd50] sm:$0xff] }
  0x98   : > { %3222 = vmatmul.mubr.bf16.gmra.mrb[56].mxu1 %v780_v24  ;;  %3319 = vmatmul.mubr.bf16.gmra.mrb[56].mxu0 %v782_v25  ;;  %v693_v24 = vld [vmem:[%s6309_s18 + $0xe58] sm:$0xff]  ;;  %v900_v25 = vpack.c.bf16 %v630_v17, %v600_v16  ;;  %v930_v37 = vpack.c.bf16 %v690_v30, %v660_v29  ;;  %v5990_v29 = vld [vmem:[%s7934_s1 + $0x3a0] sm:$0xff]  }
  0x99   : > { %3229 = vmatprep.mubr.bf16.mxu1 %v811_v26  ;;  %3326 = vmatprep.mubr.bf16.mxu0 %v813_v27  ;;  %v902_v26 = vpack.c.bf16 %v632_v19, %v602_v18  ;;  %v931_v27 = vpack.c.bf16 %v691_v22, %v661_v21  ;;  %v5987_v16 = vld [vmem:[%s7934_s1 + $0x458] sm:$0xff]   ;;  %v455_v18 = vld [vmem:[%s6309_s18 + $0x6e8] sm:$0xff]  ;;  %v5992_v30 = vld [vmem:[%s7934_s1 + $0x420] sm:$0xff]  }
  0x9a   : > { %5268 = vmatpush3.bf16.msra.mxu1 %v5958_v28  ;;  %5332 = vmatpush3.bf16.msra.mxu0 %v5960_v34  ;;  %v933_v28 = vpack.c.bf16 %v693_v24, %v663_v23  ;;  %v275_v34 = vld [vmem:[%s6309_s18 + $0x148] sm:$0xff]  ;;  %v425_v17 = vld [vmem:[%s6309_s18 + $0x5f8] sm:$0xff]  ;;  %v5989_v23 = vld [vmem:[%s7934_s1 + $0x3e0] sm:$0xff]  }
  0x9b   : > { %5269 = vmatprep.subr.bf16.mxu1 %v5961_v38  ;;  %5333 = vmatprep.subr.bf16.mxu0 %v5963_v43  ;;  %v932_v38 = vpack.c.bf16 %v692_v32, %v662_v31  ;;  %v725_v39 = vpack.c.bf16 %v275_v34, %v245_v33  ;;  %v246_v43 = vld [vmem:[%s6309_s18 + $0x60] sm:$0xff]  ;;  %v427_v19 = vld [vmem:[%s6309_s18 + $0x608] sm:$0xff]  ;;  %v5986_v21 = vld [vmem:[%s7934_s1 + $0x398] sm:$0xff]  }
  0x9c   : > { %v5988_v22 = vld [vmem:[%s7934_s1 + $0x418] sm:$0xff]   ;;  %v5991_v24 = vld [vmem:[%s7934_s1 + $0x460] sm:$0xff]   ;;  %v424_v31 = vld [vmem:[%s6309_s18 + $0x5f0] sm:$0xff] }
  0x9d   : > { %v454_v32 = vld [vmem:[%s6309_s18 + $0x6e0] sm:$0xff]  ;;  %v456_v34 = vld [vmem:[%s6309_s18 + $0x6f0] sm:$0xff] }
  0x9e   : > { %5270 = vmatpush3.bf16.msra.mxu1 %v5962_v40  ;;  %5334 = vmatpush3.bf16.msra.mxu0 %v5964_v46  ;;  %v727_v40 = vpack.c.bf16 %v277_v36, %v247_v35  ;;  %v305_v46 = vld [vmem:[%s6309_s18 + $0x238] sm:$0xff]  ;;  %v426_v33 = vld [vmem:[%s6309_s18 + $0x600] sm:$0xff]  ;;  %v5993_v35 = vld [vmem:[%s7934_s1 + $0x3e8] sm:$0xff]  }
  0x9f   : > { %5271 = vmatprep.subr.bf16.mxu1 %v5965_v53  ;;  %5335 = vmatprep.subr.bf16.mxu0 %v5967_v57  ;;  %v755_v53 = vpack.c.bf16 %v335_v47, %v305_v46  ;;  %v334_v57 = vld [vmem:[%s6309_s18 + $0x320] sm:$0xff]  ;;  %v5995_v36 = vld [vmem:[%s7934_s1 + $0x468] sm:$0xff]   ;;  %v816_v46 = vpack.c.bf16 %v456_v34, %v426_v33  ;;  %v249_v33 = vld [vmem:[%s6309_s18 + $0x78] sm:$0xff] }
  0xa0   : > { %3230 = vmatmul.mubr.bf16.gmra.mrb[60].mxu1 %v810_v41  ;;  %3327 = vmatmul.mubr.bf16.gmra.mrb[60].mxu0 %v812_v42  ;;  %v244_v41 = vld [vmem:[%s6309_s18 + $0x50] sm:$0xff]  ;;  %v274_v42 = vld [vmem:[%s6309_s18 + $0x140] sm:$0xff]  ;;  %v754_v5 = vpack.c.bf16 %v334_v57, %v304_v56  ;;  %v6003_v56 = vld [vmem:[%s7934_s1 + $0x478] sm:$0xff]  }
  0xa1   : > { %3237 = vmatprep.mubr.bf16.mxu1 %v841_v44  ;;  %3334 = vmatprep.mubr.bf16.mxu0 %v843_v45  ;;  %v276_v44 = vld [vmem:[%s6309_s18 + $0x150] sm:$0xff]  ;;  %v5974_v45 = vld [vmem:[%s7934_s1 + $0x380] sm:$0xff]   ;;  %v724_v49 = vpack.c.bf16 %v274_v42, %v244_v41  ;;  %v5994_v41 = vld [vmem:[%s7934_s1 + $0x3a8] sm:$0xff]  }
  0xa2   : > { %5272 = vmatpush3.bf16.msra.mxu1 %v5966_v54  ;;  %5336 = vmatpush3.bf16.msra.mxu0 %v5968_v60  ;;  %v726_v50 = vpack.c.bf16 %v276_v44, %v246_v43  ;;  %v5977_v54 = vld [vmem:[%s7934_s1 + $0x3c8] sm:$0xff]   ;;  %v306_v60 = vld [vmem:[%s6309_s18 + $0x240] sm:$0xff]  ;;  %v5997_v43 = vld [vmem:[%s7934_s1 + $0x3f0] sm:$0xff]  }
  0xa3   : > { %5273 = vmatprep.subr.bf16.mxu1 %v5969_v63  ;;  %5337 = vmatprep.subr.bf16.mxu0 %v5971_v9  ;;  %v365_v63 = vld [vmem:[%s6309_s18 + $0x418] sm:$0xff]  ;;  %v5982_v9 = vld [vmem:[%s7934_s1 + $0x390] sm:$0xff]   ;;  %v5996_v42 = vld [vmem:[%s7934_s1 + $0x428] sm:$0xff]  }
  0xa4   : > { %v5999_v44 = vld [vmem:[%s7934_s1 + $0x470] sm:$0xff]   ;;  %v545_v57 = vld [vmem:[%s6309_s18 + $0x9b8] sm:$0xff]  ;;  %v279_v34 = vld [vmem:[%s6309_s18 + $0x168] sm:$0xff] }
  0xa6   : > { %5274 = vmatpush3.bf16.msra.mxu1 %v5970_v7  ;;  %5338 = vmatpush3.bf16.msra.mxu0 %v5972_v10  ;;  %v785_v7 = vpack.c.bf16 %v395_v0, %v365_v63  ;;  %v5984_v10 = vld [vmem:[%s7934_s1 + $0x410] sm:$0xff]   ;;  %v6005_v63 = vld [vmem:[%s7934_s1 + $0x4c0] sm:$0xff]  }
  0xa7   : > { %5387 = vmatprep.subr.bf16.mxu1 %v5973_v15  ;;  %5451 = vmatprep.subr.bf16.mxu0 %v5975_v20  ;;  %v5985_v15 = vld [vmem:[%s7934_s1 + $0x3d8] sm:$0xff]  }
  0xa8   : > { %3238 = vmatmul.mubr.bf16.gmra.mrb[64].mxu1 %v840_v58  ;;  %3335 = vmatmul.mubr.bf16.gmra.mrb[64].mxu0 %v842_v59  ;;  %v757_v58 = vpack.c.bf16 %v337_v51, %v307_v48  ;;  %v5978_v59 = vld [vmem:[%s7934_s1 + $0x388] sm:$0xff]   ;;  %v457_v20 = vld [vmem:[%s6309_s18 + $0x6f8] sm:$0xff] }
  0xa9   : > { %3245 = vmatprep.mubr.bf16.mxu1 %v871_v61  ;;  %3342 = vmatprep.mubr.bf16.mxu0 %v873_v62  ;;  %v336_v61 = vld [vmem:[%s6309_s18 + $0x330] sm:$0xff]  ;;  %v5980_v62 = vld [vmem:[%s7934_s1 + $0x408] sm:$0xff]   ;;  %v6001_v51 = vld [vmem:[%s7934_s1 + $0x3f8] sm:$0xff]  }
  0xaa   : > { %v756_v6 = vpack.c.bf16 %v336_v61, %v306_v60  ;;  %v577_v60 = vld [vmem:[%s6309_s18 + $0xab8] sm:$0xff] }
  0xab   : > { %v6002_v61 = vld [vmem:[%s7934_s1 + $0x3b8] sm:$0xff]  }
  0xb0   : > { %3246 = vmatmul.mubr.bf16.gmra.mrb[68].mxu1 %v870_v11  ;;  %3343 = vmatmul.mubr.bf16.gmra.mrb[68].mxu0 %v872_v12  ;;  %v364_v11 = vld [vmem:[%s6309_s18 + $0x410] sm:$0xff]  ;;  %v394_v12 = vld [vmem:[%s6309_s18 + $0x500] sm:$0xff] }
  0xb1   : > { %3253 = vmatprep.mubr.bf16.mxu1 %v901_v13  ;;  %3350 = vmatprep.mubr.bf16.mxu0 %v903_v14  ;;  %v366_v13 = vld [vmem:[%s6309_s18 + $0x420] sm:$0xff]  ;;  %v396_v14 = vld [vmem:[%s6309_s18 + $0x510] sm:$0xff] }
  0xb8   : > { %3254 = vmatmul.mubr.bf16.gmra.mrb[72].mxu1 %v900_v25  ;;  %3351 = vmatmul.mubr.bf16.gmra.mrb[72].mxu0 %v902_v26  ;;  %v784_v25 = vpack.c.bf16 %v394_v12, %v364_v11  ;;  %v786_v26 = vpack.c.bf16 %v396_v14, %v366_v13  ;;  %v607_v11 = vld [vmem:[%s6309_s18 + $0xba8] sm:$0xff]  ;;  %v637_v12 = vld [vmem:[%s6309_s18 + $0xc98] sm:$0xff] }
  0xb9   : > { %3261 = vmatprep.mubr.bf16.mxu1 %v931_v27  ;;  %3358 = vmatprep.mubr.bf16.mxu0 %v933_v28  ;;  %v815_v27 = vpack.c.bf16 %v455_v18, %v425_v17  ;;  %v817_v28 = vpack.c.bf16 %v457_v20, %v427_v19  ;;  %v604_v17 = vld [vmem:[%s6309_s18 + $0xb90] sm:$0xff]  ;;  %v634_v18 = vld [vmem:[%s6309_s18 + $0xc80] sm:$0xff] }
  0xba   : > { %v606_v19 = vld [vmem:[%s6309_s18 + $0xba0] sm:$0xff]  ;;  %v636_v20 = vld [vmem:[%s6309_s18 + $0xc90] sm:$0xff] }
  0xc0   : > { %3262 = vmatmul.mubr.bf16.gmra.mrb[76].mxu1 %v930_v37  ;;  %3359 = vmatmul.mubr.bf16.gmra.mrb[76].mxu0 %v932_v38  ;;  %v485_v37 = vld [vmem:[%s6309_s18 + $0x7d8] sm:$0xff]  ;;  %v515_v38 = vld [vmem:[%s6309_s18 + $0x8c8] sm:$0xff] }
  0xc1   : > { %3399 = vmatprep.mubr.bf16.mxu1 %v725_v39  ;;  %3496 = vmatprep.mubr.bf16.mxu0 %v727_v40  ;;  %v487_v39 = vld [vmem:[%s6309_s18 + $0x7e8] sm:$0xff]  ;;  %v517_v40 = vld [vmem:[%s6309_s18 + $0x8d8] sm:$0xff]  ;;  %v845_v47 = vpack.c.bf16 %v515_v38, %v485_v37 }
  0xc2   : > { %v847_v48 = vpack.c.bf16 %v517_v40, %v487_v39 }
  0xc8   : > { %3400 = vmatmul.mubr.bf16.vlgmr.msra.gmra.mrb[80].mxu1 %v724_v49  ;;  %3497 = vmatmul.mubr.bf16.vlgmr.msra.gmra.mrb[80].mxu0 %v726_v50  ;;  %v5998_v49 = vld [vmem:[%s7934_s1 + $0x3b0] sm:$0xff]  }
  0xc9   : > { %5388 = vmatpush3.bf16.msra.mxu1 %v5974_v45  ;;  %5452 = vmatpush3.bf16.msra.mxu0 %v5976_v52  ;;  %v814_v45 = vpack.c.bf16 %v454_v32, %v424_v31  ;;  %v6000_v50 = vld [vmem:[%s7934_s1 + $0x430] sm:$0xff]   ;;  %v666_v31 = vld [vmem:[%s6309_s18 + $0xd80] sm:$0xff] }
  0xca   : > { %3407 = vmatprep.mubr.bf16.mxu1 %v755_v53  ;;  %5389 = vmatprep.subr.bf16.mxu1 %v5977_v54  ;;  %v484_v52 = vld [vmem:[%s6309_s18 + $0x7d0] sm:$0xff]  ;;  %v514_v53 = vld [vmem:[%s6309_s18 + $0x8c0] sm:$0xff] }
  0xcb   : > { %3504 = vmatprep.mubr.bf16.mxu0 %v757_v58  ;;  %5453 = vmatprep.subr.bf16.mxu0 %v5979_v55  ;;  %v486_v54 = vld [vmem:[%s6309_s18 + $0x7e0] sm:$0xff]  ;;  %v516_v55 = vld [vmem:[%s6309_s18 + $0x8d0] sm:$0xff]  ;;  %v575_v58 = vld [vmem:[%s6309_s18 + $0xaa8] sm:$0xff]  ;;  %v844_v0 = vpack.c.bf16 %v514_v53, %v484_v52 }
  0xcc   : > { %v875_v2 = vpack.c.bf16 %v575_v58, %v545_v57  ;;  %v696_v32 = vld [vmem:[%s6309_s18 + $0xe70] sm:$0xff]  ;;  %v309_v57 = vld [vmem:[%s6309_s18 + $0x258] sm:$0xff] }
  0xcd   : > { %5390 = vmatpush3.bf16.msra.mxu1 %v5978_v59  ;;  %5454 = vmatpush3.bf16.msra.mxu0 %v5980_v62  ;;  %v547_v59 = vld [vmem:[%s6309_s18 + $0x9c8] sm:$0xff]  ;;  %v6004_v62 = vld [vmem:[%s7934_s1 + $0x438] sm:$0xff]   ;;  %v248_v53 = vld [vmem:[%s6309_s18 + $0x70] sm:$0xff] }
  0xce   : > { %5391 = vmatprep.subr.bf16.mxu1 %v5981_v1  ;;  %5455 = vmatprep.subr.bf16.mxu0 %v5983_v4  ;;  %v846_v1 = vpack.c.bf16 %v516_v55, %v486_v54  ;;  %v877_v3 = vpack.c.bf16 %v577_v60, %v547_v59  ;;  %v6007_v4 = vld [vmem:[%s7934_s1 + $0x540] sm:$0xff]   ;;  %v339_v60 = vld [vmem:[%s6309_s18 + $0x348] sm:$0xff] }
  0xcf   : > { %v278_v54 = vld [vmem:[%s6309_s18 + $0x160] sm:$0xff] }
  0xd0   : > { %3408 = vmatmul.mubr.bf16.gmra.mrb[84].mxu1 %v754_v5  ;;  %3505 = vmatmul.mubr.bf16.gmra.mrb[84].mxu0 %v756_v6  ;;  %v544_v5 = vld [vmem:[%s6309_s18 + $0x9b0] sm:$0xff]  ;;  %v574_v6 = vld [vmem:[%s6309_s18 + $0xaa0] sm:$0xff] }
  0xd1   : > { %3415 = vmatprep.mubr.bf16.mxu1 %v785_v7  ;;  %3512 = vmatprep.mubr.bf16.mxu0 %v787_v8  ;;  %v546_v7 = vld [vmem:[%s6309_s18 + $0x9c0] sm:$0xff]  ;;  %v576_v8 = vld [vmem:[%s6309_s18 + $0xab0] sm:$0xff]  ;;  %v874_v13 = vpack.c.bf16 %v574_v6, %v544_v5 }
  0xd2   : > { %5392 = vmatpush3.bf16.msra.mxu1 %v5982_v9  ;;  %5456 = vmatpush3.bf16.msra.mxu0 %v5984_v10  ;;  %v605_v9 = vld [vmem:[%s6309_s18 + $0xb98] sm:$0xff]  ;;  %v635_v10 = vld [vmem:[%s6309_s18 + $0xc88] sm:$0xff]  ;;  %v876_v14 = vpack.c.bf16 %v576_v8, %v546_v7  ;;  %v250_v55 = vld [vmem:[%s6309_s18 + $0x80] sm:$0xff] }
  0xd3   : > { %5393 = vmatprep.subr.bf16.mxu1 %v5985_v15  ;;  %5457 = vmatprep.subr.bf16.mxu0 %v5987_v16  ;;  %v905_v15 = vpack.c.bf16 %v635_v10, %v605_v9  ;;  %v907_v16 = vpack.c.bf16 %v637_v12, %v607_v11  ;;  %v6006_v7 = vld [vmem:[%s7934_s1 + $0x480] sm:$0xff]   ;;  %v6009_v9 = vld [vmem:[%s7934_s1 + $0x4c8] sm:$0xff]   ;;  %v759_v12 = vpack.c.bf16 %v339_v60, %v309_v57  ;;  %v429_v57 = vld [vmem:[%s6309_s18 + $0x618] sm:$0xff] }
  0xd4   : > { %v6008_v8 = vld [vmem:[%s7934_s1 + $0x500] sm:$0xff]   ;;  %v461_v60 = vld [vmem:[%s6309_s18 + $0x718] sm:$0xff] }
  0xd6   : > { %5394 = vmatpush3.bf16.msra.mxu1 %v5986_v21  ;;  %5458 = vmatpush3.bf16.msra.mxu0 %v5988_v22  ;;  %v665_v21 = vld [vmem:[%s6309_s18 + $0xd78] sm:$0xff]  ;;  %v695_v22 = vld [vmem:[%s6309_s18 + $0xe68] sm:$0xff] }
  0xd7   : > { %5395 = vmatprep.subr.bf16.mxu1 %v5989_v23  ;;  %5459 = vmatprep.subr.bf16.mxu0 %v5991_v24  ;;  %v667_v23 = vld [vmem:[%s6309_s18 + $0xd88] sm:$0xff]  ;;  %v697_v24 = vld [vmem:[%s6309_s18 + $0xe78] sm:$0xff] }
  0xd8   : > { %3416 = vmatmul.mubr.bf16.gmra.mrb[88].mxu1 %v784_v25  ;;  %3513 = vmatmul.mubr.bf16.gmra.mrb[88].mxu0 %v786_v26  ;;  %v904_v25 = vpack.c.bf16 %v634_v18, %v604_v17  ;;  %v906_v26 = vpack.c.bf16 %v636_v20, %v606_v19  ;;  %v6010_v18 = vld [vmem:[%s7934_s1 + $0x488] sm:$0xff]   ;;  %v310_v19 = vld [vmem:[%s6309_s18 + $0x260] sm:$0xff]  ;;  %v340_v20 = vld [vmem:[%s6309_s18 + $0x350] sm:$0xff] }
  0xd9   : > { %3423 = vmatprep.mubr.bf16.mxu1 %v815_v27  ;;  %3520 = vmatprep.mubr.bf16.mxu0 %v817_v28  ;;  %v935_v27 = vpack.c.bf16 %v695_v22, %v665_v21  ;;  %v937_v28 = vpack.c.bf16 %v697_v24, %v667_v23  ;;  %v6011_v21 = vld [vmem:[%s7934_s1 + $0x548] sm:$0xff]   ;;  %v369_v23 = vld [vmem:[%s6309_s18 + $0x438] sm:$0xff] }
  0xda   : > { %5396 = vmatpush3.bf16.msra.mxu1 %v5990_v29  ;;  %5460 = vmatpush3.bf16.msra.mxu0 %v5992_v30  ;;  %v664_v29 = vld [vmem:[%s6309_s18 + $0xd70] sm:$0xff]  ;;  %v694_v30 = vld [vmem:[%s6309_s18 + $0xe60] sm:$0xff]  ;;  %v6012_v22 = vld [vmem:[%s7934_s1 + $0x508] sm:$0xff]  }
  0xdb   : > { %5397 = vmatprep.subr.bf16.mxu1 %v5993_v35  ;;  %5461 = vmatprep.subr.bf16.mxu0 %v5995_v36  ;;  %v251_v35 = vld [vmem:[%s6309_s18 + $0x88] sm:$0xff]  ;;  %v281_v36 = vld [vmem:[%s6309_s18 + $0x178] sm:$0xff] }
  0xdc   : > { %v399_v24 = vld [vmem:[%s6309_s18 + $0x528] sm:$0xff] }
  0xde   : > { %5398 = vmatpush3.bf16.msra.mxu1 %v5994_v41  ;;  %5462 = vmatpush3.bf16.msra.mxu0 %v5996_v42  ;;  %v934_v41 = vpack.c.bf16 %v694_v30, %v664_v29  ;;  %v936_v42 = vpack.c.bf16 %v696_v32, %v666_v31 }
  0xdf   : > { %5399 = vmatprep.subr.bf16.mxu1 %v5997_v43  ;;  %5463 = vmatprep.subr.bf16.mxu0 %v5999_v44 }
  0xe0   : > { %3424 = vmatmul.mubr.bf16.gmra.mrb[92].mxu1 %v814_v45  ;;  %3521 = vmatmul.mubr.bf16.gmra.mrb[92].mxu0 %v816_v46 }
  0xe1   : > { %3431 = vmatprep.mubr.bf16.mxu1 %v845_v47  ;;  %3528 = vmatprep.mubr.bf16.mxu0 %v847_v48  ;;  %v729_v47 = vpack.c.bf16 %v279_v34, %v249_v33  ;;  %v731_v48 = vpack.c.bf16 %v281_v36, %v251_v35  ;;  %v760_v34 = vpack.c.bf16 %v340_v20, %v310_v19 }
  0xe2   : > { %5400 = vmatpush3.bf16.msra.mxu1 %v5998_v49  ;;  %5464 = vmatpush3.bf16.msra.mxu0 %v6000_v50  ;;  %v789_v35 = vpack.c.bf16 %v399_v24, %v369_v23  ;;  %v428_v23 = vld [vmem:[%s6309_s18 + $0x610] sm:$0xff]  ;;  %v458_v24 = vld [vmem:[%s6309_s18 + $0x700] sm:$0xff] }
  0xe3   : > { %5401 = vmatprep.subr.bf16.mxu1 %v6001_v51  ;;  %5465 = vmatprep.subr.bf16.mxu0 %v6003_v56  ;;  %v280_v56 = vld [vmem:[%s6309_s18 + $0x170] sm:$0xff] }
  0xe6   : > { %5402 = vmatpush3.bf16.msra.mxu1 %v6002_v61  ;;  %5466 = vmatpush3.bf16.msra.mxu0 %v6004_v62  ;;  %v311_v61 = vld [vmem:[%s6309_s18 + $0x268] sm:$0xff]  ;;  %v341_v62 = vld [vmem:[%s6309_s18 + $0x358] sm:$0xff] }
  0xe7   : > { %5515 = vmatprep.subr.bf16.mxu1 %v6005_v63  ;;  %5579 = vmatprep.subr.bf16.mxu0 %v6007_v4  ;;  %v761_v17 = vpack.c.bf16 %v341_v62, %v311_v61  ;;  %v6018_v61 = vld [vmem:[%s7934_s1 + $0x498] sm:$0xff]  }
  0xe8   : > { %3432 = vmatmul.mubr.bf16.gmra.mrb[96].mxu1 %v844_v0  ;;  %3529 = vmatmul.mubr.bf16.gmra.mrb[96].mxu0 %v846_v1  ;;  %v728_v1 = vpack.c.bf16 %v278_v54, %v248_v53  ;;  %v398_v53 = vld [vmem:[%s6309_s18 + $0x520] sm:$0xff]  ;;  %v6020_v62 = vld [vmem:[%s7934_s1 + $0x518] sm:$0xff]  }
  0xe9   : > { %3439 = vmatprep.mubr.bf16.mxu1 %v875_v2  ;;  %3536 = vmatprep.mubr.bf16.mxu0 %v877_v3  ;;  %v730_v2 = vpack.c.bf16 %v280_v56, %v250_v55  ;;  %v370_v54 = vld [vmem:[%s6309_s18 + $0x440] sm:$0xff]  ;;  %v400_v55 = vld [vmem:[%s6309_s18 + $0x530] sm:$0xff]  ;;  %v6019_v56 = vld [vmem:[%s7934_s1 + $0x558] sm:$0xff]  }
  0xf0   : > { %3440 = vmatmul.mubr.bf16.gmra.mrb[100].mxu1 %v874_v13  ;;  %3537 = vmatmul.mubr.bf16.gmra.mrb[100].mxu0 %v876_v14 }
  0xf1   : > { %3447 = vmatprep.mubr.bf16.mxu1 %v905_v15  ;;  %3544 = vmatprep.mubr.bf16.mxu0 %v907_v16  ;;  %v308_v15 = vld [vmem:[%s6309_s18 + $0x250] sm:$0xff]  ;;  %v338_v16 = vld [vmem:[%s6309_s18 + $0x340] sm:$0xff] }
  0xf2   : > { %v758_v33 = vpack.c.bf16 %v338_v16, %v308_v15  ;;  %v6022_v16 = vld [vmem:[%s7934_s1 + $0x4a0] sm:$0xff]  }
  0xf8   : > { %3448 = vmatmul.mubr.bf16.gmra.mrb[104].mxu1 %v904_v25  ;;  %3545 = vmatmul.mubr.bf16.gmra.mrb[104].mxu0 %v906_v26  ;;  %v6013_v25 = vld [vmem:[%s7934_s1 + $0x4d0] sm:$0xff]   ;;  %v371_v26 = vld [vmem:[%s6309_s18 + $0x448] sm:$0xff] }
  0xf9   : > { %3455 = vmatprep.mubr.bf16.mxu1 %v935_v27  ;;  %3552 = vmatprep.mubr.bf16.mxu0 %v937_v28  ;;  %v401_v27 = vld [vmem:[%s6309_s18 + $0x538] sm:$0xff]  ;;  %v6015_v28 = vld [vmem:[%s7934_s1 + $0x550] sm:$0xff]  }
  0xfb   : > { %v4979_v37 = vpop.f32.mrb[0].mxu1  ;;  %v4955_v38 = vpop.f32.mrb[0].mxu0 }
  0xfc   : > { %v4980_v39 = vpop.f32.mrb[1].mxu1  ;;  %v4956_v40 = vpop.f32.mrb[1].mxu0 }
  0xfd   : > { %v6950_v43 = vadd.f32 %v4980_v39, %v4979_v37  ;;  %v4982_v44 = vpop.f32.mrb[2].mxu1  ;;  %v6952_v45 = vadd.f32 %v4956_v40, %v4955_v38  ;;  %v4958_v46 = vpop.f32.mrb[2].mxu0  ;;  %v791_v40 = vpack.c.bf16 %v401_v27, %v371_v26  ;;  %v6025_v26 = vld [vmem:[%s7934_s1 + $0x4e8] sm:$0xff]   ;;  %v460_v27 = vld [vmem:[%s6309_s18 + $0x710] sm:$0xff] }
  0xfe   : > { %v4983_v49 = vpop.f32.mrb[3].mxu1  ;;  %v4959_v50 = vpop.f32.mrb[3].mxu0 }
  0xff   : > { %v6954_v51 = vadd.f32 %v4983_v49, %v4982_v44  ;;  %v6956_v52 = vadd.f32 %v4959_v50, %v4958_v46  ;;  %v6014_v44 = vld [vmem:[%s7934_s1 + $0x490] sm:$0xff]  }
 0x100   : > { %3456 = vmatmul.mubr.bf16.gmra.mrb[108].mxu1 %v934_v41  ;;  %3553 = vmatmul.mubr.bf16.gmra.mrb[108].mxu0 %v936_v42  ;;  %v6016_v46 = vld [vmem:[%s7934_s1 + $0x510] sm:$0xff]  }
 0x101   : > { %3593 = vmatprep.mubr.bf16.mxu1 %v729_v47  ;;  %3690 = vmatprep.mubr.bf16.mxu0 %v731_v48  ;;  %v6017_v47 = vld [vmem:[%s7934_s1 + $0x4d8] sm:$0xff]   ;;  %v368_v50 = vld [vmem:[%s6309_s18 + $0x430] sm:$0xff] }
 0x103   : > { %v4985_v58 = vpop.f32.mrb[4].mxu1  ;;  %v4961_v59 = vpop.f32.mrb[4].mxu0 }
 0x104   : > { %v4986_v63 = vpop.f32.mrb[5].mxu1  ;;  %v4962_v0 = vpop.f32.mrb[5].mxu0 }
 0x105   : > { %v6966_v3 = vadd.f32 %v4986_v63, %v4985_v58  ;;  %v4988_v4 = vpop.f32.mrb[6].mxu1  ;;  %v6968_v5 = vadd.f32 %v4962_v0, %v4961_v59  ;;  %v4964_v6 = vpop.f32.mrb[6].mxu0  ;;  %v459_v58 = vld [vmem:[%s6309_s18 + $0x708] sm:$0xff] }
 0x106   : > { %v4989_v10 = vpop.f32.mrb[7].mxu1  ;;  %v4965_v11 = vpop.f32.mrb[7].mxu0  ;;  %v431_v59 = vld [vmem:[%s6309_s18 + $0x628] sm:$0xff] }
 0x107   : > { %v6979_v13 = vadd.f32 %v4989_v10, %v4988_v4  ;;  %v6981_v14 = vadd.f32 %v4965_v11, %v4964_v6  ;;  %v788_v6 = vpack.c.bf16 %v398_v53, %v368_v50  ;;  %v821_v15 = vpack.c.bf16 %v461_v60, %v431_v59 }
 0x108   : > { %3594 = vmatmul.mubr.bf16.vlgmr.msra.gmra.mrb[112].mxu1 %v728_v1  ;;  %3691 = vmatmul.mubr.bf16.vlgmr.msra.gmra.mrb[112].mxu0 %v730_v2  ;;  %v6021_v1 = vld [vmem:[%s7934_s1 + $0x4e0] sm:$0xff]  }
 0x109   : > { %5516 = vmatpush3.bf16.msra.mxu1 %v6006_v7  ;;  %5580 = vmatpush3.bf16.msra.mxu0 %v6008_v8  ;;  %v790_v7 = vpack.c.bf16 %v400_v55, %v370_v54 }
 0x10a   : > { %3601 = vmatprep.mubr.bf16.mxu1 %v759_v12  ;;  %5517 = vmatprep.subr.bf16.mxu1 %v6009_v9  ;;  %v819_v12 = vpack.c.bf16 %v459_v58, %v429_v57 }
 0x10b   : > { %v4991_v29 = vpop.f32.mrb[8].mxu1  ;;  %v4967_v30 = vpop.f32.mrb[8].mxu0  ;;  %3698 = vmatprep.mubr.bf16.mxu0 %v761_v17  ;;  %5581 = vmatprep.subr.bf16.mxu0 %v6011_v21  ;;  %v6023_v17 = vld [vmem:[%s7934_s1 + $0x560] sm:$0xff]  }
 0x10c   : > { %v4992_v31 = vpop.f32.mrb[9].mxu1  ;;  %v4968_v32 = vpop.f32.mrb[9].mxu0 }
 0x10d   : > { %v7006_v36 = vadd.f32 %v4992_v31, %v4991_v29  ;;  %v4994_v37 = vpop.f32.mrb[10].mxu1  ;;  %v7008_v38 = vadd.f32 %v4968_v32, %v4967_v30  ;;  %v4970_v39 = vpop.f32.mrb[10].mxu0  ;;  %5518 = vmatpush3.bf16.msra.mxu1 %v6010_v18  ;;  %5582 = vmatpush3.bf16.msra.mxu0 %v6012_v22  ;;  %v6024_v18 = vld [vmem:[%s7934_s1 + $0x520] sm:$0xff]   ;;  %v6027_v29 = vld [vmem:[%s7934_s1 + $0x568] sm:$0xff]   ;;  %v521_v32 = vld [vmem:[%s6309_s18 + $0x8f8] sm:$0xff] }
 0x10e   : > { %v4995_v41 = vpop.f32.mrb[11].mxu1  ;;  %v4971_v42 = vpop.f32.mrb[11].mxu0  ;;  %5519 = vmatprep.subr.bf16.mxu1 %v6013_v25  ;;  %5583 = vmatprep.subr.bf16.mxu0 %v6015_v28  ;;  %v430_v25 = vld [vmem:[%s6309_s18 + $0x620] sm:$0xff]  ;;  %v489_v28 = vld [vmem:[%s6309_s18 + $0x7f8] sm:$0xff]  ;;  %v519_v30 = vld [vmem:[%s6309_s18 + $0x8e8] sm:$0xff] }
 0x10f   : > { %v7019_v48 = vadd.f32 %v4995_v41, %v4994_v37  ;;  %v7021_v49 = vadd.f32 %v4971_v42, %v4970_v39  ;;  %v491_v31 = vld [vmem:[%s6309_s18 + $0x808] sm:$0xff]  ;;  %v6029_v39 = vld [vmem:[%s7934_s1 + $0x4f0] sm:$0xff]  }
 0x110   : > { %3602 = vmatmul.mubr.bf16.gmra.mrb[116].mxu1 %v758_v33  ;;  %3699 = vmatmul.mubr.bf16.gmra.mrb[116].mxu0 %v760_v34  ;;  %v6026_v33 = vld [vmem:[%s7934_s1 + $0x4a8] sm:$0xff]   ;;  %v851_v57 = vpack.c.bf16 %v521_v32, %v491_v31 }
 0x111   : > { %3609 = vmatprep.mubr.bf16.mxu1 %v789_v35  ;;  %3706 = vmatprep.mubr.bf16.mxu0 %v791_v40  ;;  %v6028_v37 = vld [vmem:[%s7934_s1 + $0x528] sm:$0xff]   ;;  %v7086_v40 = vld [vmem:[%s7935_s2] ss:$0 sm:$0xff] }
 0x112   : > { %5520 = vmatpush3.bf16.msra.mxu1 %v6014_v44  ;;  %5584 = vmatpush3.bf16.msra.mxu0 %v6016_v46  ;;  %v818_v44 = vpack.c.bf16 %v458_v24, %v428_v23  ;;  %v820_v46 = vpack.c.bf16 %v460_v27, %v430_v25  ;;  %v2917_v50 = vadd.f32 %v6952_v45, %v7086_v40  ;;  %v6031_v45 = vld [vmem:[%s7934_s1 + $0x570] sm:$0xff]   ;;  %v6036_v25 = vld [vmem:[%s7934_s1 + $0x538] sm:$0xff]  }
 0x113   : > { %v4997_v63 = vpop.f32.mrb[12].mxu1  ;;  %v4973_v0 = vpop.f32.mrb[12].mxu0  ;;  %5521 = vmatprep.subr.bf16.mxu1 %v6017_v47  ;;  %5585 = vmatprep.subr.bf16.mxu0 %v6019_v56  ;;  %v849_v47 = vpack.c.bf16 %v519_v30, %v489_v28  ;;  %v2920_v58 = vadd.f32 %v6956_v52, %v7086_v40  ;;  %v520_v52 = vld [vmem:[%s6309_s18 + $0x8f0] sm:$0xff]  ;;  %v2925_v32 = vadd.f32 %v6968_v5, %v7086_v40 }
 0x114   : > { %v4998_v2 = vpop.f32.mrb[13].mxu1  ;;  %v4974_v4 = vpop.f32.mrb[13].mxu0 }
 0x115   : > { %v7043_v8 = vadd.f32 %v4998_v2, %v4997_v63  ;;  %v5000_v9 = vpop.f32.mrb[14].mxu1  ;;  %v7045_v10 = vadd.f32 %v4974_v4, %v4973_v0  ;;  %v4976_v11 = vpop.f32.mrb[14].mxu0  ;;  %v518_v2 = vld [vmem:[%s6309_s18 + $0x8e0] sm:$0xff] }
 0x116   : > { %v5001_v19 = vpop.f32.mrb[15].mxu1  ;;  %v4977_v20 = vpop.f32.mrb[15].mxu0  ;;  %5522 = vmatpush3.bf16.msra.mxu1 %v6018_v61  ;;  %5586 = vmatpush3.bf16.msra.mxu0 %v6020_v62  ;;  %v6030_v61 = vld [vmem:[%s7934_s1 + $0x4b0] sm:$0xff]   ;;  %v490_v4 = vld [vmem:[%s6309_s18 + $0x800] sm:$0xff] }
 0x117   : > { %v7056_v21 = vadd.f32 %v5001_v19, %v5000_v9  ;;  %v7058_v22 = vadd.f32 %v4977_v20, %v4976_v11  ;;  %5523 = vmatprep.subr.bf16.mxu1 %v6021_v1  ;;  %5587 = vmatprep.subr.bf16.mxu0 %v6023_v17  ;;  %v488_v1 = vld [vmem:[%s6309_s18 + $0x7f0] sm:$0xff]  ;;  %v6033_v9 = vld [vmem:[%s7934_s1 + $0x4f8] sm:$0xff]   ;;  %v579_v11 = vld [vmem:[%s6309_s18 + $0xac8] sm:$0xff]  ;;  %v850_v30 = vpack.c.bf16 %v520_v52, %v490_v4 }
 0x118   : > { %3610 = vmatmul.mubr.bf16.gmra.mrb[120].mxu1 %v788_v6  ;;  %3707 = vmatmul.mubr.bf16.gmra.mrb[120].mxu0 %v790_v7  ;;  %v549_v6 = vld [vmem:[%s6309_s18 + $0x9d8] sm:$0xff]  ;;  %v6032_v7 = vld [vmem:[%s7934_s1 + $0x530] sm:$0xff]   ;;  %v551_v17 = vld [vmem:[%s6309_s18 + $0x9e8] sm:$0xff] }
 0x119   : > { %3617 = vmatprep.mubr.bf16.mxu1 %v819_v12  ;;  %3714 = vmatprep.mubr.bf16.mxu0 %v821_v15  ;;  %v6035_v12 = vld [vmem:[%s7934_s1 + $0x578] sm:$0xff]   ;;  %v879_v31 = vpack.c.bf16 %v579_v11, %v549_v6  ;;  %v2933_v6 = vadd.f32 %v7008_v38, %v7086_v40  ;;  %v638_v38 = vld [vmem:[%s6309_s18 + $0xca0] sm:$0xff] }
 0x11a   : > { %5524 = vmatpush3.bf16.msra.mxu1 %v6022_v16  ;;  %5588 = vmatpush3.bf16.msra.mxu0 %v6024_v18  ;;  %v581_v18 = vld [vmem:[%s6309_s18 + $0xad8] sm:$0xff] }
 0x11b   : > { %v5019_v34 = vpop.f32.mrb[16].mxu1  ;;  %v5083_v35 = vpop.f32.mrb[16].mxu0  ;;  %5525 = vmatprep.subr.bf16.mxu1 %v6025_v26  ;;  %5589 = vmatprep.subr.bf16.mxu0 %v6027_v29  ;;  %v6034_v19 = vld [vmem:[%s7934_s1 + $0x4b8] sm:$0xff]   ;;  %v6037_v26 = vld [vmem:[%s7934_s1 + $0x5c0] sm:$0xff]   ;;  %v848_v29 = vpack.c.bf16 %v518_v2, %v488_v1 }
 0x11c   : > { %v5020_v41 = vpop.f32.mrb[17].mxu1  ;;  %v5084_v42 = vpop.f32.mrb[17].mxu0 }
 0x11d   : > { %v5021_v53 = vadd.f32 %v5020_v41, %v5019_v34  ;;  %v5022_v54 = vpop.f32.mrb[18].mxu1  ;;  %v5085_v55 = vadd.f32 %v5084_v42, %v5083_v35  ;;  %v5086_v56 = vpop.f32.mrb[18].mxu0  ;;  %v2928_v41 = vadd.f32 %v6981_v14, %v7086_v40  ;;  %v580_v14 = vld [vmem:[%s6309_s18 + $0xad0] sm:$0xff] }
 0x11e   : > { %v5023_v59 = vpop.f32.mrb[19].mxu1  ;;  %v5087_v60 = vpop.f32.mrb[19].mxu0  ;;  %5526 = vmatpush3.bf16.msra.mxu1 %v6026_v33  ;;  %5590 = vmatpush3.bf16.msra.mxu0 %v6028_v37 }
 0x11f   : > { %v3014_v62 = vadd.f32 %v5021_v53, %v2917_v50  ;;  %v5024_v63 = vadd.f32 %v5023_v59, %v5022_v54  ;;  %v5088_v0 = vadd.f32 %v5087_v60, %v5086_v56  ;;  %5527 = vmatprep.subr.bf16.mxu1 %v6029_v39  ;;  %5591 = vmatprep.subr.bf16.mxu0 %v6031_v45  ;;  %v548_v53 = vld [vmem:[%s6309_s18 + $0x9d0] sm:$0xff]  ;;  %v578_v54 = vld [vmem:[%s6309_s18 + $0xac0] sm:$0xff]  ;;  %v609_v56 = vld [vmem:[%s6309_s18 + $0xbb8] sm:$0xff] }
 0x120   : > { %3618 = vmatmul.mubr.bf16.gmra.mrb[124].mxu1 %v818_v44  ;;  %3715 = vmatmul.mubr.bf16.gmra.mrb[124].mxu0 %v820_v46  ;;  %v881_v39 = vpack.c.bf16 %v581_v18, %v551_v17  ;;  %v6039_v46 = vld [vmem:[%s7934_s1 + $0x640] sm:$0xff]   ;;  %v639_v59 = vld [vmem:[%s6309_s18 + $0xca8] sm:$0xff]  ;;  %v878_v2 = vpack.c.bf16 %v578_v54, %v548_v53 }
 0x121   : > { %v3017_v15 = vadd.f32 %v5024_v63, %v2920_v58  ;;  %v7113_v16 = vadd.f32 %v5085_v55, %v3014_v62  ;;  %3625 = vmatprep.mubr.bf16.mxu1 %v849_v47  ;;  %3722 = vmatprep.mubr.bf16.mxu0 %v851_v57  ;;  %v550_v55 = vld [vmem:[%s6309_s18 + $0x9e0] sm:$0xff]  ;;  %v611_v60 = vld [vmem:[%s6309_s18 + $0xbc8] sm:$0xff]  ;;  %v909_v52 = vpack.c.bf16 %v639_v59, %v609_v56 }
 0x122   : > { %5528 = vmatpush3.bf16.msra.mxu1 %v6030_v61  ;;  %5592 = vmatpush3.bf16.msra.mxu0 %v6032_v7  ;;  %v641_v61 = vld [vmem:[%s6309_s18 + $0xcb8] sm:$0xff]  ;;  %v880_v4 = vpack.c.bf16 %v580_v14, %v550_v55 }
 0x123   : > { %v7120_v20 = vadd.f32 %v5088_v0, %v3017_v15  ;;  %v5025_v23 = vpop.f32.mrb[20].mxu1  ;;  %v5089_v24 = vpop.f32.mrb[20].mxu0  ;;  %5529 = vmatprep.subr.bf16.mxu1 %v6033_v9  ;;  %5593 = vmatprep.subr.bf16.mxu0 %v6035_v12  ;;  %v911_v15 = vpack.c.bf16 %v641_v61, %v611_v60 }
 0x124   : > { %v5026_v27 = vpop.f32.mrb[21].mxu1  ;;  %v5090_v28 = vpop.f32.mrb[21].mxu0 }
 0x125   : > { %v5027_v33 = vadd.f32 %v5026_v27, %v5025_v23  ;;  %v5028_v34 = vpop.f32.mrb[22].mxu1  ;;  %v5091_v35 = vadd.f32 %v5090_v28, %v5089_v24  ;;  %v5092_v37 = vpop.f32.mrb[22].mxu0  ;;  %v610_v27 = vld [vmem:[%s6309_s18 + $0xbc0] sm:$0xff]  ;;  %v640_v28 = vld [vmem:[%s6309_s18 + $0xcb0] sm:$0xff] }
 0x126   : > { %v5029_v42 = vpop.f32.mrb[23].mxu1  ;;  %v5093_v44 = vpop.f32.mrb[23].mxu0  ;;  %5530 = vmatpush3.bf16.msra.mxu1 %v6034_v19  ;;  %5594 = vmatpush3.bf16.msra.mxu0 %v6036_v25  ;;  %v2936_v19 = vadd.f32 %v7021_v49, %v7086_v40  ;;  %v701_v49 = vld [vmem:[%s6309_s18 + $0xe98] sm:$0xff] }
 0x127   : > { %v3022_v47 = vadd.f32 %v5027_v33, %v2925_v32  ;;  %v5030_v5 = vadd.f32 %v5029_v42, %v5028_v34  ;;  %v5094_v50 = vadd.f32 %v5093_v44, %v5092_v37  ;;  %5643 = vmatprep.subr.bf16.mxu1 %v6037_v26  ;;  %5707 = vmatprep.subr.bf16.mxu0 %v6039_v46  ;;  %v608_v26 = vld [vmem:[%s6309_s18 + $0xbb0] sm:$0xff]  ;;  %v699_v32 = vld [vmem:[%s6309_s18 + $0xe88] sm:$0xff] }
 0x128   : > { %3626 = vmatmul.mubr.bf16.gmra.mrb[128].mxu1 %v848_v29  ;;  %3723 = vmatmul.mubr.bf16.gmra.mrb[128].mxu0 %v850_v30  ;;  %v671_v33 = vld [vmem:[%s6309_s18 + $0xda8] sm:$0xff]  ;;  %v908_v42 = vpack.c.bf16 %v638_v38, %v608_v26  ;;  %v910_v44 = vpack.c.bf16 %v640_v28, %v610_v27 }
 0x129   : > { %v3025_v57 = vadd.f32 %v5030_v5, %v2928_v41  ;;  %v7140_v58 = vadd.f32 %v5091_v35, %v3022_v47  ;;  %3633 = vmatprep.mubr.bf16.mxu1 %v879_v31  ;;  %3730 = vmatprep.mubr.bf16.mxu0 %v881_v39  ;;  %v669_v31 = vld [vmem:[%s6309_s18 + $0xd98] sm:$0xff]  ;;  %v2941_v47 = vadd.f32 %v7045_v10, %v7086_v40  ;;  %v698_v10 = vld [vmem:[%s6309_s18 + $0xe80] sm:$0xff] }
 0x12a   : > { %v939_v46 = vpack.c.bf16 %v699_v32, %v669_v31  ;;  %v941_v55 = vpack.c.bf16 %v701_v49, %v671_v33  ;;  %v2952_v31 = vadd.f32 %v6954_v51, %v7086_v40  ;;  %v252_v49 = vld [vmem:[%s6309_s18 + $0x90] sm:$0xff] }
 0x12b   : > { %v7145_v45 = vadd.f32 %v5094_v50, %v3025_v57  ;;  %v5031_v62 = vpop.f32.mrb[24].mxu1  ;;  %v5095_v63 = vpop.f32.mrb[24].mxu0  ;;  %v2944_v57 = vadd.f32 %v7058_v22, %v7086_v40  ;;  %v285_v22 = vld [vmem:[%s6309_s18 + $0x198] sm:$0xff] }
 0x12c   : > { %v5032_v0 = vpop.f32.mrb[25].mxu1  ;;  %v5096_v1 = vpop.f32.mrb[25].mxu0 }
 0x12d   : > { %v5033_v7 = vadd.f32 %v5032_v0, %v5031_v62  ;;  %v5034_v9 = vpop.f32.mrb[26].mxu1  ;;  %v5097_v11 = vadd.f32 %v5096_v1, %v5095_v63  ;;  %v5098_v12 = vpop.f32.mrb[26].mxu0  ;;  %v668_v62 = vld [vmem:[%s6309_s18 + $0xd90] sm:$0xff]  ;;  %v670_v63 = vld [vmem:[%s6309_s18 + $0xda0] sm:$0xff]  ;;  %v253_v1 = vld [vmem:[%s6309_s18 + $0x98] sm:$0xff] }
 0x12e   : > { %v5035_v17 = vpop.f32.mrb[27].mxu1  ;;  %v5099_v18 = vpop.f32.mrb[27].mxu0  ;;  %v700_v0 = vld [vmem:[%s6309_s18 + $0xe90] sm:$0xff] }
 0x12f   : > { %v3030_v23 = vadd.f32 %v5033_v7, %v2933_v6  ;;  %v5036_v24 = vadd.f32 %v5035_v17, %v5034_v9  ;;  %v5100_v25 = vadd.f32 %v5099_v18, %v5098_v12  ;;  %v255_v6 = vld [vmem:[%s6309_s18 + $0xa8] sm:$0xff]  ;;  %v2949_v12 = vadd.f32 %v6950_v43, %v7086_v40 }
 0x130   : > { %3634 = vmatmul.mubr.bf16.gmra.mrb[132].mxu1 %v878_v2  ;;  %3731 = vmatmul.mubr.bf16.gmra.mrb[132].mxu0 %v880_v4  ;;  %v283_v2 = vld [vmem:[%s6309_s18 + $0x188] sm:$0xff]  ;;  %v938_v18 = vpack.c.bf16 %v698_v10, %v668_v62  ;;  %v735_v27 = vpack.c.bf16 %v285_v22, %v255_v6 }
 0x131   : > { %v3033_v29 = vadd.f32 %v5036_v24, %v2936_v19  ;;  %v7155_v30 = vadd.f32 %v5097_v11, %v3030_v23  ;;  %3641 = vmatprep.mubr.bf16.mxu1 %v909_v52  ;;  %3738 = vmatprep.mubr.bf16.mxu0 %v911_v15  ;;  %v940_v19 = vpack.c.bf16 %v700_v0, %v670_v63  ;;  %v6041_v6 = vld [vmem:[%s7934_s1 + $0x5c8] sm:$0xff]  }
 0x132   : > { %v733_v38 = vpack.c.bf16 %v283_v2, %v253_v1  ;;  %v2960_v0 = vadd.f32 %v6979_v13, %v7086_v40 }
 0x133   : > { %v7161_v34 = vadd.f32 %v5100_v25, %v3033_v29  ;;  %v5037_v35 = vpop.f32.mrb[28].mxu1  ;;  %v5101_v37 = vpop.f32.mrb[28].mxu0 }
 0x134   : > { %v5038_v39 = vpop.f32.mrb[29].mxu1  ;;  %v5102_v41 = vpop.f32.mrb[29].mxu0 }
 0x135   : > { %v5039_v5 = vadd.f32 %v5038_v39, %v5037_v35  ;;  %v5040_v50 = vpop.f32.mrb[30].mxu1  ;;  %v5103_v53 = vadd.f32 %v5102_v41, %v5101_v37  ;;  %v5104_v54 = vpop.f32.mrb[30].mxu0  ;;  %v282_v35 = vld [vmem:[%s6309_s18 + $0x180] sm:$0xff] }
 0x136   : > { %v5041_v14 = vpop.f32.mrb[31].mxu1  ;;  %v5105_v56 = vpop.f32.mrb[31].mxu0  ;;  %v254_v37 = vld [vmem:[%s6309_s18 + $0xa0] sm:$0xff] }
 0x137   : > { %v3038_v59 = vadd.f32 %v5039_v5, %v2941_v47  ;;  %v5042_v60 = vadd.f32 %v5041_v14, %v5040_v50  ;;  %v5106_v61 = vadd.f32 %v5105_v56, %v5104_v54  ;;  %v6038_v47 = vld [vmem:[%s7934_s1 + $0x580] sm:$0xff]   ;;  %v313_v50 = vld [vmem:[%s6309_s18 + $0x278] sm:$0xff]  ;;  %v732_v14 = vpack.c.bf16 %v282_v35, %v252_v49 }
 0x138   : > { %3642 = vmatmul.mubr.bf16.gmra.mrb[136].mxu1 %v908_v42  ;;  %3739 = vmatmul.mubr.bf16.gmra.mrb[136].mxu0 %v910_v44  ;;  %v284_v42 = vld [vmem:[%s6309_s18 + $0x190] sm:$0xff]  ;;  %v6040_v5 = vld [vmem:[%s7934_s1 + $0x600] sm:$0xff]   ;;  %v2965_v49 = vadd.f32 %v7006_v36, %v7086_v40 }
 0x139   : > { %v3041_v4 = vadd.f32 %v5042_v60, %v2944_v57  ;;  %v7173_v52 = vadd.f32 %v5103_v53, %v3038_v59  ;;  %3649 = vmatprep.mubr.bf16.mxu1 %v939_v46  ;;  %3746 = vmatprep.mubr.bf16.mxu0 %v941_v55  ;;  %v343_v53 = vld [vmem:[%s6309_s18 + $0x368] sm:$0xff]  ;;  %v734_v56 = vpack.c.bf16 %v284_v42, %v254_v37  ;;  %v345_v59 = vld [vmem:[%s6309_s18 + $0x378] sm:$0xff]  ;;  %v6048_v36 = vld [vmem:[%s7934_s1 + $0x610] sm:$0xff]  }
 0x13a   : > { %v315_v57 = vld [vmem:[%s6309_s18 + $0x288] sm:$0xff]  ;;  %v2957_v60 = vadd.f32 %v6966_v3, %v7086_v40 }
 0x13b   : > { %v7177_v7 = vadd.f32 %v5106_v61, %v3041_v4  ;;  %v5043_v9 = vpop.f32.mrb[32].mxu1  ;;  %v5107_v11 = vpop.f32.mrb[32].mxu0  ;;  %v763_v4 = vpack.c.bf16 %v343_v53, %v313_v50  ;;  %v6043_v3 = vld [vmem:[%s7934_s1 + $0x648] sm:$0xff]   ;;  %v765_v13 = vpack.c.bf16 %v345_v59, %v315_v57  ;;  %v2968_v57 = vadd.f32 %v7019_v48, %v7086_v40 }
 0x13c   : > { %v5044_v15 = vpop.f32.mrb[33].mxu1  ;;  %v5108_v17 = vpop.f32.mrb[33].mxu0  ;;  %v435_v48 = vld [vmem:[%s6309_s18 + $0x648] sm:$0xff] }
 0x13d   : > { %v5045_v23 = vadd.f32 %v5044_v15, %v5043_v9  ;;  %v5046_v24 = vpop.f32.mrb[34].mxu1  ;;  %v5109_v25 = vadd.f32 %v5108_v17, %v5107_v11  ;;  %v5110_v26 = vpop.f32.mrb[34].mxu0  ;;  %v342_v15 = vld [vmem:[%s6309_s18 + $0x360] sm:$0xff]  ;;  %v6042_v17 = vld [vmem:[%s7934_s1 + $0x588] sm:$0xff]  }
 0x13e   : > { %v5047_v28 = vpop.f32.mrb[35].mxu1  ;;  %v5111_v29 = vpop.f32.mrb[35].mxu0 }
 0x13f   : > { %v3046_v43 = vadd.f32 %v5045_v23, %v2949_v12  ;;  %v5048_v32 = vadd.f32 %v5047_v28, %v5046_v24  ;;  %v5112_v33 = vadd.f32 %v5111_v29, %v5110_v26  ;;  %v312_v12 = vld [vmem:[%s6309_s18 + $0x270] sm:$0xff]  ;;  %v6044_v23 = vld [vmem:[%s7934_s1 + $0x608] sm:$0xff]   ;;  %v373_v24 = vld [vmem:[%s6309_s18 + $0x458] sm:$0xff] }
 0x140   : > { %3650 = vmatmul.mubr.bf16.gmra.mrb[140].mxu1 %v938_v18  ;;  %3747 = vmatmul.mubr.bf16.gmra.mrb[140].mxu0 %v940_v19  ;;  %v314_v18 = vld [vmem:[%s6309_s18 + $0x280] sm:$0xff]  ;;  %v344_v19 = vld [vmem:[%s6309_s18 + $0x370] sm:$0xff]  ;;  %v375_v28 = vld [vmem:[%s6309_s18 + $0x468] sm:$0xff] }
 0x141   : > { %v3049_v39 = vadd.f32 %v5048_v32, %v2952_v31  ;;  %v7186_v41 = vadd.f32 %v5109_v25, %v3046_v43  ;;  %3787 = vmatprep.mubr.bf16.mxu1 %v733_v38  ;;  %3884 = vmatprep.mubr.bf16.mxu0 %v735_v27  ;;  %v403_v25 = vld [vmem:[%s6309_s18 + $0x548] sm:$0xff]  ;;  %v6045_v27 = vld [vmem:[%s7934_s1 + $0x5d0] sm:$0xff]   ;;  %v405_v29 = vld [vmem:[%s6309_s18 + $0x558] sm:$0xff]  ;;  %v764_v42 = vpack.c.bf16 %v344_v19, %v314_v18 }
 0x142   : > { %v6047_v31 = vld [vmem:[%s7934_s1 + $0x650] sm:$0xff]   ;;  %v795_v53 = vpack.c.bf16 %v405_v29, %v375_v28  ;;  %v6055_v18 = vld [vmem:[%s7934_s1 + $0x660] sm:$0xff]   ;;  %v2973_v19 = vadd.f32 %v7043_v8, %v7086_v40 }
 0x143   : > { %v7189_v44 = vadd.f32 %v5112_v33, %v3049_v39  ;;  %v5049_v51 = vpop.f32.mrb[36].mxu1  ;;  %v5113_v46 = vpop.f32.mrb[36].mxu0  ;;  %v762_v39 = vpack.c.bf16 %v342_v15, %v312_v12  ;;  %v6054_v8 = vld [vmem:[%s7934_s1 + $0x5a0] sm:$0xff]  }
 0x144   : > { %v5050_v54 = vpop.f32.mrb[37].mxu1  ;;  %v5114_v55 = vpop.f32.mrb[37].mxu0 }
 0x145   : > { %v5051_v61 = vadd.f32 %v5050_v54, %v5049_v51  ;;  %v5052_v62 = vpop.f32.mrb[38].mxu1  ;;  %v5115_v10 = vadd.f32 %v5114_v55, %v5113_v46  ;;  %v5116_v63 = vpop.f32.mrb[38].mxu0  ;;  %v793_v51 = vpack.c.bf16 %v403_v25, %v373_v24  ;;  %v6046_v54 = vld [vmem:[%s7934_s1 + $0x590] sm:$0xff]   ;;  %v6049_v55 = vld [vmem:[%s7934_s1 + $0x5d8] sm:$0xff]  }
 0x146   : > { %v5053_v1 = vpop.f32.mrb[39].mxu1  ;;  %v5117_v2 = vpop.f32.mrb[39].mxu0 }
 0x147   : > { %v3054_v22 = vadd.f32 %v5051_v61, %v2957_v60  ;;  %v5054_v9 = vadd.f32 %v5053_v1, %v5052_v62  ;;  %v5118_v11 = vadd.f32 %v5117_v2, %v5116_v63  ;;  %v372_v62 = vld [vmem:[%s6309_s18 + $0x450] sm:$0xff]  ;;  %v374_v63 = vld [vmem:[%s6309_s18 + $0x460] sm:$0xff]  ;;  %v433_v2 = vld [vmem:[%s6309_s18 + $0x638] sm:$0xff] }
 0x148   : > { %3788 = vmatmul.mubr.bf16.vlgmr.msra.gmra.mrb[144].mxu1 %v732_v14  ;;  %3885 = vmatmul.mubr.bf16.vlgmr.msra.gmra.mrb[144].mxu0 %v734_v56  ;;  %v404_v1 = vld [vmem:[%s6309_s18 + $0x550] sm:$0xff] }
 0x149   : > { %v3057_v26 = vadd.f32 %v5054_v9, %v2960_v0  ;;  %v7223_v38 = vadd.f32 %v5115_v10, %v3054_v22  ;;  %5644 = vmatpush3.bf16.msra.mxu1 %v6038_v47  ;;  %5708 = vmatpush3.bf16.msra.mxu0 %v6040_v5  ;;  %v402_v10 = vld [vmem:[%s6309_s18 + $0x540] sm:$0xff]  ;;  %v6051_v0 = vld [vmem:[%s7934_s1 + $0x658] sm:$0xff]  }
 0x14a   : > { %3795 = vmatprep.mubr.bf16.mxu1 %v763_v4  ;;  %5645 = vmatprep.subr.bf16.mxu1 %v6041_v6  ;;  %v463_v4 = vld [vmem:[%s6309_s18 + $0x728] sm:$0xff]  ;;  %v465_v22 = vld [vmem:[%s6309_s18 + $0x738] sm:$0xff]  ;;  %v792_v25 = vpack.c.bf16 %v402_v10, %v372_v62  ;;  %v6063_v62 = vld [vmem:[%s7934_s1 + $0x670] sm:$0xff]  }
 0x14b   : > { %v7233_v43 = vadd.f32 %v5118_v11, %v3057_v26  ;;  %v5055_v32 = vpop.f32.mrb[40].mxu1  ;;  %v5119_v33 = vpop.f32.mrb[40].mxu0  ;;  %3892 = vmatprep.mubr.bf16.mxu0 %v765_v13  ;;  %5709 = vmatprep.subr.bf16.mxu0 %v6043_v3  ;;  %v6050_v9 = vld [vmem:[%s7934_s1 + $0x598] sm:$0xff]   ;;  %v794_v26 = vpack.c.bf16 %v404_v1, %v374_v63 }
 0x14c   : > { %v5056_v35 = vpop.f32.mrb[41].mxu1  ;;  %v5120_v37 = vpop.f32.mrb[41].mxu0  ;;  %v6052_v11 = vld [vmem:[%s7934_s1 + $0x618] sm:$0xff]  }
 0x14d   : > { %v5057_v46 = vadd.f32 %v5056_v35, %v5055_v32  ;;  %v5058_v47 = vpop.f32.mrb[42].mxu1  ;;  %v5121_v5 = vadd.f32 %v5120_v37, %v5119_v33  ;;  %v5122_v50 = vpop.f32.mrb[42].mxu0  ;;  %5646 = vmatpush3.bf16.msra.mxu1 %v6042_v17  ;;  %5710 = vmatpush3.bf16.msra.mxu0 %v6044_v23  ;;  %v6053_v17 = vld [vmem:[%s7934_s1 + $0x5e0] sm:$0xff]   ;;  %v823_v32 = vpack.c.bf16 %v463_v4, %v433_v2 }
 0x14e   : > { %v5059_v14 = vpop.f32.mrb[43].mxu1  ;;  %v5123_v56 = vpop.f32.mrb[43].mxu0  ;;  %5647 = vmatprep.subr.bf16.mxu1 %v6045_v27  ;;  %5711 = vmatprep.subr.bf16.mxu0 %v6047_v31  ;;  %v825_v33 = vpack.c.bf16 %v465_v22, %v435_v48 }
 0x14f   : > { %v3062_v59 = vadd.f32 %v5057_v46, %v2965_v49  ;;  %v5060_v60 = vadd.f32 %v5059_v14, %v5058_v47  ;;  %v5124_v61 = vadd.f32 %v5123_v56, %v5122_v50  ;;  %v2976_v49 = vadd.f32 %v7056_v21, %v7086_v40  ;;  %v432_v21 = vld [vmem:[%s6309_s18 + $0x630] sm:$0xff]  ;;  %v462_v40 = vld [vmem:[%s6309_s18 + $0x720] sm:$0xff]  ;;  %v6057_v50 = vld [vmem:[%s7934_s1 + $0x5e8] sm:$0xff]  }
 0x150   : > { %3796 = vmatmul.mubr.bf16.gmra.mrb[148].mxu1 %v762_v39  ;;  %3893 = vmatmul.mubr.bf16.gmra.mrb[148].mxu0 %v764_v42  ;;  %v6056_v39 = vld [vmem:[%s7934_s1 + $0x620] sm:$0xff]   ;;  %v525_v14 = vld [vmem:[%s6309_s18 + $0x918] sm:$0xff]  ;;  %v822_v4 = vpack.c.bf16 %v462_v40, %v432_v21 }
 0x151   : > { %v3065_v6 = vadd.f32 %v5060_v60, %v2968_v57  ;;  %v7257_v3 = vadd.f32 %v5121_v5, %v3062_v59  ;;  %3803 = vmatprep.mubr.bf16.mxu1 %v793_v51  ;;  %3900 = vmatprep.mubr.bf16.mxu0 %v795_v53  ;;  %v434_v47 = vld [vmem:[%s6309_s18 + $0x640] sm:$0xff]  ;;  %v464_v5 = vld [vmem:[%s6309_s18 + $0x730] sm:$0xff]  ;;  %v6059_v53 = vld [vmem:[%s7934_s1 + $0x668] sm:$0xff]  }
 0x152   : > { %5648 = vmatpush3.bf16.msra.mxu1 %v6046_v54  ;;  %5712 = vmatpush3.bf16.msra.mxu0 %v6048_v36  ;;  %v493_v54 = vld [vmem:[%s6309_s18 + $0x818] sm:$0xff]  ;;  %v523_v36 = vld [vmem:[%s6309_s18 + $0x908] sm:$0xff]  ;;  %v6069_v40 = vld [vmem:[%s7934_s1 + $0x6c0] sm:$0xff]  }
 0x153   : > { %v7267_v12 = vadd.f32 %v5124_v61, %v3065_v6  ;;  %v5061_v15 = vpop.f32.mrb[44].mxu1  ;;  %v5125_v13 = vpop.f32.mrb[44].mxu0  ;;  %5649 = vmatprep.subr.bf16.mxu1 %v6049_v55  ;;  %5713 = vmatprep.subr.bf16.mxu0 %v6051_v0  ;;  %v495_v55 = vld [vmem:[%s6309_s18 + $0x828] sm:$0xff]  ;;  %v6061_v61 = vld [vmem:[%s7934_s1 + $0x5f0] sm:$0xff]   ;;  %v824_v6 = vpack.c.bf16 %v464_v5, %v434_v47 }
 0x154   : > { %v5062_v23 = vpop.f32.mrb[45].mxu1  ;;  %v5126_v24 = vpop.f32.mrb[45].mxu0  ;;  %v6058_v59 = vld [vmem:[%s7934_s1 + $0x5a8] sm:$0xff]  }
 0x155   : > { %v5063_v27 = vadd.f32 %v5062_v23, %v5061_v15  ;;  %v5064_v28 = vpop.f32.mrb[46].mxu1  ;;  %v5127_v29 = vadd.f32 %v5126_v24, %v5125_v13  ;;  %v5128_v31 = vpop.f32.mrb[46].mxu0  ;;  %v6060_v60 = vld [vmem:[%s7934_s1 + $0x628] sm:$0xff]   ;;  %v853_v15 = vpack.c.bf16 %v523_v36, %v493_v54  ;;  %v855_v13 = vpack.c.bf16 %v525_v14, %v495_v55  ;;  %v6064_v23 = vld [vmem:[%s7934_s1 + $0x630] sm:$0xff]   ;;  %v6065_v24 = vld [vmem:[%s7934_s1 + $0x5f8] sm:$0xff]  }
 0x156   : > { %v5065_v35 = vpop.f32.mrb[47].mxu1  ;;  %v5129_v37 = vpop.f32.mrb[47].mxu0  ;;  %5650 = vmatpush3.bf16.msra.mxu1 %v6050_v9  ;;  %5714 = vmatpush3.bf16.msra.mxu0 %v6052_v11 }
 0x157   : > { %v3070_v42 = vadd.f32 %v5063_v27, %v2973_v19  ;;  %v5066_v51 = vadd.f32 %v5065_v35, %v5064_v28  ;;  %v5130_v46 = vadd.f32 %v5129_v37, %v5128_v31  ;;  %5651 = vmatprep.subr.bf16.mxu1 %v6053_v17  ;;  %5715 = vmatprep.subr.bf16.mxu0 %v6055_v18  ;;  %v6062_v17 = vld [vmem:[%s7934_s1 + $0x5b0] sm:$0xff]   ;;  %v494_v31 = vld [vmem:[%s6309_s18 + $0x820] sm:$0xff]  ;;  %v583_v35 = vld [vmem:[%s6309_s18 + $0xae8] sm:$0xff] }
 0x158   : > { %3804 = vmatmul.mubr.bf16.gmra.mrb[152].mxu1 %v792_v25  ;;  %3901 = vmatmul.mubr.bf16.gmra.mrb[152].mxu0 %v794_v26  ;;  %v492_v28 = vld [vmem:[%s6309_s18 + $0x810] sm:$0xff] }
 0x159   : > { %v3073_v56 = vadd.f32 %v5066_v51, %v2976_v49  ;;  %v7299_v57 = vadd.f32 %v5127_v29, %v3070_v42  ;;  %3811 = vmatprep.mubr.bf16.mxu1 %v823_v32  ;;  %3908 = vmatprep.mubr.bf16.mxu0 %v825_v33  ;;  %v522_v29 = vld [vmem:[%s6309_s18 + $0x900] sm:$0xff]  ;;  %v524_v32 = vld [vmem:[%s6309_s18 + $0x910] sm:$0xff]  ;;  %v6067_v33 = vld [vmem:[%s7934_s1 + $0x678] sm:$0xff]  }
 0x15a   : > { %5652 = vmatpush3.bf16.msra.mxu1 %v6054_v8  ;;  %5716 = vmatpush3.bf16.msra.mxu0 %v6056_v39  ;;  %v553_v49 = vld [vmem:[%s6309_s18 + $0x9f8] sm:$0xff]  ;;  %v555_v8 = vld [vmem:[%s6309_s18 + $0xa08] sm:$0xff] }
 0x15b   : > { %v7313_v10 = vadd.f32 %v5130_v46, %v3073_v56  ;;  %v5147_v63 = vpop.f32.mrb[48].mxu1  ;;  %v5211_v0 = vpop.f32.mrb[48].mxu0  ;;  %5653 = vmatprep.subr.bf16.mxu1 %v6057_v50  ;;  %5717 = vmatprep.subr.bf16.mxu0 %v6059_v53  ;;  %v585_v39 = vld [vmem:[%s6309_s18 + $0xaf8] sm:$0xff]  ;;  %v852_v50 = vpack.c.bf16 %v522_v29, %v492_v28  ;;  %v854_v53 = vpack.c.bf16 %v524_v32, %v494_v31 }
 0x15c   : > { %v5148_v1 = vpop.f32.mrb[49].mxu1  ;;  %v5212_v2 = vpop.f32.mrb[49].mxu0  ;;  %v6066_v42 = vld [vmem:[%s7934_s1 + $0x5b8] sm:$0xff]   ;;  %v883_v56 = vpack.c.bf16 %v583_v35, %v553_v49 }
 0x15d   : > { %v5149_v48 = vadd.f32 %v5148_v1, %v5147_v63  ;;  %v5150_v22 = vpop.f32.mrb[50].mxu1  ;;  %v5213_v9 = vadd.f32 %v5212_v2, %v5211_v0  ;;  %v5214_v11 = vpop.f32.mrb[50].mxu0  ;;  %v6068_v51 = vld [vmem:[%s7934_s1 + $0x638] sm:$0xff]   ;;  %v552_v1 = vld [vmem:[%s6309_s18 + $0x9f0] sm:$0xff]  ;;  %v582_v2 = vld [vmem:[%s6309_s18 + $0xae0] sm:$0xff] }
 0x15e   : > { %v5151_v18 = vpop.f32.mrb[51].mxu1  ;;  %v5215_v19 = vpop.f32.mrb[51].mxu0  ;;  %5654 = vmatpush3.bf16.msra.mxu1 %v6058_v59  ;;  %5718 = vmatpush3.bf16.msra.mxu0 %v6060_v60  ;;  %v885_v59 = vpack.c.bf16 %v585_v39, %v555_v8  ;;  %v612_v39 = vld [vmem:[%s6309_s18 + $0xbd0] sm:$0xff] }
 0x15f   : > { %v3208_v25 = vadd.f32 %v5149_v48, %v7113_v16  ;;  %v5152_v26 = vadd.f32 %v5151_v18, %v5150_v22  ;;  %v5216_v27 = vadd.f32 %v5215_v19, %v5214_v11  ;;  %5655 = vmatprep.subr.bf16.mxu1 %v6061_v61  ;;  %5719 = vmatprep.subr.bf16.mxu0 %v6063_v62  ;;  %v584_v48 = vld [vmem:[%s6309_s18 + $0xaf0] sm:$0xff]  ;;  %v643_v11 = vld [vmem:[%s6309_s18 + $0xcc8] sm:$0xff] }
 0x160   : > { %3812 = vmatmul.mubr.bf16.gmra.mrb[156].mxu1 %v822_v4  ;;  %3909 = vmatmul.mubr.bf16.gmra.mrb[156].mxu0 %v824_v6  ;;  %v554_v4 = vld [vmem:[%s6309_s18 + $0xa00] sm:$0xff]  ;;  %v6234_v6 = vmov 0  }
 0x161   : > { %v3211_v16 = vadd.f32 %v5152_v26, %v7120_v20  ;;  %v7335_v37 = vadd.f32 %v5213_v9, %v3208_v25  ;;  %3819 = vmatprep.mubr.bf16.mxu1 %v853_v15  ;;  %3916 = vmatprep.mubr.bf16.mxu0 %v855_v13  ;;  %v615_v15 = vld [vmem:[%s6309_s18 + $0xbe8] sm:$0xff]  ;;  %v645_v13 = vld [vmem:[%s6309_s18 + $0xcd8] sm:$0xff]  ;;  %v882_v25 = vpack.c.bf16 %v582_v2, %v552_v1 }
 0x162   : > { %5656 = vmatpush3.bf16.msra.mxu1 %v6062_v17  ;;  %5720 = vmatpush3.bf16.msra.mxu0 %v6064_v23  ;;  %v884_v26 = vpack.c.bf16 %v584_v48, %v554_v4  ;;  %v915_v32 = vpack.c.bf16 %v645_v13, %v615_v15  ;;  %v674_v15 = vld [vmem:[%s6309_s18 + $0xdc0] sm:$0xff]  ;;  %v704_v13 = vld [vmem:[%s6309_s18 + $0xeb0] sm:$0xff] }
 0x163   : > { %v7345_v46 = vadd.f32 %v5216_v27, %v3211_v16  ;;  %v5153_v21 = vpop.f32.mrb[52].mxu1  ;;  %v5217_v20 = vpop.f32.mrb[52].mxu0  ;;  %5657 = vmatprep.subr.bf16.mxu1 %v6065_v24  ;;  %5721 = vmatprep.subr.bf16.mxu0 %v6067_v33 }
 0x164   : > { %v5154_v47 = vpop.f32.mrb[53].mxu1  ;;  %v5218_v5 = vpop.f32.mrb[53].mxu0 }
 0x165   : > { %v5155_v54 = vadd.f32 %v5154_v47, %v5153_v21  ;;  %v5156_v36 = vpop.f32.mrb[54].mxu1  ;;  %v5219_v55 = vadd.f32 %v5218_v5, %v5217_v20  ;;  %v5220_v14 = vpop.f32.mrb[54].mxu0  ;;  %v644_v21 = vld [vmem:[%s6309_s18 + $0xcd0] sm:$0xff]  ;;  %v673_v47 = vld [vmem:[%s6309_s18 + $0xdb8] sm:$0xff]  ;;  %v703_v5 = vld [vmem:[%s6309_s18 + $0xea8] sm:$0xff] }
 0x166   : > { %v5157_v60 = vpop.f32.mrb[55].mxu1  ;;  %v5221_v61 = vpop.f32.mrb[55].mxu0  ;;  %5658 = vmatpush3.bf16.msra.mxu1 %v6066_v42  ;;  %5722 = vmatpush3.bf16.msra.mxu0 %v6068_v51  ;;  %v642_v42 = vld [vmem:[%s6309_s18 + $0xcc0] sm:$0xff] }
 0x167   : > { %v3216_v62 = vadd.f32 %v5155_v54, %v7140_v58  ;;  %v5158_v63 = vadd.f32 %v5157_v60, %v5156_v36  ;;  %v5222_v0 = vadd.f32 %v5221_v61, %v5220_v14  ;;  %5771 = vmatprep.subr.bf16.mxu1 %v6069_v40  ;;  %4240 = vmatprep.subr.bf16.mxu0 %v6234_v6  ;;  %v613_v58 = vld [vmem:[%s6309_s18 + $0xbd8] sm:$0xff]  ;;  %v614_v51 = vld [vmem:[%s6309_s18 + $0xbe0] sm:$0xff] }
 0x168   : > { %3820 = vmatmul.mubr.bf16.gmra.mrb[160].mxu1 %v852_v50  ;;  %3917 = vmatmul.mubr.bf16.gmra.mrb[160].mxu0 %v854_v53  ;;  %v913_v31 = vpack.c.bf16 %v643_v11, %v613_v58  ;;  %v675_v50 = vld [vmem:[%s6309_s18 + $0xdc8] sm:$0xff]  ;;  %v705_v53 = vld [vmem:[%s6309_s18 + $0xeb8] sm:$0xff]  ;;  %v672_v58 = vld [vmem:[%s6309_s18 + $0xdb0] sm:$0xff] }
 0x169   : > { %v3219_v22 = vadd.f32 %v5158_v63, %v7145_v45  ;;  %v7357_v9 = vadd.f32 %v5219_v55, %v3216_v62  ;;  %3827 = vmatprep.mubr.bf16.mxu1 %v883_v56  ;;  %3924 = vmatprep.mubr.bf16.mxu0 %v885_v59  ;;  %v912_v56 = vpack.c.bf16 %v642_v42, %v612_v39  ;;  %v702_v11 = vld [vmem:[%s6309_s18 + $0xea0] sm:$0xff] }
 0x16a   : > { %v914_v59 = vpack.c.bf16 %v644_v21, %v614_v51  ;;  %v943_v63 = vpack.c.bf16 %v703_v5, %v673_v47  ;;  %v256_v47 = vld [vmem:[%s6309_s18 + $0xb0] sm:$0xff]  ;;  %v286_v5 = vld [vmem:[%s6309_s18 + $0x1a0] sm:$0xff] }
 0x16b   : > { %v7363_v17 = vadd.f32 %v5222_v0, %v3219_v22  ;;  %v5159_v18 = vpop.f32.mrb[56].mxu1  ;;  %v5223_v19 = vpop.f32.mrb[56].mxu0  ;;  %v945_v0 = vpack.c.bf16 %v705_v53, %v675_v50  ;;  %v258_v50 = vld [vmem:[%s6309_s18 + $0xc0] sm:$0xff] }
 0x16c   : > { %v5160_v23 = vpop.f32.mrb[57].mxu1  ;;  %v5224_v24 = vpop.f32.mrb[57].mxu0 }
 0x16d   : > { %v5161_v45 = vadd.f32 %v5160_v23, %v5159_v18  ;;  %v5162_v27 = vpop.f32.mrb[58].mxu1  ;;  %v5225_v28 = vadd.f32 %v5224_v24, %v5223_v19  ;;  %v5226_v29 = vpop.f32.mrb[58].mxu0  ;;  %v257_v18 = vld [vmem:[%s6309_s18 + $0xb8] sm:$0xff]  ;;  %v287_v24 = vld [vmem:[%s6309_s18 + $0x1a8] sm:$0xff] }
 0x16e   : > { %v5163_v33 = vpop.f32.mrb[59].mxu1  ;;  %v5227_v49 = vpop.f32.mrb[59].mxu0 }
 0x16f   : > { %v3224_v35 = vadd.f32 %v5161_v45, %v7155_v30  ;;  %v5164_v16 = vadd.f32 %v5163_v33, %v5162_v27  ;;  %v5228_v8 = vadd.f32 %v5227_v49, %v5226_v29 }
 0x170   : > { %3828 = vmatmul.mubr.bf16.gmra.mrb[164].mxu1 %v882_v25  ;;  %3925 = vmatmul.mubr.bf16.gmra.mrb[164].mxu0 %v884_v26  ;;  %v259_v25 = vld [vmem:[%s6309_s18 + $0xc8] sm:$0xff]  ;;  %v289_v26 = vld [vmem:[%s6309_s18 + $0x1b8] sm:$0xff] }
 0x171   : > { %v3227_v20 = vadd.f32 %v5164_v16, %v7161_v34  ;;  %v7371_v40 = vadd.f32 %v5225_v28, %v3224_v35  ;;  %3835 = vmatprep.mubr.bf16.mxu1 %v913_v31  ;;  %3932 = vmatprep.mubr.bf16.mxu0 %v915_v32  ;;  %v942_v31 = vpack.c.bf16 %v702_v11, %v672_v58 }
 0x172   : > { %v944_v32 = vpack.c.bf16 %v704_v13, %v674_v15  ;;  %v737_v16 = vpack.c.bf16 %v287_v24, %v257_v18  ;;  %v6072_v13 = vld [vmem:[%s7934_s1 + $0x6c8] sm:$0xff]  }
 0x173   : > { %v7377_v30 = vadd.f32 %v5228_v8, %v3227_v20  ;;  %v5165_v54 = vpop.f32.mrb[60].mxu1  ;;  %v5229_v36 = vpop.f32.mrb[60].mxu0  ;;  %v739_v8 = vpack.c.bf16 %v289_v26, %v259_v25  ;;  %v316_v26 = vld [vmem:[%s6309_s18 + $0x290] sm:$0xff] }
 0x174   : > { %v5166_v55 = vpop.f32.mrb[61].mxu1  ;;  %v5230_v14 = vpop.f32.mrb[61].mxu0 }
 0x175   : > { %v5167_v34 = vadd.f32 %v5166_v55, %v5165_v54  ;;  %v5168_v60 = vpop.f32.mrb[62].mxu1  ;;  %v5231_v61 = vadd.f32 %v5230_v14, %v5229_v36  ;;  %v5232_v62 = vpop.f32.mrb[62].mxu0  ;;  %v288_v36 = vld [vmem:[%s6309_s18 + $0x1b0] sm:$0xff]  ;;  %v317_v55 = vld [vmem:[%s6309_s18 + $0x298] sm:$0xff]  ;;  %v347_v14 = vld [vmem:[%s6309_s18 + $0x388] sm:$0xff] }
 0x176   : > { %v5169_v1 = vpop.f32.mrb[63].mxu1  ;;  %v5233_v2 = vpop.f32.mrb[63].mxu0  ;;  %v767_v15 = vpack.c.bf16 %v347_v14, %v317_v55  ;;  %v6076_v55 = vld [vmem:[%s7934_s1 + $0x710] sm:$0xff]  }
 0x177   : > { %v3232_v4 = vadd.f32 %v5167_v34, %v7173_v52  ;;  %v5170_v48 = vadd.f32 %v5169_v1, %v5168_v60  ;;  %v5234_v22 = vadd.f32 %v5233_v2, %v5232_v62  ;;  %v738_v62 = vpack.c.bf16 %v288_v36, %v258_v50 }
 0x178   : > { %3836 = vmatmul.mubr.bf16.gmra.mrb[168].mxu1 %v912_v56  ;;  %3933 = vmatmul.mubr.bf16.gmra.mrb[168].mxu0 %v914_v59 }
 0x179   : > { %v3235_v19 = vadd.f32 %v5170_v48, %v7177_v7  ;;  %v7386_v23 = vadd.f32 %v5231_v61, %v3232_v4  ;;  %3843 = vmatprep.mubr.bf16.mxu1 %v943_v63  ;;  %3940 = vmatprep.mubr.bf16.mxu0 %v945_v0  ;;  %v736_v61 = vpack.c.bf16 %v286_v5, %v256_v47  ;;  %v319_v63 = vld [vmem:[%s6309_s18 + $0x2a8] sm:$0xff]  ;;  %v349_v0 = vld [vmem:[%s6309_s18 + $0x398] sm:$0xff]  ;;  %v6070_v48 = vld [vmem:[%s7934_s1 + $0x680] sm:$0xff]  }
 0x17a   : > { %v769_v25 = vpack.c.bf16 %v349_v0, %v319_v63  ;;  %v376_v63 = vld [vmem:[%s6309_s18 + $0x470] sm:$0xff]  ;;  %v6079_v0 = vld [vmem:[%s7934_s1 + $0x6d8] sm:$0xff]  }
 0x17b   : > { %v7391_v52 = vadd.f32 %v5234_v22, %v3235_v19  ;;  %v5171_v45 = vpop.f32.mrb[64].mxu1  ;;  %v5235_v27 = vpop.f32.mrb[64].mxu0  ;;  %v6071_v22 = vld [vmem:[%s7934_s1 + $0x700] sm:$0xff]  }
 0x17c   : > { %v5172_v28 = vpop.f32.mrb[65].mxu1  ;;  %v5236_v29 = vpop.f32.mrb[65].mxu0 }
 0x17d   : > { %v5173_v33 = vadd.f32 %v5172_v28, %v5171_v45  ;;  %v5174_v7 = vpop.f32.mrb[66].mxu1  ;;  %v5237_v49 = vadd.f32 %v5236_v29, %v5235_v27  ;;  %v5238_v35 = vpop.f32.mrb[66].mxu0  ;;  %v346_v45 = vld [vmem:[%s6309_s18 + $0x380] sm:$0xff]  ;;  %v6073_v27 = vld [vmem:[%s7934_s1 + $0x688] sm:$0xff]  }
 0x17e   : > { %v5175_v39 = vpop.f32.mrb[67].mxu1  ;;  %v5239_v42 = vpop.f32.mrb[67].mxu0 }
 0x17f   : > { %v3240_v51 = vadd.f32 %v5173_v33, %v7186_v41  ;;  %v5176_v21 = vadd.f32 %v5175_v39, %v5174_v7  ;;  %v5240_v20 = vadd.f32 %v5239_v42, %v5238_v35  ;;  %v377_v33 = vld [vmem:[%s6309_s18 + $0x478] sm:$0xff]  ;;  %v407_v7 = vld [vmem:[%s6309_s18 + $0x568] sm:$0xff] }
 0x180   : > { %3844 = vmatmul.mubr.bf16.gmra.mrb[172].mxu1 %v942_v31  ;;  %3941 = vmatmul.mubr.bf16.gmra.mrb[172].mxu0 %v944_v32  ;;  %v348_v31 = vld [vmem:[%s6309_s18 + $0x390] sm:$0xff]  ;;  %v6074_v32 = vld [vmem:[%s7934_s1 + $0x708] sm:$0xff]   ;;  %v409_v39 = vld [vmem:[%s6309_s18 + $0x578] sm:$0xff]  ;;  %v797_v36 = vpack.c.bf16 %v407_v7, %v377_v33 }
 0x181   : > { %v3243_v53 = vadd.f32 %v5176_v21, %v7189_v44  ;;  %v7398_v54 = vadd.f32 %v5237_v49, %v3240_v51  ;;  %3981 = vmatprep.mubr.bf16.mxu1 %v737_v16  ;;  %4078 = vmatprep.mubr.bf16.mxu0 %v739_v8  ;;  %v379_v8 = vld [vmem:[%s6309_s18 + $0x488] sm:$0xff]  ;;  %v766_v21 = vpack.c.bf16 %v346_v45, %v316_v26 }
 0x183   : > { %v7403_v56 = vadd.f32 %v5240_v20, %v3243_v53  ;;  %v5177_v41 = vpop.f32.mrb[68].mxu1  ;;  %v5241_v59 = vpop.f32.mrb[68].mxu0 }
 0x184   : > { %v5178_v34 = vpop.f32.mrb[69].mxu1  ;;  %v5242_v60 = vpop.f32.mrb[69].mxu0 }
 0x185   : > { %v5179_v1 = vadd.f32 %v5178_v34, %v5177_v41  ;;  %v5180_v44 = vpop.f32.mrb[70].mxu1  ;;  %v5243_v2 = vadd.f32 %v5242_v60, %v5241_v59  ;;  %v5244_v4 = vpop.f32.mrb[70].mxu0  ;;  %v799_v59 = vpack.c.bf16 %v409_v39, %v379_v8  ;;  %v6077_v34 = vld [vmem:[%s7934_s1 + $0x690] sm:$0xff]   ;;  %v6084_v8 = vld [vmem:[%s7934_s1 + $0x6a0] sm:$0xff]  }
 0x186   : > { %v5181_v58 = vpop.f32.mrb[71].mxu1  ;;  %v5245_v11 = vpop.f32.mrb[71].mxu0 }
 0x187   : > { %v3248_v18 = vadd.f32 %v5179_v1, %v7223_v38  ;;  %v5182_v19 = vadd.f32 %v5181_v58, %v5180_v44  ;;  %v5246_v24 = vadd.f32 %v5245_v11, %v5244_v4  ;;  %v318_v38 = vld [vmem:[%s6309_s18 + $0x2a0] sm:$0xff]  ;;  %v467_v58 = vld [vmem:[%s6309_s18 + $0x748] sm:$0xff] }
 0x188   : > { %3982 = vmatmul.mubr.bf16.vlgmr.msra.gmra.mrb[176].mxu1 %v736_v61  ;;  %4079 = vmatmul.mubr.bf16.vlgmr.msra.gmra.mrb[176].mxu0 %v738_v62  ;;  %v768_v20 = vpack.c.bf16 %v348_v31, %v318_v38  ;;  %v406_v1 = vld [vmem:[%s6309_s18 + $0x560] sm:$0xff]  ;;  %v439_v11 = vld [vmem:[%s6309_s18 + $0x668] sm:$0xff] }
 0x189   : > { %v3251_v28 = vadd.f32 %v5182_v19, %v7233_v43  ;;  %v7423_v29 = vadd.f32 %v5243_v2, %v3248_v18  ;;  %5772 = vmatpush3.bf16.msra.mxu1 %v6070_v48  ;;  %4241 = vmatpush1.bf16.msra.mxu0 %v6071_v22  ;;  %v6075_v43 = vld [vmem:[%s7934_s1 + $0x6d0] sm:$0xff]   ;;  %v378_v44 = vld [vmem:[%s6309_s18 + $0x480] sm:$0xff]  ;;  %v437_v22 = vld [vmem:[%s6309_s18 + $0x658] sm:$0xff]  ;;  %v796_v45 = vpack.c.bf16 %v406_v1, %v376_v63 }
 0x18a   : > { %3989 = vmatprep.mubr.bf16.mxu1 %v767_v15  ;;  %5773 = vmatprep.subr.bf16.mxu1 %v6072_v13  ;;  %v408_v2 = vld [vmem:[%s6309_s18 + $0x570] sm:$0xff]  ;;  %v469_v15 = vld [vmem:[%s6309_s18 + $0x758] sm:$0xff]  ;;  %v827_v33 = vpack.c.bf16 %v467_v58, %v437_v22 }
 0x18b   : > { %v7435_v49 = vadd.f32 %v5246_v24, %v3251_v28  ;;  %v5183_v35 = vpop.f32.mrb[72].mxu1  ;;  %v5247_v16 = vpop.f32.mrb[72].mxu0  ;;  %4086 = vmatprep.mubr.bf16.mxu0 %v769_v25  ;;  %4242 = vmatprep.subr.bf16.mxu0 %v6234_v6  ;;  %v6080_v13 = vld [vmem:[%s7934_s1 + $0x698] sm:$0xff]   ;;  %v6083_v24 = vld [vmem:[%s7934_s1 + $0x6e0] sm:$0xff]   ;;  %v829_v7 = vpack.c.bf16 %v469_v15, %v439_v11 }
 0x18c   : > { %v5184_v42 = vpop.f32.mrb[73].mxu1  ;;  %v5248_v51 = vpop.f32.mrb[73].mxu0 }
 0x18d   : > { %v5185_v47 = vadd.f32 %v5184_v42, %v5183_v35  ;;  %v5186_v5 = vpop.f32.mrb[74].mxu1  ;;  %v5249_v50 = vadd.f32 %v5248_v51, %v5247_v16  ;;  %v5250_v53 = vpop.f32.mrb[74].mxu0  ;;  %5774 = vmatpush3.bf16.msra.mxu1 %v6073_v27  ;;  %4243 = vmatpush1.bf16.msra.mxu0 %v6074_v32  ;;  %v798_v27 = vpack.c.bf16 %v408_v2, %v378_v44  ;;  %v6081_v16 = vld [vmem:[%s7934_s1 + $0x720] sm:$0xff]  }
 0x18e   : > { %v5187_v14 = vpop.f32.mrb[75].mxu1  ;;  %v5251_v41 = vpop.f32.mrb[75].mxu0  ;;  %4244 = vmatprep.subr.bf16.mxu0 %v6234_v6  ;;  %5775 = vmatprep.subr.bf16.mxu1 %v6075_v43 }
 0x18f   : > { %v3256_v60 = vadd.f32 %v5185_v47, %v7257_v3  ;;  %v5188_v61 = vadd.f32 %v5187_v14, %v5186_v5  ;;  %v5252_v62 = vadd.f32 %v5251_v41, %v5250_v53  ;;  %v6078_v3 = vld [vmem:[%s7934_s1 + $0x718] sm:$0xff]   ;;  %v466_v47 = vld [vmem:[%s6309_s18 + $0x740] sm:$0xff]  ;;  %v6082_v14 = vld [vmem:[%s7934_s1 + $0x728] sm:$0xff]  }
 0x190   : > { %3990 = vmatmul.mubr.bf16.gmra.mrb[180].mxu1 %v766_v21  ;;  %4087 = vmatmul.mubr.bf16.gmra.mrb[180].mxu0 %v768_v20  ;;  %v436_v21 = vld [vmem:[%s6309_s18 + $0x650] sm:$0xff]  ;;  %v6086_v20 = vld [vmem:[%s7934_s1 + $0x6e8] sm:$0xff]   ;;  %v438_v5 = vld [vmem:[%s6309_s18 + $0x660] sm:$0xff] }
 0x191   : > { %v3259_v4 = vadd.f32 %v5188_v61, %v7267_v12  ;;  %v7456_v48 = vadd.f32 %v5249_v50, %v3256_v60  ;;  %3997 = vmatprep.mubr.bf16.mxu1 %v797_v36  ;;  %4245 = vmatpush1.bf16.msra.mxu0 %v6076_v55  ;;  %v468_v50 = vld [vmem:[%s6309_s18 + $0x750] sm:$0xff]  ;;  %v527_v55 = vld [vmem:[%s6309_s18 + $0x928] sm:$0xff]  ;;  %v826_v1 = vpack.c.bf16 %v466_v47, %v436_v21 }
 0x192   : > { %4094 = vmatprep.mubr.bf16.mxu0 %v799_v59  ;;  %5776 = vmatpush3.bf16.msra.mxu1 %v6077_v34  ;;  %v499_v41 = vld [vmem:[%s6309_s18 + $0x848] sm:$0xff]  ;;  %v529_v59 = vld [vmem:[%s6309_s18 + $0x938] sm:$0xff]  ;;  %v828_v44 = vpack.c.bf16 %v468_v50, %v438_v5 }
 0x193   : > { %v7468_v18 = vadd.f32 %v5252_v62, %v3259_v4  ;;  %v5189_v12 = vpop.f32.mrb[76].mxu1  ;;  %v5253_v19 = vpop.f32.mrb[76].mxu0  ;;  %4246 = vmatprep.subr.bf16.mxu0 %v6234_v6  ;;  %5777 = vmatprep.subr.bf16.mxu1 %v6079_v0  ;;  %v6087_v34 = vld [vmem:[%s7934_s1 + $0x6a8] sm:$0xff]   ;;  %v6090_v62 = vld [vmem:[%s7934_s1 + $0x6f0] sm:$0xff]   ;;  %v859_v11 = vpack.c.bf16 %v529_v59, %v499_v41 }
 0x194   : > { %v5190_v25 = vpop.f32.mrb[77].mxu1  ;;  %v5254_v26 = vpop.f32.mrb[77].mxu0 }
 0x195   : > { %v5191_v28 = vadd.f32 %v5190_v25, %v5189_v12  ;;  %v5192_v38 = vpop.f32.mrb[78].mxu1  ;;  %v5255_v31 = vadd.f32 %v5254_v26, %v5253_v19  ;;  %v5256_v32 = vpop.f32.mrb[78].mxu0  ;;  %4247 = vmatpush1.bf16.msra.mxu0 %v6078_v3  ;;  %v6085_v12 = vld [vmem:[%s7934_s1 + $0x730] sm:$0xff]  }
 0x196   : > { %v5193_v43 = vpop.f32.mrb[79].mxu1  ;;  %v5257_v35 = vpop.f32.mrb[79].mxu0  ;;  %5778 = vmatpush3.bf16.msra.mxu1 %v6080_v13  ;;  %4248 = vmatprep.subr.bf16.mxu0 %v6234_v6  ;;  %v6091_v19 = vld [vmem:[%s7934_s1 + $0x6b0] sm:$0xff]  }
 0x197   : > { %v3264_v39 = vadd.f32 %v5191_v28, %v7299_v57  ;;  %v5194_v42 = vadd.f32 %v5193_v43, %v5192_v38  ;;  %v5258_v51 = vadd.f32 %v5257_v35, %v5256_v32  ;;  %5779 = vmatprep.subr.bf16.mxu1 %v6083_v24  ;;  %v497_v57 = vld [vmem:[%s6309_s18 + $0x838] sm:$0xff]  ;;  %v526_v28 = vld [vmem:[%s6309_s18 + $0x920] sm:$0xff]  ;;  %v559_v43 = vld [vmem:[%s6309_s18 + $0xa28] sm:$0xff] }
 0x198   : > { %3998 = vmatmul.mubr.bf16.gmra.mrb[184].mxu1 %v796_v45  ;;  %4095 = vmatmul.mubr.bf16.gmra.mrb[184].mxu0 %v798_v27  ;;  %v857_v58 = vpack.c.bf16 %v527_v55, %v497_v57  ;;  %v496_v45 = vld [vmem:[%s6309_s18 + $0x830] sm:$0xff]  ;;  %v6093_v27 = vld [vmem:[%s7934_s1 + $0x6f8] sm:$0xff]   ;;  %v498_v38 = vld [vmem:[%s6309_s18 + $0x840] sm:$0xff] }
 0x199   : > { %v3267_v53 = vadd.f32 %v5194_v42, %v7313_v10  ;;  %v7490_v36 = vadd.f32 %v5255_v31, %v3264_v39  ;;  %4005 = vmatprep.mubr.bf16.mxu1 %v827_v33  ;;  %4102 = vmatprep.mubr.bf16.mxu0 %v829_v7  ;;  %v528_v31 = vld [vmem:[%s6309_s18 + $0x930] sm:$0xff]  ;;  %v557_v33 = vld [vmem:[%s6309_s18 + $0xa18] sm:$0xff]  ;;  %v587_v7 = vld [vmem:[%s6309_s18 + $0xb08] sm:$0xff] }
 0x19a   : > { %4249 = vmatpush1.bf16.msra.mxu0 %v6081_v16  ;;  %5780 = vmatpush3.bf16.msra.mxu1 %v6084_v8  ;;  %v589_v35 = vld [vmem:[%s6309_s18 + $0xb18] sm:$0xff]  ;;  %v858_v47 = vpack.c.bf16 %v528_v31, %v498_v38  ;;  %v887_v55 = vpack.c.bf16 %v587_v7, %v557_v33  ;;  %v6094_v7 = vld [vmem:[%s7934_s1 + $0x750] sm:$0xff]  }
 0x19b   : > { %v7502_v60 = vadd.f32 %v5258_v51, %v3267_v53  ;;  %v5275_v10 = vpop.f32.mrb[80].mxu1  ;;  %v5339_v61 = vpop.f32.mrb[80].mxu0  ;;  %4250 = vmatprep.subr.bf16.mxu0 %v6234_v6  ;;  %5781 = vmatprep.subr.bf16.mxu1 %v6086_v20  ;;  %v6088_v16 = vld [vmem:[%s7934_s1 + $0x738] sm:$0xff]   ;;  %v856_v20 = vpack.c.bf16 %v526_v28, %v496_v45 }
 0x19c   : > { %v5276_v63 = vpop.f32.mrb[81].mxu1  ;;  %v5340_v0 = vpop.f32.mrb[81].mxu0  ;;  %v6095_v8 = vld [vmem:[%s7934_s1 + $0x6b8] sm:$0xff]  }
 0x19d   : > { %v5277_v2 = vadd.f32 %v5276_v63, %v5275_v10  ;;  %v5278_v4 = vpop.f32.mrb[82].mxu1  ;;  %v5341_v3 = vadd.f32 %v5340_v0, %v5339_v61  ;;  %v5342_v22 = vpop.f32.mrb[82].mxu0  ;;  %v556_v63 = vld [vmem:[%s6309_s18 + $0xa10] sm:$0xff]  ;;  %v586_v0 = vld [vmem:[%s6309_s18 + $0xb00] sm:$0xff] }
 0x19e   : > { %v5279_v15 = vpop.f32.mrb[83].mxu1  ;;  %v5343_v13 = vpop.f32.mrb[83].mxu0  ;;  %4251 = vmatpush1.bf16.msra.mxu0 %v6082_v14  ;;  %5782 = vmatpush3.bf16.msra.mxu1 %v6087_v34  ;;  %v889_v14 = vpack.c.bf16 %v589_v35, %v559_v43  ;;  %v6089_v34 = vld [vmem:[%s7934_s1 + $0x740] sm:$0xff]  }
 0x19f   : > { %v3402_v24 = vadd.f32 %v5277_v2, %v7335_v37  ;;  %v5280_v25 = vadd.f32 %v5279_v15, %v5278_v4  ;;  %v5344_v26 = vadd.f32 %v5343_v13, %v5342_v22  ;;  %4252 = vmatprep.subr.bf16.mxu0 %v6234_v6  ;;  %5783 = vmatprep.subr.bf16.mxu1 %v6090_v62  ;;  %v588_v4 = vld [vmem:[%s6309_s18 + $0xb10] sm:$0xff]  ;;  %v619_v22 = vld [vmem:[%s6309_s18 + $0xc08] sm:$0xff] }
 0x1a0   : > { %4006 = vmatmul.mubr.bf16.gmra.mrb[188].mxu1 %v826_v1  ;;  %4103 = vmatmul.mubr.bf16.gmra.mrb[188].mxu0 %v828_v44  ;;  %v558_v1 = vld [vmem:[%s6309_s18 + $0xa20] sm:$0xff] }
 0x1a1   : > { %v3405_v37 = vadd.f32 %v5280_v25, %v7345_v46  ;;  %v7524_v32 = vadd.f32 %v5341_v3, %v3402_v24  ;;  %4013 = vmatprep.mubr.bf16.mxu1 %v857_v58  ;;  %4110 = vmatprep.mubr.bf16.mxu0 %v859_v11  ;;  %v617_v3 = vld [vmem:[%s6309_s18 + $0xbf8] sm:$0xff]  ;;  %v6092_v11 = vld [vmem:[%s7934_s1 + $0x748] sm:$0xff]   ;;  %v886_v24 = vpack.c.bf16 %v586_v0, %v556_v63 }
 0x1a2   : > { %4253 = vmatpush1.bf16.msra.mxu0 %v6085_v12  ;;  %5784 = vmatpush3.bf16.msra.mxu1 %v6091_v19  ;;  %v649_v58 = vld [vmem:[%s6309_s18 + $0xcf8] sm:$0xff]  ;;  %v888_v25 = vpack.c.bf16 %v588_v4, %v558_v1 }
 0x1a3   : > { %v7536_v39 = vadd.f32 %v5344_v26, %v3405_v37  ;;  %v5281_v46 = vpop.f32.mrb[84].mxu1  ;;  %v5345_v42 = vpop.f32.mrb[84].mxu0  ;;  %4254 = vmatprep.subr.bf16.mxu0 %v6234_v6  ;;  %5785 = vmatprep.subr.bf16.mxu1 %v6093_v27  ;;  %v919_v31 = vpack.c.bf16 %v649_v58, %v619_v22 }
 0x1a4   : > { %v5282_v51 = vpop.f32.mrb[85].mxu1  ;;  %v5346_v21 = vpop.f32.mrb[85].mxu0 }
 0x1a5   : > { %v5283_v5 = vadd.f32 %v5282_v51, %v5281_v46  ;;  %v5284_v50 = vpop.f32.mrb[86].mxu1  ;;  %v5347_v53 = vadd.f32 %v5346_v21, %v5345_v42  ;;  %v5348_v57 = vpop.f32.mrb[86].mxu0  ;;  %v646_v46 = vld [vmem:[%s6309_s18 + $0xce0] sm:$0xff] }
 0x1a6   : > { %v5285_v41 = vpop.f32.mrb[87].mxu1  ;;  %v5349_v59 = vpop.f32.mrb[87].mxu0  ;;  %4255 = vmatpush1.bf16.msra.mxu0 %v6088_v16  ;;  %5786 = vmatpush3.bf16.msra.mxu1 %v6095_v8  ;;  %v616_v8 = vld [vmem:[%s6309_s18 + $0xbf0] sm:$0xff]  ;;  %v618_v42 = vld [vmem:[%s6309_s18 + $0xc00] sm:$0xff] }
 0x1a7   : > { %v3410_v10 = vadd.f32 %v5283_v5, %v7357_v9  ;;  %v5286_v61 = vadd.f32 %v5285_v41, %v5284_v50  ;;  %v5350_v62 = vadd.f32 %v5349_v59, %v5348_v57  ;;  %4256 = vmatprep.subr.bf16.mxu0 %v6234_v6  ;;  %v647_v9 = vld [vmem:[%s6309_s18 + $0xce8] sm:$0xff]  ;;  %v709_v50 = vld [vmem:[%s6309_s18 + $0xed8] sm:$0xff] }
 0x1a8   : > { %4014 = vmatmul.mubr.bf16.gmra.mrb[192].mxu1 %v856_v20  ;;  %4111 = vmatmul.mubr.bf16.gmra.mrb[192].mxu0 %v858_v47  ;;  %v917_v38 = vpack.c.bf16 %v647_v9, %v617_v3  ;;  %v648_v20 = vld [vmem:[%s6309_s18 + $0xcf0] sm:$0xff]  ;;  %v677_v47 = vld [vmem:[%s6309_s18 + $0xdd8] sm:$0xff]  ;;  %v679_v5 = vld [vmem:[%s6309_s18 + $0xde8] sm:$0xff] }
 0x1a9   : > { %v3413_v44 = vadd.f32 %v5286_v61, %v7363_v17  ;;  %v7548_v2 = vadd.f32 %v5347_v53, %v3410_v10  ;;  %4021 = vmatprep.mubr.bf16.mxu1 %v887_v55  ;;  %4118 = vmatprep.mubr.bf16.mxu0 %v889_v14  ;;  %v6096_v53 = vld [vmem:[%s7934_s1 + $0x758] sm:$0xff]   ;;  %v918_v10 = vpack.c.bf16 %v648_v20, %v618_v42 }
 0x1aa   : > { %4257 = vmatpush1.bf16.msra.mxu0 %v6089_v34  ;;  %v916_v34 = vpack.c.bf16 %v646_v46, %v616_v8 }
 0x1ab   : > { %v7558_v15 = vadd.f32 %v5350_v62, %v3413_v44  ;;  %v5287_v13 = vpop.f32.mrb[88].mxu1  ;;  %v5351_v12 = vpop.f32.mrb[88].mxu0  ;;  %4258 = vmatprep.subr.bf16.mxu0 %v6234_v6  ;;  %v949_v44 = vpack.c.bf16 %v709_v50, %v679_v5  ;;  %v260_v5 = vld [vmem:[%s6309_s18 + $0xd0] sm:$0xff]  ;;  %v290_v50 = vld [vmem:[%s6309_s18 + $0x1c0] sm:$0xff] }
 0x1ac   : > { %v5288_v17 = vpop.f32.mrb[89].mxu1  ;;  %v5352_v19 = vpop.f32.mrb[89].mxu0 }
 0x1ad   : > { %v5289_v26 = vadd.f32 %v5288_v17, %v5287_v13  ;;  %v5290_v45 = vpop.f32.mrb[90].mxu1  ;;  %v5353_v27 = vadd.f32 %v5352_v19, %v5351_v12  ;;  %v5354_v28 = vpop.f32.mrb[90].mxu0  ;;  %v676_v13 = vld [vmem:[%s6309_s18 + $0xdd0] sm:$0xff]  ;;  %v706_v12 = vld [vmem:[%s6309_s18 + $0xec0] sm:$0xff] }
 0x1ae   : > { %v5291_v37 = vpop.f32.mrb[91].mxu1  ;;  %v5355_v33 = vpop.f32.mrb[91].mxu0  ;;  %4259 = vmatpush1.bf16.msra.mxu0 %v6092_v11 }
 0x1af   : > { %v3418_v43 = vadd.f32 %v5289_v26, %v7371_v40  ;;  %v5292_v35 = vadd.f32 %v5291_v37, %v5290_v45  ;;  %v5356_v16 = vadd.f32 %v5355_v33, %v5354_v28  ;;  %4260 = vmatprep.subr.bf16.mxu0 %v6234_v6  ;;  %v707_v40 = vld [vmem:[%s6309_s18 + $0xec8] sm:$0xff]  ;;  %v946_v33 = vpack.c.bf16 %v706_v12, %v676_v13 }
 0x1b0   : > { %4022 = vmatmul.mubr.bf16.gmra.mrb[196].mxu1 %v886_v24  ;;  %4119 = vmatmul.mubr.bf16.gmra.mrb[196].mxu0 %v888_v25  ;;  %v947_v1 = vpack.c.bf16 %v707_v40, %v677_v47  ;;  %v678_v24 = vld [vmem:[%s6309_s18 + $0xde0] sm:$0xff]  ;;  %v261_v25 = vld [vmem:[%s6309_s18 + $0xd8] sm:$0xff]  ;;  %v291_v26 = vld [vmem:[%s6309_s18 + $0x1c8] sm:$0xff] }
 0x1b1   : > { %v3421_v51 = vadd.f32 %v5292_v35, %v7377_v30  ;;  %v7570_v21 = vadd.f32 %v5353_v27, %v3418_v43  ;;  %4029 = vmatprep.mubr.bf16.mxu1 %v917_v38  ;;  %4126 = vmatprep.mubr.bf16.mxu0 %v919_v31  ;;  %v6097_v30 = vld [vmem:[%s7934_s1 + $0x760] ss:$0 sps:$4 sm:$0x33]   ;;  %v263_v45 = vld [vmem:[%s6309_s18 + $0xe8] sm:$0xff]  ;;  %v293_v27 = vld [vmem:[%s6309_s18 + $0x1d8] sm:$0xff]  ;;  %v741_v8 = vpack.c.bf16 %v291_v26, %v261_v25 }
 0x1b2   : > { %4261 = vmatpush1.bf16.msra.mxu0 %v6094_v7  ;;  %v2880_v11 = vsel %vm2878_vm0, %v6097_v30, 0  ;;  %v743_v46 = vpack.c.bf16 %v293_v27, %v263_v45  ;;  %v292_v30 = vld [vmem:[%s6309_s18 + $0x1d0] sm:$0xff]  ;;  %v350_v25 = vld [vmem:[%s6309_s18 + $0x3a0] sm:$0xff] }
 0x1b3   : > { %v7580_v57 = vadd.f32 %v5356_v16, %v3421_v51  ;;  %v5293_v55 = vpop.f32.mrb[92].mxu1  ;;  %v5357_v14 = vpop.f32.mrb[92].mxu0  ;;  %4262 = vmatprep.subr.bf16.mxu0 %v6234_v6  ;;  %v322_v27 = vld [vmem:[%s6309_s18 + $0x2c0] sm:$0xff] }
 0x1b4   : > { %v5294_v41 = vpop.f32.mrb[93].mxu1  ;;  %v5358_v59 = vpop.f32.mrb[93].mxu0 }
 0x1b5   : > { %v5295_v61 = vadd.f32 %v5294_v41, %v5293_v55  ;;  %v5296_v62 = vpop.f32.mrb[94].mxu1  ;;  %v5359_v63 = vadd.f32 %v5358_v59, %v5357_v14  ;;  %v5360_v0 = vpop.f32.mrb[94].mxu0  ;;  %v262_v14 = vld [vmem:[%s6309_s18 + $0xe0] sm:$0xff]  ;;  %v321_v41 = vld [vmem:[%s6309_s18 + $0x2b8] sm:$0xff]  ;;  %v351_v59 = vld [vmem:[%s6309_s18 + $0x3a8] sm:$0xff] }
 0x1b6   : > { %v5297_v4 = vpop.f32.mrb[95].mxu1  ;;  %v5361_v3 = vpop.f32.mrb[95].mxu0  ;;  %4263 = vmatpush1.bf16.msra.mxu0 %v6096_v53 }
 0x1b7   : > { %v3426_v9 = vadd.f32 %v5295_v61, %v7386_v23  ;;  %v5298_v22 = vadd.f32 %v5297_v4, %v5296_v62  ;;  %v5362_v58 = vadd.f32 %v5361_v3, %v5360_v0  ;;  %4264 = vmatprep.subr.bf16.mxu0 %v6234_v6  ;;  %v708_v23 = vld [vmem:[%s6309_s18 + $0xed0] sm:$0xff] }
 0x1b8   : > { %4030 = vmatmul.mubr.bf16.gmra.mrb[200].mxu1 %v916_v34  ;;  %4127 = vmatmul.mubr.bf16.gmra.mrb[200].mxu0 %v918_v10  ;;  %v323_v34 = vld [vmem:[%s6309_s18 + $0x2c8] sm:$0xff] }
 0x1b9   : > { %v3429_v17 = vadd.f32 %v5298_v22, %v7391_v52  ;;  %v7591_v19 = vadd.f32 %v5359_v63, %v3426_v9  ;;  %4037 = vmatprep.mubr.bf16.mxu1 %v947_v1  ;;  %4134 = vmatprep.mubr.bf16.mxu0 %v949_v44  ;;  %v948_v52 = vpack.c.bf16 %v708_v23, %v678_v24  ;;  %v320_v23 = vld [vmem:[%s6309_s18 + $0x2b0] sm:$0xff] }
 0x1ba   : > { %4265 = vmatpush1.bf16.msra.mxu0 %v2880_v11  ;;  %v740_v1 = vpack.c.bf16 %v290_v50, %v260_v5  ;;  %v771_v22 = vpack.c.bf16 %v351_v59, %v321_v41  ;;  %v410_v41 = vld [vmem:[%s6309_s18 + $0x580] sm:$0xff] }
 0x1bb   : > { %v7599_v6 = vadd.f32 %v5362_v58, %v3429_v17  ;;  %v5299_v28 = vpop.f32.mrb[96].mxu1  ;;  %v5363_v38 = vpop.f32.mrb[96].mxu0 }
 0x1bc   : > { %v5300_v31 = vpop.f32.mrb[97].mxu1  ;;  %v5364_v37 = vpop.f32.mrb[97].mxu0 }
 0x1bd   : > { %v5301_v7 = vadd.f32 %v5300_v31, %v5299_v28  ;;  %v5302_v43 = vpop.f32.mrb[98].mxu1  ;;  %v5365_v35 = vadd.f32 %v5364_v37, %v5363_v38  ;;  %v5366_v16 = vpop.f32.mrb[98].mxu0  ;;  %v352_v28 = vld [vmem:[%s6309_s18 + $0x3b0] sm:$0xff]  ;;  %v381_v38 = vld [vmem:[%s6309_s18 + $0x498] sm:$0xff]  ;;  %v411_v31 = vld [vmem:[%s6309_s18 + $0x588] sm:$0xff] }
 0x1be   : > { %v5303_v42 = vpop.f32.mrb[99].mxu1  ;;  %v5367_v51 = vpop.f32.mrb[99].mxu0  ;;  %v383_v37 = vld [vmem:[%s6309_s18 + $0x4a8] sm:$0xff] }
 0x1bf   : > { %v3434_v20 = vadd.f32 %v5301_v7, %v7398_v54  ;;  %v5304_v47 = vadd.f32 %v5303_v42, %v5302_v43  ;;  %v5368_v40 = vadd.f32 %v5367_v51, %v5366_v16  ;;  %v353_v54 = vld [vmem:[%s6309_s18 + $0x3b8] sm:$0xff]  ;;  %v770_v16 = vpack.c.bf16 %v350_v25, %v320_v23 }
 0x1c0   : > { %4038 = vmatmul.mubr.bf16.gmra.mrb[204].mxu1 %v946_v33  ;;  %4135 = vmatmul.mubr.bf16.gmra.mrb[204].mxu0 %v948_v52  ;;  %v773_v58 = vpack.c.bf16 %v353_v54, %v323_v34  ;;  %v382_v54 = vld [vmem:[%s6309_s18 + $0x4a0] sm:$0xff] }
 0x1c1   : > { %v3437_v53 = vadd.f32 %v5304_v47, %v7403_v56  ;;  %v7605_v55 = vadd.f32 %v5365_v35, %v3434_v20  ;;  %4175 = vmatprep.mubr.bf16.mxu1 %v741_v8  ;;  %4927 = vmatprep.mubr.msk.bf16.mxu0 %vm2853_vm1, %v743_v46  ;;  %v742_v56 = vpack.c.bf16 %v292_v30, %v262_v14  ;;  %v380_v30 = vld [vmem:[%s6309_s18 + $0x490] sm:$0xff] }
 0x1c2   : > { %v801_v20 = vpack.c.bf16 %v411_v31, %v381_v38  ;;  %v470_v38 = vld [vmem:[%s6309_s18 + $0x760] sm:$0xff] }
 0x1c3   : > { %v7614_v10 = vadd.f32 %v5368_v40, %v3437_v53  ;;  %v5305_v61 = vpop.f32.mrb[100].mxu1  ;;  %v5369_v62 = vpop.f32.mrb[100].mxu0 }
 0x1c4   : > { %v5306_v63 = vpop.f32.mrb[101].mxu1  ;;  %v5370_v0 = vpop.f32.mrb[101].mxu0 }
 0x1c5   : > { %v5307_v44 = vadd.f32 %v5306_v63, %v5305_v61  ;;  %v5308_v4 = vpop.f32.mrb[102].mxu1  ;;  %v5371_v3 = vadd.f32 %v5370_v0, %v5369_v62  ;;  %v5372_v9 = vpop.f32.mrb[102].mxu0  ;;  %v412_v61 = vld [vmem:[%s6309_s18 + $0x590] sm:$0xff]  ;;  %v441_v62 = vld [vmem:[%s6309_s18 + $0x678] sm:$0xff]  ;;  %v471_v63 = vld [vmem:[%s6309_s18 + $0x768] sm:$0xff] }
 0x1c6   : > { %v5309_v11 = vpop.f32.mrb[103].mxu1  ;;  %v5373_v13 = vpop.f32.mrb[103].mxu0  ;;  %v443_v0 = vld [vmem:[%s6309_s18 + $0x688] sm:$0xff] }
 0x1c7   : > { %v3442_v12 = vadd.f32 %v5307_v44, %v7423_v29  ;;  %v5310_v17 = vadd.f32 %v5309_v11, %v5308_v4  ;;  %v5374_v24 = vadd.f32 %v5373_v13, %v5372_v9  ;;  %v413_v29 = vld [vmem:[%s6309_s18 + $0x598] sm:$0xff]  ;;  %v800_v9 = vpack.c.bf16 %v410_v41, %v380_v30 }
 0x1c8   : > { %4176 = vmatmul.mubr.bf16.vlgmr.msra.gmra.mrb[208].mxu1 %v740_v1  ;;  %4273 = vmatmul.mubr.bf16.vlgmr.msra.gmra.mrb[208].mxu0 %v742_v56  ;;  %v803_v47 = vpack.c.bf16 %v413_v29, %v383_v37  ;;  %v442_v29 = vld [vmem:[%s6309_s18 + $0x680] sm:$0xff] }
 0x1c9   : > { %v3445_v26 = vadd.f32 %v5310_v17, %v7435_v49  ;;  %v7620_v45 = vadd.f32 %v5371_v3, %v3442_v12  ;;  %4183 = vmatprep.mubr.bf16.mxu1 %v771_v22  ;;  %4928 = vmatprep.mubr.msk.bf16.mxu0 %vm2853_vm1, %v773_v58  ;;  %v772_v49 = vpack.c.bf16 %v352_v28, %v322_v27  ;;  %v440_v28 = vld [vmem:[%s6309_s18 + $0x670] sm:$0xff] }
 0x1ca   : > { %v831_v12 = vpack.c.bf16 %v471_v63, %v441_v62  ;;  %v530_v62 = vld [vmem:[%s6309_s18 + $0x940] sm:$0xff] }
 0x1cb   : > { %v7629_v33 = vadd.f32 %v5374_v24, %v3445_v26  ;;  %v5311_v52 = vpop.f32.mrb[104].mxu1  ;;  %v5375_v7 = vpop.f32.mrb[104].mxu0 }
 0x1cc   : > { %v5312_v43 = vpop.f32.mrb[105].mxu1  ;;  %v5376_v35 = vpop.f32.mrb[105].mxu0 }
 0x1cd   : > { %v5313_v8 = vadd.f32 %v5312_v43, %v5311_v52  ;;  %v5314_v46 = vpop.f32.mrb[106].mxu1  ;;  %v5377_v42 = vadd.f32 %v5376_v35, %v5375_v7  ;;  %v5378_v51 = vpop.f32.mrb[106].mxu0  ;;  %v472_v52 = vld [vmem:[%s6309_s18 + $0x770] sm:$0xff]  ;;  %v501_v7 = vld [vmem:[%s6309_s18 + $0x858] sm:$0xff]  ;;  %v531_v43 = vld [vmem:[%s6309_s18 + $0x948] sm:$0xff] }
 0x1ce   : > { %v5315_v40 = vpop.f32.mrb[107].mxu1  ;;  %v5379_v5 = vpop.f32.mrb[107].mxu0  ;;  %v503_v35 = vld [vmem:[%s6309_s18 + $0x868] sm:$0xff] }
 0x1cf   : > { %v3450_v50 = vadd.f32 %v5313_v8, %v7456_v48  ;;  %v5316_v53 = vadd.f32 %v5315_v40, %v5314_v46  ;;  %v5380_v14 = vadd.f32 %v5379_v5, %v5378_v51  ;;  %v473_v48 = vld [vmem:[%s6309_s18 + $0x778] sm:$0xff]  ;;  %v830_v51 = vpack.c.bf16 %v470_v38, %v440_v28 }
 0x1d0   : > { %4184 = vmatmul.mubr.bf16.gmra.mrb[212].mxu1 %v770_v16  ;;  %4281 = vmatmul.mubr.bf16.gmra.mrb[212].mxu0 %v772_v49  ;;  %v833_v17 = vpack.c.bf16 %v473_v48, %v443_v0  ;;  %v502_v48 = vld [vmem:[%s6309_s18 + $0x860] sm:$0xff] }
 0x1d1   : > { %v3453_v59 = vadd.f32 %v5316_v53, %v7468_v18  ;;  %v7635_v34 = vadd.f32 %v5377_v42, %v3450_v50  ;;  %4191 = vmatprep.mubr.bf16.mxu1 %v801_v20  ;;  %4929 = vmatprep.mubr.msk.bf16.mxu0 %vm2853_vm1, %v803_v47  ;;  %v802_v18 = vpack.c.bf16 %v412_v61, %v382_v54  ;;  %v500_v61 = vld [vmem:[%s6309_s18 + $0x850] sm:$0xff] }
 0x1d2   : > { %v861_v50 = vpack.c.bf16 %v531_v43, %v501_v7  ;;  %v590_v7 = vld [vmem:[%s6309_s18 + $0xb20] sm:$0xff] }
 0x1d3   : > { %v7644_v1 = vadd.f32 %v5380_v14, %v3453_v59  ;;  %v5317_v56 = vpop.f32.mrb[108].mxu1  ;;  %v5381_v44 = vpop.f32.mrb[108].mxu0 }
 0x1d4   : > { %v5318_v4 = vpop.f32.mrb[109].mxu1  ;;  %v5382_v3 = vpop.f32.mrb[109].mxu0 }
 0x1d5   : > { %v5319_v22 = vadd.f32 %v5318_v4, %v5317_v56  ;;  %v5320_v58 = vpop.f32.mrb[110].mxu1  ;;  %v5383_v11 = vadd.f32 %v5382_v3, %v5381_v44  ;;  %v5384_v13 = vpop.f32.mrb[110].mxu0  ;;  %v532_v56 = vld [vmem:[%s6309_s18 + $0x950] sm:$0xff]  ;;  %v561_v44 = vld [vmem:[%s6309_s18 + $0xa38] sm:$0xff]  ;;  %v591_v4 = vld [vmem:[%s6309_s18 + $0xb28] sm:$0xff] }
 0x1d6   : > { %v5321_v24 = vpop.f32.mrb[111].mxu1  ;;  %v5385_v23 = vpop.f32.mrb[111].mxu0  ;;  %v563_v3 = vld [vmem:[%s6309_s18 + $0xa48] sm:$0xff] }
 0x1d7   : > { %v3458_v25 = vadd.f32 %v5319_v22, %v7490_v36  ;;  %v5322_v26 = vadd.f32 %v5321_v24, %v5320_v58  ;;  %v5386_v27 = vadd.f32 %v5385_v23, %v5384_v13  ;;  %v533_v36 = vld [vmem:[%s6309_s18 + $0x958] sm:$0xff]  ;;  %v860_v13 = vpack.c.bf16 %v530_v62, %v500_v61 }
 0x1d8   : > { %4192 = vmatmul.mubr.bf16.gmra.mrb[216].mxu1 %v800_v9  ;;  %4289 = vmatmul.mubr.bf16.gmra.mrb[216].mxu0 %v802_v18  ;;  %v863_v53 = vpack.c.bf16 %v533_v36, %v503_v35  ;;  %v562_v36 = vld [vmem:[%s6309_s18 + $0xa40] sm:$0xff] }
 0x1d9   : > { %v3461_v31 = vadd.f32 %v5322_v26, %v7502_v60  ;;  %v7650_v37 = vadd.f32 %v5383_v11, %v3458_v25  ;;  %4199 = vmatprep.mubr.bf16.mxu1 %v831_v12  ;;  %4930 = vmatprep.mubr.msk.bf16.mxu0 %vm2853_vm1, %v833_v17  ;;  %v832_v60 = vpack.c.bf16 %v472_v52, %v442_v29  ;;  %v560_v52 = vld [vmem:[%s6309_s18 + $0xa30] sm:$0xff] }
 0x1da   : > { %v891_v25 = vpack.c.bf16 %v591_v4, %v561_v44  ;;  %v650_v44 = vld [vmem:[%s6309_s18 + $0xd00] sm:$0xff] }
 0x1db   : > { %v7659_v16 = vadd.f32 %v5386_v27, %v3461_v31  ;;  %v5403_v49 = vpop.f32.mrb[112].mxu1  ;;  %v5467_v8 = vpop.f32.mrb[112].mxu0 }
 0x1dc   : > { %v5404_v46 = vpop.f32.mrb[113].mxu1  ;;  %v5468_v42 = vpop.f32.mrb[113].mxu0 }
 0x1dd   : > { %v5405_v20 = vadd.f32 %v5404_v46, %v5403_v49  ;;  %v5406_v47 = vpop.f32.mrb[114].mxu1  ;;  %v5469_v40 = vadd.f32 %v5468_v42, %v5467_v8  ;;  %v5470_v5 = vpop.f32.mrb[114].mxu0  ;;  %v592_v49 = vld [vmem:[%s6309_s18 + $0xb30] sm:$0xff]  ;;  %v621_v8 = vld [vmem:[%s6309_s18 + $0xc18] sm:$0xff]  ;;  %v651_v46 = vld [vmem:[%s6309_s18 + $0xd08] sm:$0xff] }
 0x1de   : > { %v5407_v14 = vpop.f32.mrb[115].mxu1  ;;  %v5471_v30 = vpop.f32.mrb[115].mxu0  ;;  %v623_v42 = vld [vmem:[%s6309_s18 + $0xc28] sm:$0xff] }
 0x1df   : > { %v3596_v41 = vadd.f32 %v5405_v20, %v7524_v32  ;;  %v5408_v59 = vadd.f32 %v5407_v14, %v5406_v47  ;;  %v5472_v54 = vadd.f32 %v5471_v30, %v5470_v5  ;;  %v593_v32 = vld [vmem:[%s6309_s18 + $0xb38] sm:$0xff]  ;;  %v890_v5 = vpack.c.bf16 %v590_v7, %v560_v52 }
 0x1e0   : > { %4200 = vmatmul.mubr.bf16.gmra.mrb[220].mxu1 %v830_v51  ;;  %4297 = vmatmul.mubr.bf16.gmra.mrb[220].mxu0 %v832_v60  ;;  %v893_v26 = vpack.c.bf16 %v593_v32, %v563_v3  ;;  %v622_v32 = vld [vmem:[%s6309_s18 + $0xc20] sm:$0xff] }
 0x1e1   : > { %v3599_v63 = vadd.f32 %v5408_v59, %v7536_v39  ;;  %v7665_v0 = vadd.f32 %v5469_v40, %v3596_v41  ;;  %4207 = vmatprep.mubr.bf16.mxu1 %v861_v50  ;;  %4931 = vmatprep.mubr.msk.bf16.mxu0 %vm2853_vm1, %v863_v53  ;;  %v862_v39 = vpack.c.bf16 %v532_v56, %v502_v48  ;;  %v620_v56 = vld [vmem:[%s6309_s18 + $0xc10] sm:$0xff] }
 0x1e2   : > { %v921_v41 = vpack.c.bf16 %v651_v46, %v621_v8 }
 0x1e3   : > { %v7674_v9 = vadd.f32 %v5472_v54, %v3599_v63  ;;  %v5409_v18 = vpop.f32.mrb[116].mxu1  ;;  %v5473_v22 = vpop.f32.mrb[116].mxu0 }
 0x1e4   : > { %v5410_v58 = vpop.f32.mrb[117].mxu1  ;;  %v5474_v11 = vpop.f32.mrb[117].mxu0 }
 0x1e5   : > { %v5411_v12 = vadd.f32 %v5410_v58, %v5409_v18  ;;  %v5412_v17 = vpop.f32.mrb[118].mxu1  ;;  %v5475_v24 = vadd.f32 %v5474_v11, %v5473_v22  ;;  %v5476_v23 = vpop.f32.mrb[118].mxu0  ;;  %v652_v18 = vld [vmem:[%s6309_s18 + $0xd10] sm:$0xff]  ;;  %v681_v22 = vld [vmem:[%s6309_s18 + $0xdf8] sm:$0xff]  ;;  %v711_v58 = vld [vmem:[%s6309_s18 + $0xee8] sm:$0xff] }
 0x1e6   : > { %v5413_v27 = vpop.f32.mrb[119].mxu1  ;;  %v5477_v28 = vpop.f32.mrb[119].mxu0  ;;  %v683_v11 = vld [vmem:[%s6309_s18 + $0xe08] sm:$0xff] }
 0x1e7   : > { %v3604_v38 = vadd.f32 %v5411_v12, %v7548_v2  ;;  %v5414_v31 = vadd.f32 %v5413_v27, %v5412_v17  ;;  %v5478_v29 = vadd.f32 %v5477_v28, %v5476_v23  ;;  %v653_v2 = vld [vmem:[%s6309_s18 + $0xd18] sm:$0xff]  ;;  %v920_v23 = vpack.c.bf16 %v650_v44, %v620_v56 }
 0x1e8   : > { %4208 = vmatmul.mubr.bf16.gmra.mrb[224].mxu1 %v860_v13  ;;  %4305 = vmatmul.mubr.bf16.gmra.mrb[224].mxu0 %v862_v39  ;;  %v923_v59 = vpack.c.bf16 %v653_v2, %v623_v42  ;;  %v710_v42 = vld [vmem:[%s6309_s18 + $0xee0] sm:$0xff] }
 0x1e9   : > { %v3607_v43 = vadd.f32 %v5414_v31, %v7558_v15  ;;  %v7680_v35 = vadd.f32 %v5475_v24, %v3604_v38  ;;  %4215 = vmatprep.mubr.bf16.mxu1 %v891_v25  ;;  %4932 = vmatprep.mubr.msk.bf16.mxu0 %vm2853_vm1, %v893_v26  ;;  %v892_v15 = vpack.c.bf16 %v592_v49, %v562_v36  ;;  %v680_v49 = vld [vmem:[%s6309_s18 + $0xdf0] sm:$0xff]  ;;  %v682_v2 = vld [vmem:[%s6309_s18 + $0xe00] sm:$0xff] }
 0x1ea   : > { %v951_v38 = vpack.c.bf16 %v711_v58, %v681_v22 }
 0x1eb   : > { %v7689_v51 = vadd.f32 %v5478_v29, %v3607_v43  ;;  %v5415_v60 = vpop.f32.mrb[120].mxu1  ;;  %v5479_v20 = vpop.f32.mrb[120].mxu0 }
 0x1ec   : > { %v5416_v47 = vpop.f32.mrb[121].mxu1  ;;  %v5480_v40 = vpop.f32.mrb[121].mxu0 }
 0x1ed   : > { %v5417_v50 = vadd.f32 %v5416_v47, %v5415_v60  ;;  %v5418_v53 = vpop.f32.mrb[122].mxu1  ;;  %v5481_v14 = vadd.f32 %v5480_v40, %v5479_v20  ;;  %v5482_v30 = vpop.f32.mrb[122].mxu0  ;;  %v712_v60 = vld [vmem:[%s6309_s18 + $0xef0] sm:$0xff] }
 0x1ee   : > { %v5419_v54 = vpop.f32.mrb[123].mxu1  ;;  %v5483_v61 = vpop.f32.mrb[123].mxu0 }
 0x1ef   : > { %v3612_v62 = vadd.f32 %v5417_v50, %v7570_v21  ;;  %v5420_v63 = vadd.f32 %v5419_v54, %v5418_v53  ;;  %v5484_v48 = vadd.f32 %v5483_v61, %v5482_v30  ;;  %v713_v21 = vld [vmem:[%s6309_s18 + $0xef8] sm:$0xff]  ;;  %v952_v50 = vpack.c.bf16 %v712_v60, %v682_v2 }
 0x1f0   : > { %4216 = vmatmul.mubr.bf16.gmra.mrb[228].mxu1 %v890_v5  ;;  %4313 = vmatmul.mubr.bf16.gmra.mrb[228].mxu0 %v892_v15  ;;  %v953_v31 = vpack.c.bf16 %v713_v21, %v683_v11  ;;  %v950_v15 = vpack.c.bf16 %v710_v42, %v680_v49 }
 0x1f1   : > { %v3615_v4 = vadd.f32 %v5420_v63, %v7580_v57  ;;  %v7695_v3 = vadd.f32 %v5481_v14, %v3612_v62  ;;  %4223 = vmatprep.mubr.bf16.mxu1 %v921_v41  ;;  %4933 = vmatprep.mubr.msk.bf16.mxu0 %vm2853_vm1, %v923_v59  ;;  %v922_v57 = vpack.c.bf16 %v652_v18, %v622_v32 }
 0x1f3   : > { %v7704_v13 = vadd.f32 %v5484_v48, %v3615_v4  ;;  %v5421_v39 = vpop.f32.mrb[124].mxu1  ;;  %v5485_v12 = vpop.f32.mrb[124].mxu0 }
 0x1f4   : > { %v5422_v17 = vpop.f32.mrb[125].mxu1  ;;  %v5486_v24 = vpop.f32.mrb[125].mxu0 }
 0x1f5   : > { %v5423_v25 = vadd.f32 %v5422_v17, %v5421_v39  ;;  %v5424_v26 = vpop.f32.mrb[126].mxu1  ;;  %v5487_v27 = vadd.f32 %v5486_v24, %v5485_v12  ;;  %v5488_v28 = vpop.f32.mrb[126].mxu0 }
 0x1f6   : > { %v5425_v29 = vpop.f32.mrb[127].mxu1  ;;  %v5489_v52 = vpop.f32.mrb[127].mxu0 }
 0x1f7   : > { %v3620_v7 = vadd.f32 %v5423_v25, %v7591_v19  ;;  %v5426_v43 = vadd.f32 %v5425_v29, %v5424_v26  ;;  %v5490_v36 = vadd.f32 %v5489_v52, %v5488_v28 }
 0x1f8   : > { %4224 = vmatmul.mubr.bf16.gmra.mrb[232].mxu1 %v920_v23  ;;  %4321 = vmatmul.mubr.bf16.gmra.mrb[232].mxu0 %v922_v57 }
 0x1f9   : > { %v3623_v8 = vadd.f32 %v5426_v43, %v7599_v6  ;;  %v7709_v46 = vadd.f32 %v5487_v27, %v3620_v7  ;;  %4231 = vmatprep.mubr.bf16.mxu1 %v951_v38  ;;  %4934 = vmatprep.mubr.msk.bf16.mxu0 %vm2853_vm1, %v953_v31 }
 0x1fb   : > { %v7715_v20 = vadd.f32 %v5490_v36, %v3623_v8  ;;  %v5427_v47 = vpop.f32.mrb[128].mxu1  ;;  %v5491_v40 = vpop.f32.mrb[128].mxu0 }
 0x1fc   : > { %v5428_v19 = vpop.f32.mrb[129].mxu1  ;;  %v5492_v5 = vpop.f32.mrb[129].mxu0 }
 0x1fd   : > { %v5429_v53 = vadd.f32 %v5428_v19, %v5427_v47  ;;  %v5430_v14 = vpop.f32.mrb[130].mxu1  ;;  %v5493_v30 = vadd.f32 %v5492_v5, %v5491_v40  ;;  %v5494_v6 = vpop.f32.mrb[130].mxu0 }
 0x1fe   : > { %v5431_v41 = vpop.f32.mrb[131].mxu1  ;;  %v5495_v59 = vpop.f32.mrb[131].mxu0 }
 0x1ff   : > { %v3628_v54 = vadd.f32 %v5429_v53, %v7605_v55  ;;  %v5432_v61 = vadd.f32 %v5431_v41, %v5430_v14  ;;  %v5496_v62 = vadd.f32 %v5495_v59, %v5494_v6 }
 0x200   : > { %4232 = vmatmul.mubr.bf16.gmra.mrb[236].mxu1 %v950_v15  ;;  %4329 = vmatmul.mubr.bf16.gmra.mrb[236].mxu0 %v952_v50 }
 0x201   : > { %v3631_v63 = vadd.f32 %v5432_v61, %v7614_v10  ;;  %v7719_v48 = vadd.f32 %v5493_v30, %v3628_v54 }
 0x203   : > { %v7721_v56 = vadd.f32 %v5496_v62, %v3631_v63  ;;  %v5433_v44 = vpop.f32.mrb[132].mxu1  ;;  %v5497_v4 = vpop.f32.mrb[132].mxu0 }
 0x204   : > { %v5434_v32 = vpop.f32.mrb[133].mxu1  ;;  %v5498_v18 = vpop.f32.mrb[133].mxu0 }
 0x205   : > { %v5435_v22 = vadd.f32 %v5434_v32, %v5433_v44  ;;  %v5436_v58 = vpop.f32.mrb[134].mxu1  ;;  %v5499_v11 = vadd.f32 %v5498_v18, %v5497_v4  ;;  %v5500_v21 = vpop.f32.mrb[134].mxu0 }
 0x206   : > { %v5437_v39 = vpop.f32.mrb[135].mxu1  ;;  %v5501_v55 = vpop.f32.mrb[135].mxu0 }
 0x207   : > { %v3636_v12 = vadd.f32 %v5435_v22, %v7620_v45  ;;  %v5438_v17 = vadd.f32 %v5437_v39, %v5436_v58  ;;  %v5502_v24 = vadd.f32 %v5501_v55, %v5500_v21 }
 0x209   : > { %v3639_v10 = vadd.f32 %v5438_v17, %v7629_v33  ;;  %v7725_v23 = vadd.f32 %v5499_v11, %v3636_v12 }
 0x20b   : > { %v7727_v57 = vadd.f32 %v5502_v24, %v3639_v10  ;;  %v5439_v25 = vpop.f32.mrb[136].mxu1  ;;  %v5503_v26 = vpop.f32.mrb[136].mxu0 }
 0x20c   : > { %v5440_v27 = vpop.f32.mrb[137].mxu1  ;;  %v5504_v28 = vpop.f32.mrb[137].mxu0 }
 0x20d   : > { %v5441_v38 = vadd.f32 %v5440_v27, %v5439_v25  ;;  %v5442_v31 = vpop.f32.mrb[138].mxu1  ;;  %v5505_v29 = vadd.f32 %v5504_v28, %v5503_v26  ;;  %v5506_v52 = vpop.f32.mrb[138].mxu0 }
 0x20e   : > { %v5443_v7 = vpop.f32.mrb[139].mxu1  ;;  %v5507_v43 = vpop.f32.mrb[139].mxu0 }
 0x20f   : > { %v3644_v45 = vadd.f32 %v5441_v38, %v7635_v34  ;;  %v5444_v36 = vadd.f32 %v5443_v7, %v5442_v31  ;;  %v5508_v49 = vadd.f32 %v5507_v43, %v5506_v52 }
 0x211   : > { %v3647_v33 = vadd.f32 %v5444_v36, %v7644_v1  ;;  %v7731_v8 = vadd.f32 %v5505_v29, %v3644_v45 }
 0x213   : > { %v7733_v42 = vadd.f32 %v5508_v49, %v3647_v33  ;;  %v5445_v2 = vpop.f32.mrb[140].mxu1  ;;  %v5509_v60 = vpop.f32.mrb[140].mxu0 }
 0x214   : > { %v5446_v47 = vpop.f32.mrb[141].mxu1  ;;  %v5510_v40 = vpop.f32.mrb[141].mxu0 }
 0x215   : > { %v5447_v19 = vadd.f32 %v5446_v47, %v5445_v2  ;;  %v5448_v5 = vpop.f32.mrb[142].mxu1  ;;  %v5511_v15 = vadd.f32 %v5510_v40, %v5509_v60  ;;  %v5512_v50 = vpop.f32.mrb[142].mxu0 }
 0x216   : > { %v5449_v53 = vpop.f32.mrb[143].mxu1  ;;  %v5513_v14 = vpop.f32.mrb[143].mxu0 }
 0x217   : > { %v3652_v34 = vadd.f32 %v5447_v19, %v7650_v37  ;;  %v5450_v30 = vadd.f32 %v5449_v53, %v5448_v5  ;;  %v5514_v6 = vadd.f32 %v5513_v14, %v5512_v50 }
 0x219   : > { %v3655_v1 = vadd.f32 %v5450_v30, %v7659_v16  ;;  %v7737_v41 = vadd.f32 %v5511_v15, %v3652_v34 }
 0x21b   : > { %v7739_v59 = vadd.f32 %v5514_v6, %v3655_v1  ;;  %v5531_v54 = vpop.f32.mrb[144].mxu1  ;;  %v5595_v61 = vpop.f32.mrb[144].mxu0 }
 0x21c   : > { %v5532_v62 = vpop.f32.mrb[145].mxu1  ;;  %v5596_v63 = vpop.f32.mrb[145].mxu0 }
 0x21d   : > { %v5533_v44 = vadd.f32 %v5532_v62, %v5531_v54  ;;  %v5534_v4 = vpop.f32.mrb[146].mxu1  ;;  %v5597_v32 = vadd.f32 %v5596_v63, %v5595_v61  ;;  %v5598_v18 = vpop.f32.mrb[146].mxu0 }
 0x21e   : > { %v5535_v22 = vpop.f32.mrb[147].mxu1  ;;  %v5599_v58 = vpop.f32.mrb[147].mxu0 }
 0x21f   : > { %v3790_v37 = vadd.f32 %v5533_v44, %v7665_v0  ;;  %v5536_v11 = vadd.f32 %v5535_v22, %v5534_v4  ;;  %v5600_v21 = vadd.f32 %v5599_v58, %v5598_v18 }
 0x221   : > { %v3793_v16 = vadd.f32 %v5536_v11, %v7674_v9  ;;  %v7743_v39 = vadd.f32 %v5597_v32, %v3790_v37 }
 0x223   : > { %v7745_v55 = vadd.f32 %v5600_v21, %v3793_v16  ;;  %v5537_v12 = vpop.f32.mrb[148].mxu1  ;;  %v5601_v17 = vpop.f32.mrb[148].mxu0 }
 0x224   : > { %v5538_v24 = vpop.f32.mrb[149].mxu1  ;;  %v5602_v10 = vpop.f32.mrb[149].mxu0 }
 0x225   : > { %v5539_v25 = vadd.f32 %v5538_v24, %v5537_v12  ;;  %v5540_v26 = vpop.f32.mrb[150].mxu1  ;;  %v5603_v27 = vadd.f32 %v5602_v10, %v5601_v17  ;;  %v5604_v28 = vpop.f32.mrb[150].mxu0 }
 0x226   : > { %v5541_v38 = vpop.f32.mrb[151].mxu1  ;;  %v5605_v31 = vpop.f32.mrb[151].mxu0 }
 0x227   : > { %v3798_v0 = vadd.f32 %v5539_v25, %v7680_v35  ;;  %v5542_v29 = vadd.f32 %v5541_v38, %v5540_v26  ;;  %v5606_v52 = vadd.f32 %v5605_v31, %v5604_v28 }
 0x229   : > { %v3801_v9 = vadd.f32 %v5542_v29, %v7689_v51  ;;  %v7749_v7 = vadd.f32 %v5603_v27, %v3798_v0 }
 0x22b   : > { %v7751_v43 = vadd.f32 %v5606_v52, %v3801_v9  ;;  %v5543_v45 = vpop.f32.mrb[152].mxu1  ;;  %v5607_v36 = vpop.f32.mrb[152].mxu0 }
 0x22c   : > { %v5544_v49 = vpop.f32.mrb[153].mxu1  ;;  %v5608_v33 = vpop.f32.mrb[153].mxu0 }
 0x22d   : > { %v5545_v2 = vadd.f32 %v5544_v49, %v5543_v45  ;;  %v5546_v60 = vpop.f32.mrb[154].mxu1  ;;  %v5609_v47 = vadd.f32 %v5608_v33, %v5607_v36  ;;  %v5610_v40 = vpop.f32.mrb[154].mxu0 }
 0x22e   : > { %v5547_v19 = vpop.f32.mrb[155].mxu1  ;;  %v5611_v5 = vpop.f32.mrb[155].mxu0 }
 0x22f   : > { %v3806_v35 = vadd.f32 %v5545_v2, %v7695_v3  ;;  %v5548_v15 = vadd.f32 %v5547_v19, %v5546_v60  ;;  %v5612_v50 = vadd.f32 %v5611_v5, %v5610_v40 }
 0x231   : > { %v3809_v51 = vadd.f32 %v5548_v15, %v7704_v13  ;;  %v7755_v53 = vadd.f32 %v5609_v47, %v3806_v35 }
 0x233   : > { %v7757_v14 = vadd.f32 %v5612_v50, %v3809_v51  ;;  %v5549_v34 = vpop.f32.mrb[156].mxu1  ;;  %v5613_v30 = vpop.f32.mrb[156].mxu0 }
 0x234   : > { %v5550_v6 = vpop.f32.mrb[157].mxu1  ;;  %v5614_v1 = vpop.f32.mrb[157].mxu0 }
 0x235   : > { %v5551_v54 = vadd.f32 %v5550_v6, %v5549_v34  ;;  %v5552_v61 = vpop.f32.mrb[158].mxu1  ;;  %v5615_v62 = vadd.f32 %v5614_v1, %v5613_v30  ;;  %v5616_v63 = vpop.f32.mrb[158].mxu0 }
 0x236   : > { %v5553_v44 = vpop.f32.mrb[159].mxu1  ;;  %v5617_v4 = vpop.f32.mrb[159].mxu0 }
 0x237   : > { %v3814_v3 = vadd.f32 %v5551_v54, %v7709_v46  ;;  %v5554_v32 = vadd.f32 %v5553_v44, %v5552_v61  ;;  %v5618_v18 = vadd.f32 %v5617_v4, %v5616_v63 }
 0x239   : > { %v3817_v13 = vadd.f32 %v5554_v32, %v7715_v20  ;;  %v7761_v22 = vadd.f32 %v5615_v62, %v3814_v3 }
 0x23b   : > { %v7763_v58 = vadd.f32 %v5618_v18, %v3817_v13  ;;  %v5555_v37 = vpop.f32.mrb[160].mxu1  ;;  %v5619_v11 = vpop.f32.mrb[160].mxu0 }
 0x23c   : > { %v5556_v21 = vpop.f32.mrb[161].mxu1  ;;  %v5620_v16 = vpop.f32.mrb[161].mxu0 }
 0x23d   : > { %v5557_v12 = vadd.f32 %v5556_v21, %v5555_v37  ;;  %v5558_v17 = vpop.f32.mrb[162].mxu1  ;;  %v5621_v24 = vadd.f32 %v5620_v16, %v5619_v11  ;;  %v5622_v10 = vpop.f32.mrb[162].mxu0 }
 0x23e   : > { %v5559_v25 = vpop.f32.mrb[163].mxu1  ;;  %v5623_v26 = vpop.f32.mrb[163].mxu0 }
 0x23f   : > { %v3822_v46 = vadd.f32 %v5557_v12, %v7719_v48  ;;  %v5560_v27 = vadd.f32 %v5559_v25, %v5558_v17  ;;  %v5624_v28 = vadd.f32 %v5623_v26, %v5622_v10 }
 0x241   : > { %v3825_v20 = vadd.f32 %v5560_v27, %v7721_v56  ;;  %v7767_v38 = vadd.f32 %v5621_v24, %v3822_v46 }
 0x243   : > { %v7769_v31 = vadd.f32 %v5624_v28, %v3825_v20  ;;  %v5561_v0 = vpop.f32.mrb[164].mxu1  ;;  %v5625_v29 = vpop.f32.mrb[164].mxu0 }
 0x244   : > { %v5562_v52 = vpop.f32.mrb[165].mxu1  ;;  %v5626_v9 = vpop.f32.mrb[165].mxu0 }
 0x245   : > { %v5563_v45 = vadd.f32 %v5562_v52, %v5561_v0  ;;  %v5564_v36 = vpop.f32.mrb[166].mxu1  ;;  %v5627_v49 = vadd.f32 %v5626_v9, %v5625_v29  ;;  %v5628_v33 = vpop.f32.mrb[166].mxu0 }
 0x246   : > { %v5565_v2 = vpop.f32.mrb[167].mxu1  ;;  %v5629_v60 = vpop.f32.mrb[167].mxu0 }
 0x247   : > { %v3830_v48 = vadd.f32 %v5563_v45, %v7725_v23  ;;  %v5566_v47 = vadd.f32 %v5565_v2, %v5564_v36  ;;  %v5630_v40 = vadd.f32 %v5629_v60, %v5628_v33 }
 0x249   : > { %v3833_v56 = vadd.f32 %v5566_v47, %v7727_v57  ;;  %v7773_v19 = vadd.f32 %v5627_v49, %v3830_v48 }
 0x24b   : > { %v7775_v5 = vadd.f32 %v5630_v40, %v3833_v56  ;;  %v5567_v35 = vpop.f32.mrb[168].mxu1  ;;  %v5631_v15 = vpop.f32.mrb[168].mxu0 }
 0x24c   : > { %v5568_v50 = vpop.f32.mrb[169].mxu1  ;;  %v5632_v51 = vpop.f32.mrb[169].mxu0 }
 0x24d   : > { %v5569_v34 = vadd.f32 %v5568_v50, %v5567_v35  ;;  %v5570_v30 = vpop.f32.mrb[170].mxu1  ;;  %v5633_v6 = vadd.f32 %v5632_v51, %v5631_v15  ;;  %v5634_v1 = vpop.f32.mrb[170].mxu0 }
 0x24e   : > { %v5571_v54 = vpop.f32.mrb[171].mxu1  ;;  %v5635_v61 = vpop.f32.mrb[171].mxu0 }
 0x24f   : > { %v3838_v23 = vadd.f32 %v5569_v34, %v7731_v8  ;;  %v5572_v62 = vadd.f32 %v5571_v54, %v5570_v30  ;;  %v5636_v63 = vadd.f32 %v5635_v61, %v5634_v1 }
 0x251   : > { %v3841_v57 = vadd.f32 %v5572_v62, %v7733_v42  ;;  %v7779_v44 = vadd.f32 %v5633_v6, %v3838_v23 }
 0x253   : > { %v7781_v4 = vadd.f32 %v5636_v63, %v3841_v57  ;;  %v5573_v3 = vpop.f32.mrb[172].mxu1  ;;  %v5637_v32 = vpop.f32.mrb[172].mxu0 }
 0x254   : > { %v5574_v18 = vpop.f32.mrb[173].mxu1  ;;  %v5638_v13 = vpop.f32.mrb[173].mxu0 }
 0x255   : > { %v5575_v37 = vadd.f32 %v5574_v18, %v5573_v3  ;;  %v5576_v11 = vpop.f32.mrb[174].mxu1  ;;  %v5639_v21 = vadd.f32 %v5638_v13, %v5637_v32  ;;  %v5640_v16 = vpop.f32.mrb[174].mxu0 }
 0x256   : > { %v5577_v12 = vpop.f32.mrb[175].mxu1  ;;  %v5641_v17 = vpop.f32.mrb[175].mxu0 }
 0x257   : > { %v3846_v8 = vadd.f32 %v5575_v37, %v7737_v41  ;;  %v5578_v24 = vadd.f32 %v5577_v12, %v5576_v11  ;;  %v5642_v10 = vadd.f32 %v5641_v17, %v5640_v16 }
 0x259   : > { %v3849_v42 = vadd.f32 %v5578_v24, %v7739_v59  ;;  %v7785_v25 = vadd.f32 %v5639_v21, %v3846_v8 }
 0x25b   : > { %v7787_v26 = vadd.f32 %v5642_v10, %v3849_v42  ;;  %v5659_v46 = vpop.f32.mrb[176].mxu1  ;;  %v5723_v27 = vpop.f32.mrb[176].mxu0 }
 0x25c   : > { %v5660_v28 = vpop.f32.mrb[177].mxu1  ;;  %v5724_v20 = vpop.f32.mrb[177].mxu0 }
 0x25d   : > { %v5661_v0 = vadd.f32 %v5660_v28, %v5659_v46  ;;  %v5662_v29 = vpop.f32.mrb[178].mxu1  ;;  %v5725_v52 = vadd.f32 %v5724_v20, %v5723_v27  ;;  %v5726_v9 = vpop.f32.mrb[178].mxu0 }
 0x25e   : > { %v5663_v45 = vpop.f32.mrb[179].mxu1  ;;  %v5727_v36 = vpop.f32.mrb[179].mxu0 }
 0x25f   : > { %v3984_v41 = vadd.f32 %v5661_v0, %v7743_v39  ;;  %v5664_v49 = vadd.f32 %v5663_v45, %v5662_v29  ;;  %v5728_v33 = vadd.f32 %v5727_v36, %v5726_v9 }
 0x261   : > { %v3987_v59 = vadd.f32 %v5664_v49, %v7745_v55  ;;  %v7791_v2 = vadd.f32 %v5725_v52, %v3984_v41 }
 0x263   : > { %v7793_v60 = vadd.f32 %v5728_v33, %v3987_v59  ;;  %v5665_v48 = vpop.f32.mrb[180].mxu1  ;;  %v5729_v47 = vpop.f32.mrb[180].mxu0 }
 0x264   : > { %v5666_v40 = vpop.f32.mrb[181].mxu1  ;;  %v5730_v56 = vpop.f32.mrb[181].mxu0 }
 0x265   : > { %v5667_v35 = vadd.f32 %v5666_v40, %v5665_v48  ;;  %v5668_v15 = vpop.f32.mrb[182].mxu1  ;;  %v5731_v50 = vadd.f32 %v5730_v56, %v5729_v47  ;;  %v5732_v51 = vpop.f32.mrb[182].mxu0 }
 0x266   : > { %v5669_v34 = vpop.f32.mrb[183].mxu1  ;;  %v5733_v30 = vpop.f32.mrb[183].mxu0 }
 0x267   : > { %v3992_v39 = vadd.f32 %v5667_v35, %v7749_v7  ;;  %v5670_v6 = vadd.f32 %v5669_v34, %v5668_v15  ;;  %v5734_v1 = vadd.f32 %v5733_v30, %v5732_v51 }
 0x269   : > { %v3995_v55 = vadd.f32 %v5670_v6, %v7751_v43  ;;  %v7797_v54 = vadd.f32 %v5731_v50, %v3992_v39 }
 0x26b   : > { %v7799_v61 = vadd.f32 %v5734_v1, %v3995_v55  ;;  %v5671_v23 = vpop.f32.mrb[184].mxu1  ;;  %v5735_v62 = vpop.f32.mrb[184].mxu0 }
 0x26c   : > { %v5672_v63 = vpop.f32.mrb[185].mxu1  ;;  %v5736_v57 = vpop.f32.mrb[185].mxu0 }
 0x26d   : > { %v5673_v3 = vadd.f32 %v5672_v63, %v5671_v23  ;;  %v5674_v32 = vpop.f32.mrb[186].mxu1  ;;  %v5737_v18 = vadd.f32 %v5736_v57, %v5735_v62  ;;  %v5738_v13 = vpop.f32.mrb[186].mxu0 }
 0x26e   : > { %v5675_v37 = vpop.f32.mrb[187].mxu1  ;;  %v5739_v11 = vpop.f32.mrb[187].mxu0 }
 0x26f   : > { %v4000_v7 = vadd.f32 %v5673_v3, %v7755_v53  ;;  %v5676_v21 = vadd.f32 %v5675_v37, %v5674_v32  ;;  %v5740_v16 = vadd.f32 %v5739_v11, %v5738_v13 }
 0x271   : > { %v4003_v43 = vadd.f32 %v5676_v21, %v7757_v14  ;;  %v7803_v12 = vadd.f32 %v5737_v18, %v4000_v7 }
 0x273   : > { %v7805_v17 = vadd.f32 %v5740_v16, %v4003_v43  ;;  %v5677_v8 = vpop.f32.mrb[188].mxu1  ;;  %v5741_v24 = vpop.f32.mrb[188].mxu0 }
 0x274   : > { %v5678_v10 = vpop.f32.mrb[189].mxu1  ;;  %v5742_v42 = vpop.f32.mrb[189].mxu0 }
 0x275   : > { %v5679_v46 = vadd.f32 %v5678_v10, %v5677_v8  ;;  %v5680_v27 = vpop.f32.mrb[190].mxu1  ;;  %v5743_v28 = vadd.f32 %v5742_v42, %v5741_v24  ;;  %v5744_v20 = vpop.f32.mrb[190].mxu0 }
 0x276   : > { %v5681_v0 = vpop.f32.mrb[191].mxu1  ;;  %v5745_v29 = vpop.f32.mrb[191].mxu0 }
 0x277   : > { %v4008_v53 = vadd.f32 %v5679_v46, %v7761_v22  ;;  %v5682_v52 = vadd.f32 %v5681_v0, %v5680_v27  ;;  %v5746_v9 = vadd.f32 %v5745_v29, %v5744_v20 }
 0x279   : > { %v4011_v14 = vadd.f32 %v5682_v52, %v7763_v58  ;;  %v7809_v45 = vadd.f32 %v5743_v28, %v4008_v53 }
 0x27b   : > { %v7811_v36 = vadd.f32 %v5746_v9, %v4011_v14  ;;  %v5683_v41 = vpop.f32.mrb[192].mxu1  ;;  %v5747_v49 = vpop.f32.mrb[192].mxu0 }
 0x27c   : > { %v5684_v33 = vpop.f32.mrb[193].mxu1  ;;  %v5748_v59 = vpop.f32.mrb[193].mxu0 }
 0x27d   : > { %v5685_v48 = vadd.f32 %v5684_v33, %v5683_v41  ;;  %v5686_v47 = vpop.f32.mrb[194].mxu1  ;;  %v5749_v40 = vadd.f32 %v5748_v59, %v5747_v49  ;;  %v5750_v56 = vpop.f32.mrb[194].mxu0 }
 0x27e   : > { %v5687_v35 = vpop.f32.mrb[195].mxu1  ;;  %v5751_v15 = vpop.f32.mrb[195].mxu0 }
 0x27f   : > { %v4016_v22 = vadd.f32 %v5685_v48, %v7767_v38  ;;  %v5688_v50 = vadd.f32 %v5687_v35, %v5686_v47  ;;  %v5752_v51 = vadd.f32 %v5751_v15, %v5750_v56 }
 0x281   : > { %v4019_v58 = vadd.f32 %v5688_v50, %v7769_v31  ;;  %v7815_v34 = vadd.f32 %v5749_v40, %v4016_v22 }
 0x283   : > { %v7817_v30 = vadd.f32 %v5752_v51, %v4019_v58  ;;  %v5689_v39 = vpop.f32.mrb[196].mxu1  ;;  %v5753_v6 = vpop.f32.mrb[196].mxu0 }
 0x284   : > { %v5690_v1 = vpop.f32.mrb[197].mxu1  ;;  %v5754_v55 = vpop.f32.mrb[197].mxu0 }
 0x285   : > { %v5691_v23 = vadd.f32 %v5690_v1, %v5689_v39  ;;  %v5692_v62 = vpop.f32.mrb[198].mxu1  ;;  %v5755_v63 = vadd.f32 %v5754_v55, %v5753_v6  ;;  %v5756_v57 = vpop.f32.mrb[198].mxu0 }
 0x286   : > { %v5693_v3 = vpop.f32.mrb[199].mxu1  ;;  %v5757_v32 = vpop.f32.mrb[199].mxu0 }
 0x287   : > { %v4024_v38 = vadd.f32 %v5691_v23, %v7773_v19  ;;  %v5694_v18 = vadd.f32 %v5693_v3, %v5692_v62  ;;  %v5758_v13 = vadd.f32 %v5757_v32, %v5756_v57 }
 0x289   : > { %v4027_v31 = vadd.f32 %v5694_v18, %v7775_v5  ;;  %v7821_v37 = vadd.f32 %v5755_v63, %v4024_v38 }
 0x28b   : > { %v7823_v11 = vadd.f32 %v5758_v13, %v4027_v31  ;;  %v5695_v7 = vpop.f32.mrb[200].mxu1  ;;  %v5759_v21 = vpop.f32.mrb[200].mxu0 }
 0x28c   : > { %v5696_v16 = vpop.f32.mrb[201].mxu1  ;;  %v5760_v43 = vpop.f32.mrb[201].mxu0 }
 0x28d   : > { %v5697_v8 = vadd.f32 %v5696_v16, %v5695_v7  ;;  %v5698_v24 = vpop.f32.mrb[202].mxu1  ;;  %v5761_v10 = vadd.f32 %v5760_v43, %v5759_v21  ;;  %v5762_v42 = vpop.f32.mrb[202].mxu0 }
 0x28e   : > { %v5699_v46 = vpop.f32.mrb[203].mxu1  ;;  %v5763_v27 = vpop.f32.mrb[203].mxu0 }
 0x28f   : > { %v4032_v19 = vadd.f32 %v5697_v8, %v7779_v44  ;;  %v5700_v28 = vadd.f32 %v5699_v46, %v5698_v24  ;;  %v5764_v20 = vadd.f32 %v5763_v27, %v5762_v42 }
 0x291   : > { %v4035_v5 = vadd.f32 %v5700_v28, %v7781_v4  ;;  %v7827_v0 = vadd.f32 %v5761_v10, %v4032_v19 }
 0x293   : > { %v7829_v29 = vadd.f32 %v5764_v20, %v4035_v5  ;;  %v5701_v53 = vpop.f32.mrb[204].mxu1  ;;  %v5765_v52 = vpop.f32.mrb[204].mxu0 }
 0x294   : > { %v5702_v9 = vpop.f32.mrb[205].mxu1  ;;  %v5766_v14 = vpop.f32.mrb[205].mxu0 }
 0x295   : > { %v5703_v41 = vadd.f32 %v5702_v9, %v5701_v53  ;;  %v5704_v49 = vpop.f32.mrb[206].mxu1  ;;  %v5767_v33 = vadd.f32 %v5766_v14, %v5765_v52  ;;  %v5768_v59 = vpop.f32.mrb[206].mxu0 }
 0x296   : > { %v5705_v48 = vpop.f32.mrb[207].mxu1  ;;  %v5769_v47 = vpop.f32.mrb[207].mxu0 }
 0x297   : > { %v4040_v44 = vadd.f32 %v5703_v41, %v7785_v25  ;;  %v5706_v40 = vadd.f32 %v5705_v48, %v5704_v49  ;;  %v5770_v56 = vadd.f32 %v5769_v47, %v5768_v59 }
 0x299   : > { %v4043_v4 = vadd.f32 %v5706_v40, %v7787_v26  ;;  %v7833_v35 = vadd.f32 %v5767_v33, %v4040_v44 }
 0x29b   : > { %v7835_v15 = vadd.f32 %v5770_v56, %v4043_v4  ;;  %v5787_v22 = vpop.f32.mrb[208].mxu1  ;;  %v4274_v50 = vpop.f32.mrb[208].mxu0 }
 0x29c   : > { %v5788_v51 = vpop.f32.mrb[209].mxu1  ;;  %v4276_v58 = vpop.f32.mrb[209].mxu0 }
 0x29d   : > { %v5789_v39 = vadd.f32 %v5788_v51, %v5787_v22  ;;  %v5790_v6 = vpop.f32.mrb[210].mxu1  ;;  %v4277_v1 = vpop.f32.mrb[210].mxu0 }
 0x29e   : > { %v5791_v55 = vpop.f32.mrb[211].mxu1  ;;  %v4279_v23 = vpop.f32.mrb[211].mxu0 }
 0x29f   : > { %v5792_v62 = vadd.f32 %v5791_v55, %v5790_v6  ;;  %v4178_v25 = vadd.f32 %v5789_v39, %v7791_v2 }
 0x2a1   : > { %v4275_v63 = vadd.f32 %v4274_v50, %v4178_v25  ;;  %v4181_v57 = vadd.f32 %v5792_v62, %v7793_v60 }
 0x2a3   : > { %v4337_v26 = vsub.f32 0.0, %v4275_v63  ;;  %v4278_v3 = vadd.f32 %v4277_v1, %v4181_v57  ;;  %v5793_v32 = vpop.f32.mrb[212].mxu1  ;;  %v4282_v38 = vpop.f32.mrb[212].mxu0 }
 0x2a4   : > { %v5794_v18 = vpop.f32.mrb[213].mxu1  ;;  %v4284_v13 = vpop.f32.mrb[213].mxu0 }
 0x2a5   : > { %v4353_v31 = vmul.f32 1.442695, %v4337_v26  ;;  %v4338_v7 = vsub.f32 0.0, %v4278_v3  ;;  %v5795_v21 = vadd.f32 %v5794_v18, %v5793_v32  ;;  %v5796_v16 = vpop.f32.mrb[214].mxu1  ;;  %v4285_v43 = vpop.f32.mrb[214].mxu0 }
 0x2a6   : > { %v5797_v8 = vpop.f32.mrb[215].mxu1  ;;  %v4287_v24 = vpop.f32.mrb[215].mxu0 }
 0x2a7   : > { %6098 = vpow2.f32 %v4353_v31  ;;  %v4355_v10 = vmul.f32 1.442695, %v4338_v7  ;;  %v5798_v42 = vadd.f32 %v5797_v8, %v5796_v16  ;;  %v4186_v2 = vadd.f32 %v5795_v21, %v7797_v54 }
 0x2a9   : > { %6100 = vpow2.f32 %v4355_v10  ;;  %v4283_v60 = vadd.f32 %v4282_v38, %v4186_v2  ;;  %v4189_v46 = vadd.f32 %v5798_v42, %v7799_v61  ;;  %v7848_v42 = vld [vmem:[%s7936_s3] ss:$0 sm:$0xff] }
 0x2ab   : > { %v4339_v27 = vsub.f32 0.0, %v4283_v60  ;;  %v4286_v19 = vadd.f32 %v4285_v43, %v4189_v46  ;;  %v5799_v28 = vpop.f32.mrb[216].mxu1  ;;  %v4290_v20 = vpop.f32.mrb[216].mxu0 }
 0x2ac   : > { %v5800_v5 = vpop.f32.mrb[217].mxu1  ;;  %v4292_v53 = vpop.f32.mrb[217].mxu0 }
 0x2ad   : > { %v4357_v52 = vmul.f32 1.442695, %v4339_v27  ;;  %v4340_v9 = vsub.f32 0.0, %v4286_v19  ;;  %v5801_v14 = vadd.f32 %v5800_v5, %v5799_v28  ;;  %v5802_v41 = vpop.f32.mrb[218].mxu1  ;;  %v4293_v49 = vpop.f32.mrb[218].mxu0 }
 0x2ae   : > { %v5803_v33 = vpop.f32.mrb[219].mxu1  ;;  %v4295_v59 = vpop.f32.mrb[219].mxu0 }
 0x2af   : > { %6102 = vpow2.f32 %v4357_v52  ;;  %v4359_v48 = vmul.f32 1.442695, %v4340_v9  ;;  %v5804_v54 = vadd.f32 %v5803_v33, %v5802_v41  ;;  %v4194_v47 = vadd.f32 %v5801_v14, %v7803_v12 }
 0x2b1   : > { %v6099_v44 = vpop.eup %6098  ;;  %6104 = vpow2.f32 %v4359_v48  ;;  %v4291_v61 = vadd.f32 %v4290_v20, %v4194_v47  ;;  %v4197_v40 = vadd.f32 %v5804_v54, %v7805_v17 }
 0x2b2   : > { %v4385_v56 = vadd.f32 1.0, %v6099_v44 }
 0x2b3   : > { %v6101_v4 = vpop.eup %6100  ;;  %v4341_v22 = vsub.f32 0.0, %v4291_v61  ;;  %v4294_v50 = vadd.f32 %v4293_v49, %v4197_v40  ;;  %v5805_v51 = vpop.f32.mrb[220].mxu1 }
 0x2b4   : > { %v4298_v58 = vpop.f32.mrb[220].mxu0  ;;  %6106 = vrcp.f32 %v4385_v56  ;;  %v4386_v39 = vadd.f32 1.0, %v6101_v4  ;;  %v5806_v6 = vpop.f32.mrb[221].mxu1 }
 0x2b5   : > { %v4300_v1 = vpop.f32.mrb[221].mxu0  ;;  %v4361_v55 = vmul.f32 1.442695, %v4341_v22  ;;  %v4342_v23 = vsub.f32 0.0, %v4294_v50  ;;  %v5807_v62 = vadd.f32 %v5806_v6, %v5805_v51  ;;  %v5808_v25 = vpop.f32.mrb[222].mxu1 }
 0x2b6   : > { %v4301_v12 = vpop.f32.mrb[222].mxu0  ;;  %6108 = vrcp.f32 %v4386_v39  ;;  %v5809_v63 = vpop.f32.mrb[223].mxu1 }
 0x2b7   : > { %v4303_v57 = vpop.f32.mrb[223].mxu0  ;;  %6110 = vpow2.f32 %v4361_v55  ;;  %v4363_v17 = vmul.f32 1.442695, %v4342_v23  ;;  %v5810_v26 = vadd.f32 %v5809_v63, %v5808_v25  ;;  %v4202_v3 = vadd.f32 %v5807_v62, %v7809_v45 }
 0x2b9   : > { %v6103_v32 = vpop.eup %6102  ;;  %6112 = vpow2.f32 %v4363_v17  ;;  %v4299_v38 = vadd.f32 %v4298_v58, %v4202_v3  ;;  %v4205_v18 = vadd.f32 %v5810_v26, %v7811_v36 }
 0x2ba   : > { %v4387_v13 = vadd.f32 1.0, %v6103_v32 }
 0x2bb   : > { %v6105_v31 = vpop.eup %6104  ;;  %v4343_v7 = vsub.f32 0.0, %v4299_v38  ;;  %v4302_v21 = vadd.f32 %v4301_v12, %v4205_v18  ;;  %v5811_v16 = vpop.f32.mrb[224].mxu1 }
 0x2bc   : > { %v4306_v43 = vpop.f32.mrb[224].mxu0  ;;  %6114 = vrcp.f32 %v4387_v13  ;;  %v4388_v8 = vadd.f32 1.0, %v6105_v31  ;;  %v5812_v24 = vpop.f32.mrb[225].mxu1 }
 0x2bd   : > { %v4308_v10 = vpop.f32.mrb[225].mxu0  ;;  %v4365_v45 = vmul.f32 1.442695, %v4343_v7  ;;  %v4344_v2 = vsub.f32 0.0, %v4302_v21  ;;  %v5813_v60 = vadd.f32 %v5812_v24, %v5811_v16  ;;  %v5814_v46 = vpop.f32.mrb[226].mxu1 }
 0x2be   : > { %v4309_v36 = vpop.f32.mrb[226].mxu0  ;;  %v6107_v27 = vpop.eup %6106  ;;  %6116 = vrcp.f32 %v4388_v8 }
 0x2bf   : > { %v5815_v19 = vpop.f32.mrb[227].mxu1  ;;  %v4311_v28 = vpop.f32.mrb[227].mxu0  ;;  %6118 = vpow2.f32 %v4365_v45  ;;  %v4367_v20 = vmul.f32 1.442695, %v4344_v2  ;;  %v4210_v53 = vadd.f32 %v5813_v60, %v7815_v34  ;;  %v4440_v9 = vmul.f32 %v6107_v27, %v7848_v42 }
 0x2c0   : > { %v5816_v5 = vadd.f32 %v5815_v19, %v5814_v46  ;;  %v6109_v52 = vpop.eup %6108 }
 0x2c1   : > { %v6111_v14 = vpop.eup %6110  ;;  %6120 = vpow2.f32 %v4367_v20  ;;  %v4307_v41 = vadd.f32 %v4306_v43, %v4210_v53  ;;  %4456 = vadd.xlane.f32.xlu0 %v4440_v9  ;;  %v4441_v34 = vmul.f32 %v6109_v52, %v7848_v42 }
 0x2c2   : > { %v4213_v49 = vadd.f32 %v5816_v5, %v7817_v30  ;;  %v4389_v33 = vadd.f32 1.0, %v6111_v14 }
 0x2c3   : > { %v6113_v59 = vpop.eup %6112  ;;  %v4345_v48 = vsub.f32 0.0, %v4307_v41  ;;  %v5817_v47 = vpop.f32.mrb[228].mxu1 }
 0x2c4   : > { %v4310_v54 = vadd.f32 %v4309_v36, %v4213_v49  ;;  %v4314_v44 = vpop.f32.mrb[228].mxu0  ;;  %6122 = vrcp.f32 %v4389_v33  ;;  %v4390_v61 = vadd.f32 1.0, %v6113_v59  ;;  %v5818_v40 = vpop.f32.mrb[229].mxu1 }
 0x2c5   : > { %v4316_v56 = vpop.f32.mrb[229].mxu0  ;;  %v4369_v4 = vmul.f32 1.442695, %v4345_v48  ;;  %v5819_v50 = vadd.f32 %v5818_v40, %v5817_v47  ;;  %v5820_v51 = vpop.f32.mrb[230].mxu1  ;;  %4458 = vadd.xlane.f32.xlu0 %v4441_v34 }
 0x2c6   : > { %v4346_v22 = vsub.f32 0.0, %v4310_v54  ;;  %v4317_v58 = vpop.f32.mrb[230].mxu0  ;;  %v6115_v39 = vpop.eup %6114  ;;  %6124 = vrcp.f32 %v4390_v61 }
 0x2c7   : > { %v5821_v30 = vpop.f32.mrb[231].mxu1  ;;  %v4319_v6 = vpop.f32.mrb[231].mxu0  ;;  %6126 = vpow2.f32 %v4369_v4  ;;  %v4218_v23 = vadd.f32 %v5819_v50, %v7821_v37  ;;  %v4442_v25 = vmul.f32 %v6115_v39, %v7848_v42 }
 0x2c8   : > { %v4371_v1 = vmul.f32 1.442695, %v4346_v22  ;;  %v5822_v55 = vadd.f32 %v5821_v30, %v5820_v51  ;;  %v6117_v62 = vpop.eup %6116 }
 0x2c9   : > { %v6119_v12 = vpop.eup %6118  ;;  %v4315_v63 = vadd.f32 %v4314_v44, %v4218_v23  ;;  %4460 = vadd.xlane.f32.xlu1 %v4442_v25  ;;  %v4443_v37 = vmul.f32 %v6117_v62, %v7848_v42 }
 0x2ca   : > { %6128 = vpow2.f32 %v4371_v1  ;;  %v4221_v57 = vadd.f32 %v5822_v55, %v7823_v11  ;;  %v4391_v17 = vadd.f32 1.0, %v6119_v12 }
 0x2cb   : > { %v6121_v26 = vpop.eup %6120  ;;  %v4347_v3 = vsub.f32 0.0, %v4315_v63  ;;  %v5823_v38 = vpop.f32.mrb[232].mxu1 }
 0x2cc   : > { %v4318_v32 = vadd.f32 %v4317_v58, %v4221_v57  ;;  %v4322_v18 = vpop.f32.mrb[232].mxu0  ;;  %6130 = vrcp.f32 %v4391_v17  ;;  %v4392_v13 = vadd.f32 1.0, %v6121_v26  ;;  %v5824_v31 = vpop.f32.mrb[233].mxu1 }
 0x2cd   : > { %v4324_v7 = vpop.f32.mrb[233].mxu0  ;;  %v4373_v21 = vmul.f32 1.442695, %v4347_v3  ;;  %v5825_v43 = vadd.f32 %v5824_v31, %v5823_v38  ;;  %v5826_v8 = vpop.f32.mrb[234].mxu1  ;;  %4462 = vadd.xlane.f32.xlu1 %v4443_v37 }
 0x2ce   : > { %v4348_v16 = vsub.f32 0.0, %v4318_v32  ;;  %v4325_v24 = vpop.f32.mrb[234].mxu0  ;;  %v6123_v10 = vpop.eup %6122  ;;  %6132 = vrcp.f32 %v4392_v13 }
 0x2cf   : > { %v5827_v11 = vpop.f32.mrb[235].mxu1  ;;  %v4327_v45 = vpop.f32.mrb[235].mxu0  ;;  %6134 = vpow2.f32 %v4373_v21  ;;  %v4226_v46 = vadd.f32 %v5825_v43, %v7827_v0  ;;  %v4444_v27 = vmul.f32 %v6123_v10, %v7848_v42 }
 0x2d0   : > { %v4375_v2 = vmul.f32 1.442695, %v4348_v16  ;;  %v5828_v60 = vadd.f32 %v5827_v11, %v5826_v8  ;;  %v6125_v36 = vpop.eup %6124 }
 0x2d1   : > { %v6127_v19 = vpop.eup %6126  ;;  %v4323_v28 = vadd.f32 %v4322_v18, %v4226_v46  ;;  %v4445_v5 = vmul.f32 %v6125_v36, %v7848_v42  ;;  %4464 = vadd.xlane.f32.xlu0 %v4444_v27  ;;  %v7874_v27 = vld [vmem:[#allocation2] ss:$0 sm:$0xff] }
 0x2d2   : > { %6136 = vpow2.f32 %v4375_v2  ;;  %v4229_v20 = vadd.f32 %v5828_v60, %v7829_v29  ;;  %v4393_v53 = vadd.f32 1.0, %v6127_v19 }
 0x2d3   : > { %v4349_v9 = vsub.f32 0.0, %v4323_v28  ;;  %v5829_v41 = vpop.f32.mrb[236].mxu1  ;;  %4466 = vadd.xlane.f32.xlu1 %v4445_v5  ;;  %v4330_v49 = vpop.f32.mrb[236].mxu0 }
 0x2d4   : > { %v6129_v52 = vpop.eup %6128  ;;  %v4326_v14 = vadd.f32 %v4325_v24, %v4229_v20  ;;  %6138 = vrcp.f32 %v4393_v53  ;;  %v5830_v33 = vpop.f32.mrb[237].mxu1 }
 0x2d5   : > { %v4394_v0 = vadd.f32 1.0, %v6129_v52  ;;  %v4332_v59 = vpop.f32.mrb[237].mxu0  ;;  %v4377_v48 = vmul.f32 1.442695, %v4349_v9  ;;  %v5831_v47 = vadd.f32 %v5830_v33, %v5829_v41  ;;  %v5832_v44 = vpop.f32.mrb[238].mxu1 }
 0x2d6   : > { %v4350_v54 = vsub.f32 0.0, %v4326_v14  ;;  %v4333_v61 = vpop.f32.mrb[238].mxu0  ;;  %v6131_v29 = vpop.eup %6130 }
 0x2d7   : > { %6140 = vrcp.f32 %v4394_v0  ;;  %v5833_v40 = vpop.f32.mrb[239].mxu1  ;;  %v4335_v34 = vpop.f32.mrb[239].mxu0  ;;  %v4234_v22 = vadd.f32 %v5831_v47, %v7833_v35  ;;  %v4446_v51 = vmul.f32 %v6131_v29, %v7848_v42 }
 0x2d8   : > { %6142 = vpow2.f32 %v4377_v48  ;;  %v4379_v56 = vmul.f32 1.442695, %v4350_v54  ;;  %v5834_v4 = vadd.f32 %v5833_v40, %v5832_v44  ;;  %v6133_v50 = vpop.eup %6132 }
 0x2d9   : > { %v6135_v58 = vpop.eup %6134  ;;  %v4331_v39 = vadd.f32 %v4330_v49, %v4234_v22  ;;  %v4447_v6 = vmul.f32 %v6133_v50, %v7848_v42  ;;  %4468 = vadd.xlane.f32.xlu0 %v4446_v51 }
 0x2da   : > { %6144 = vpow2.f32 %v4379_v56  ;;  %v4237_v30 = vadd.f32 %v5834_v4, %v7835_v15  ;;  %v4395_v1 = vadd.f32 1.0, %v6135_v58 }
 0x2db   : > { %v4351_v23 = vsub.f32 0.0, %v4331_v39  ;;  %4470 = vadd.xlane.f32.xlu1 %v4447_v6 }
 0x2dc   : > { %v6137_v55 = vpop.eup %6136  ;;  %v4334_v62 = vadd.f32 %v4333_v61, %v4237_v30  ;;  %6146 = vrcp.f32 %v4395_v1 }
 0x2dd   : > { %v4396_v25 = vadd.f32 1.0, %v6137_v55  ;;  %v4381_v12 = vmul.f32 1.442695, %v4351_v23 }
 0x2de   : > { %v4352_v35 = vsub.f32 0.0, %v4334_v62  ;;  %v6139_v63 = vpop.eup %6138 }
 0x2df   : > { %6148 = vrcp.f32 %v4396_v25  ;;  %v4448_v17 = vmul.f32 %v6139_v63, %v7848_v42 }
 0x2e0   : > { %6150 = vpow2.f32 %v4381_v12  ;;  %v4383_v57 = vmul.f32 1.442695, %v4352_v35 }
 0x2e1   : > { %v6141_v26 = vpop.eup %6140  ;;  %4472 = vadd.xlane.f32.xlu0 %v4448_v17 }
 0x2e2   : > { %v6143_v15 = vpop.eup %6142  ;;  %6152 = vpow2.f32 %v4383_v57  ;;  %v4449_v3 = vmul.f32 %v6141_v26, %v7848_v42 }
 0x2e3   : > { %v4397_v32 = vadd.f32 1.0, %v6143_v15 }
 0x2e4   : > { %v6145_v38 = vpop.eup %6144  ;;  %4474 = vadd.xlane.f32.xlu1 %v4449_v3 }
 0x2e5   : > { %6154 = vrcp.f32 %v4397_v32  ;;  %v4398_v18 = vadd.f32 1.0, %v6145_v38 }
 0x2e6   : > { %v6147_v13 = vpop.eup %6146 }
 0x2e7   : > { %6156 = vrcp.f32 %v4398_v18  ;;  %v4450_v31 = vmul.f32 %v6147_v13, %v7848_v42 }
 0x2e9   : > { %v6149_v37 = vpop.eup %6148  ;;  %4476 = vadd.xlane.f32.xlu0 %v4450_v31 }
 0x2ea   : > { %v6151_v7 = vpop.eup %6150  ;;  %v4451_v21 = vmul.f32 %v6149_v37, %v7848_v42 }
 0x2eb   : > { %v4399_v16 = vadd.f32 1.0, %v6151_v7 }
 0x2ec   : > { %v6153_v43 = vpop.eup %6152  ;;  %4478 = vadd.xlane.f32.xlu1 %v4451_v21 }
 0x2ed   : > { %6158 = vrcp.f32 %v4399_v16  ;;  %v4400_v8 = vadd.f32 1.0, %v6153_v43 }
 0x2ef   : > { %v6155_v24 = vpop.eup %6154  ;;  %6160 = vrcp.f32 %v4400_v8 }
 0x2f0   : > { %v4452_v10 = vmul.f32 %v6155_v24, %v7848_v42 }
 0x2f1   : > { %v6157_v11 = vpop.eup %6156 }
 0x2f2   : > { %4480 = vadd.xlane.f32.xlu0 %v4452_v10  ;;  %v4453_v45 = vmul.f32 %v6157_v11, %v7848_v42 }
 0x2f4   : > { %4482 = vadd.xlane.f32.xlu1 %v4453_v45 }
 0x2f7   : > { %v6159_v2 = vpop.eup %6158 }
 0x2f8   : > { %v4454_v60 = vmul.f32 %v6159_v2, %v7848_v42 }
 0x2f9   : > { %v6161_v46 = vpop.eup %6160 }
 0x2fa   : > { %4484 = vadd.xlane.f32.xlu0 %v4454_v60  ;;  %v4455_v36 = vmul.f32 %v6161_v46, %v7848_v42 }
 0x2fc   : > { %4486 = vadd.xlane.f32.xlu1 %v4455_v36 }
 0x34e   : > { %v4457_v19 = vpop.xlane.xlu0 %4456 }
 0x34f   : > { %v4495_v28 = vadd.f32 %v7874_v27, %v4457_v19 }
 0x351   : > { %v4511_v20 = vsub.f32 0.0, %v4495_v28 }
 0x352   : > { %v4459_v5 = vpop.xlane.xlu0 %4458 }
 0x353   : > { %v4527_v53 = vmul.f32 1.442695, %v4511_v20  ;;  %v4496_v52 = vadd.f32 %v7874_v27, %v4459_v5 }
 0x355   : > { %6162 = vpow2.f32 %v4527_v53  ;;  %v4512_v9 = vsub.f32 0.0, %v4496_v52 }
 0x356   : > { %v4461_v14 = vpop.xlane.xlu1 %4460 }
 0x357   : > { %v4529_v41 = vmul.f32 1.442695, %v4512_v9  ;;  %v4497_v49 = vadd.f32 %v7874_v27, %v4461_v14 }
 0x359   : > { %6164 = vpow2.f32 %v4529_v41  ;;  %v4513_v0 = vsub.f32 0.0, %v4497_v49 }
 0x35a   : > { %v4463_v42 = vpop.xlane.xlu1 %4462 }
 0x35b   : > { %v4531_v33 = vmul.f32 1.442695, %v4513_v0  ;;  %v4498_v59 = vadd.f32 %v7874_v27, %v4463_v42 }
 0x35d   : > { %6166 = vpow2.f32 %v4531_v33  ;;  %v4514_v48 = vsub.f32 0.0, %v4498_v59 }
 0x35e   : > { %v4465_v54 = vpop.xlane.xlu0 %4464 }
 0x35f   : > { %v6163_v47 = vpop.eup %6162  ;;  %v4533_v44 = vmul.f32 1.442695, %v4514_v48  ;;  %v4499_v61 = vadd.f32 %v7874_v27, %v4465_v54 }
 0x360   : > { %v4467_v29 = vpop.xlane.xlu1 %4466  ;;  %v4559_v40 = vadd.f32 1.0, %v6163_v47 }
 0x361   : > { %v4500_v34 = vadd.f32 %v7874_v27, %v4467_v29  ;;  %6168 = vpow2.f32 %v4533_v44  ;;  %v4515_v56 = vsub.f32 0.0, %v4499_v61 }
 0x362   : > { %6170 = vrcp.f32 %v4559_v40 }
 0x363   : > { %v4516_v4 = vsub.f32 0.0, %v4500_v34  ;;  %v6165_v22 = vpop.eup %6164  ;;  %v4535_v50 = vmul.f32 1.442695, %v4515_v56 }
 0x364   : > { %v4560_v51 = vadd.f32 1.0, %v6165_v22 }
 0x365   : > { %v4537_v58 = vmul.f32 1.442695, %v4516_v4  ;;  %6172 = vpow2.f32 %v4535_v50 }
 0x366   : > { %6174 = vrcp.f32 %v4560_v51  ;;  %v4469_v39 = vpop.xlane.xlu0 %4468 }
 0x367   : > { %v6167_v30 = vpop.eup %6166  ;;  %6176 = vpow2.f32 %v4537_v58  ;;  %v4501_v6 = vadd.f32 %v7874_v27, %v4469_v39 }
 0x368   : > { %v4471_v1 = vpop.xlane.xlu1 %4470  ;;  %v4561_v55 = vadd.f32 1.0, %v6167_v30 }
 0x369   : > { %v4502_v23 = vadd.f32 %v7874_v27, %v4471_v1  ;;  %v4517_v62 = vsub.f32 0.0, %v4501_v6 }
 0x36a   : > { %6178 = vrcp.f32 %v4561_v55 }
 0x36b   : > { %v4518_v25 = vsub.f32 0.0, %v4502_v23  ;;  %v6169_v12 = vpop.eup %6168  ;;  %v4539_v35 = vmul.f32 1.442695, %v4517_v62 }
 0x36c   : > { %v6171_v63 = vpop.eup %6170  ;;  %v4562_v57 = vadd.f32 1.0, %v6169_v12 }
 0x36d   : > { %v4541_v17 = vmul.f32 1.442695, %v4518_v25  ;;  %4608 = vst.msk [vmem:[%s7888_s22] sm:$0xff] %vm4607_vm2, %v6171_v63  ;;  %6180 = vpow2.f32 %v4539_v35 }
 0x36e   : > { %v4473_v26 = vpop.xlane.xlu0 %4472  ;;  %6182 = vrcp.f32 %v4562_v57 }
 0x36f   : > { %v4503_v15 = vadd.f32 %v7874_v27, %v4473_v26  ;;  %v6173_v3 = vpop.eup %6172  ;;  %6184 = vpow2.f32 %v4541_v17 }
 0x370   : > { %v6175_v38 = vpop.eup %6174  ;;  %v4563_v18 = vadd.f32 1.0, %v6173_v3 }
 0x371   : > { %v4475_v32 = vpop.xlane.xlu1 %4474  ;;  %v4519_v13 = vsub.f32 0.0, %v4503_v15  ;;  %v6177_v37 = vpop.eup %6176  ;;  %4609 = vst.msk [vmem:[%s7888_s22 + $0x8] sm:$0xff] %vm4607_vm2, %v6175_v38 }
 0x372   : > { %v4504_v31 = vadd.f32 %v7874_v27, %v4475_v32  ;;  %6186 = vrcp.f32 %v4563_v18  ;;  %v4564_v7 = vadd.f32 1.0, %v6177_v37 }
 0x373   : > { %v4543_v21 = vmul.f32 1.442695, %v4519_v13 }
 0x374   : > { %v4520_v16 = vsub.f32 0.0, %v4504_v31  ;;  %v6179_v43 = vpop.eup %6178  ;;  %6188 = vrcp.f32 %v4564_v7 }
 0x375   : > { %4610 = vst.msk [vmem:[%s7888_s22 + $0x10] sm:$0xff] %vm4607_vm2, %v6179_v43  ;;  %6190 = vpow2.f32 %v4543_v21 }
 0x376   : > { %v4545_v8 = vmul.f32 1.442695, %v4520_v16  ;;  %v4477_v24 = vpop.xlane.xlu0 %4476 }
 0x377   : > { %v4505_v10 = vadd.f32 %v7874_v27, %v4477_v24  ;;  %v6181_v11 = vpop.eup %6180 }
 0x378   : > { %6192 = vpow2.f32 %v4545_v8  ;;  %v6183_v2 = vpop.eup %6182  ;;  %v4565_v60 = vadd.f32 1.0, %v6181_v11 }
 0x379   : > { %v4479_v45 = vpop.xlane.xlu1 %4478  ;;  %v4521_v46 = vsub.f32 0.0, %v4505_v10  ;;  %v6185_v19 = vpop.eup %6184  ;;  %4611 = vst.msk [vmem:[%s7888_s22 + $0x18] sm:$0xff] %vm4607_vm2, %v6183_v2 }
 0x37a   : > { %v4506_v36 = vadd.f32 %v7874_v27, %v4479_v45  ;;  %6194 = vrcp.f32 %v4565_v60  ;;  %v4566_v28 = vadd.f32 1.0, %v6185_v19 }
 0x37b   : > { %v4547_v20 = vmul.f32 1.442695, %v4521_v46 }
 0x37c   : > { %v4522_v5 = vsub.f32 0.0, %v4506_v36  ;;  %v6187_v53 = vpop.eup %6186  ;;  %6196 = vrcp.f32 %v4566_v28 }
 0x37d   : > { %4612 = vst.msk [vmem:[%s7888_s22 + $0x20] sm:$0xff] %vm4607_vm2, %v6187_v53  ;;  %6198 = vpow2.f32 %v4547_v20 }
 0x37e   : > { %v4549_v52 = vmul.f32 1.442695, %v4522_v5  ;;  %v6189_v14 = vpop.eup %6188 }
 0x37f   : > { %v4481_v9 = vpop.xlane.xlu0 %4480  ;;  %v6191_v49 = vpop.eup %6190  ;;  %4613 = vst.msk [vmem:[%s7888_s22 + $0x28] sm:$0xff] %vm4607_vm2, %v6189_v14 }
 0x380   : > { %6200 = vpow2.f32 %v4549_v52  ;;  %v4507_v41 = vadd.f32 %v7874_v27, %v4481_v9  ;;  %v4567_v33 = vadd.f32 1.0, %v6191_v49 }
 0x381   : > { %v4483_v0 = vpop.xlane.xlu1 %4482 }
 0x382   : > { %v6193_v42 = vpop.eup %6192  ;;  %v4523_v59 = vsub.f32 0.0, %v4507_v41  ;;  %v4508_v48 = vadd.f32 %v7874_v27, %v4483_v0  ;;  %6202 = vrcp.f32 %v4567_v33 }
 0x383   : > { %v4568_v54 = vadd.f32 1.0, %v6193_v42 }
 0x384   : > { %v4551_v47 = vmul.f32 1.442695, %v4523_v59  ;;  %v4524_v44 = vsub.f32 0.0, %v4508_v48  ;;  %v6195_v61 = vpop.eup %6194 }
 0x385   : > { %6204 = vrcp.f32 %v4568_v54  ;;  %4614 = vst.msk [vmem:[%s7888_s22 + $0x30] sm:$0xff] %vm4607_vm2, %v6195_v61 }
 0x386   : > { %6206 = vpow2.f32 %v4551_v47  ;;  %v4553_v29 = vmul.f32 1.442695, %v4524_v44  ;;  %v6197_v34 = vpop.eup %6196 }
 0x387   : > { %v4485_v40 = vpop.xlane.xlu0 %4484  ;;  %v6199_v4 = vpop.eup %6198  ;;  %4615 = vst.msk [vmem:[%s7888_s22 + $0x38] sm:$0xff] %vm4607_vm2, %v6197_v34 }
 0x388   : > { %6208 = vpow2.f32 %v4553_v29  ;;  %v4509_v56 = vadd.f32 %v7874_v27, %v4485_v40  ;;  %v4569_v51 = vadd.f32 1.0, %v6199_v4 }
 0x389   : > { %v4487_v22 = vpop.xlane.xlu1 %4486 }
 0x38a   : > { %v6201_v50 = vpop.eup %6200  ;;  %v4525_v58 = vsub.f32 0.0, %v4509_v56  ;;  %v4510_v39 = vadd.f32 %v7874_v27, %v4487_v22  ;;  %6210 = vrcp.f32 %v4569_v51 }
 0x38b   : > { %v4570_v30 = vadd.f32 1.0, %v6201_v50 }
 0x38c   : > { %v4555_v6 = vmul.f32 1.442695, %v4525_v58  ;;  %v4526_v1 = vsub.f32 0.0, %v4510_v39  ;;  %v6203_v55 = vpop.eup %6202 }
 0x38d   : > { %6212 = vrcp.f32 %v4570_v30  ;;  %4616 = vst.msk [vmem:[%s7888_s22 + $0x40] sm:$0xff] %vm4607_vm2, %v6203_v55 }
 0x38e   : > { %6214 = vpow2.f32 %v4555_v6  ;;  %v4557_v23 = vmul.f32 1.442695, %v4526_v1 }
 0x38f   : > { %v6205_v62 = vpop.eup %6204 }
 0x390   : > { %v6207_v25 = vpop.eup %6206  ;;  %4617 = vst.msk [vmem:[%s7888_s22 + $0x48] sm:$0xff] %vm4607_vm2, %v6205_v62  ;;  %6216 = vpow2.f32 %v4557_v23 }
 0x391   : > { %v4571_v12 = vadd.f32 1.0, %v6207_v25 }
 0x392   : > { %v6209_v27 = vpop.eup %6208 }
 0x393   : > { %6218 = vrcp.f32 %v4571_v12  ;;  %v4572_v35 = vadd.f32 1.0, %v6209_v27 }
 0x394   : > { %v6211_v63 = vpop.eup %6210 }
 0x395   : > { %6220 = vrcp.f32 %v4572_v35  ;;  %4618 = vst.msk [vmem:[%s7888_s22 + $0x50] sm:$0xff] %vm4607_vm2, %v6211_v63 }
 0x397   : > { %v6213_v57 = vpop.eup %6212 }
 0x398   : > { %v6215_v17 = vpop.eup %6214  ;;  %4619 = vst.msk [vmem:[%s7888_s22 + $0x58] sm:$0xff] %vm4607_vm2, %v6213_v57 }
 0x399   : > { %v4573_v26 = vadd.f32 1.0, %v6215_v17 }
 0x39a   : > { %v6217_v15 = vpop.eup %6216 }
 0x39b   : > { %6222 = vrcp.f32 %v4573_v26  ;;  %v4574_v3 = vadd.f32 1.0, %v6217_v15 }
 0x39d   : > { %v6219_v32 = vpop.eup %6218  ;;  %6224 = vrcp.f32 %v4574_v3 }
 0x39e   : > { %4620 = vst.msk [vmem:[%s7888_s22 + $0x60] sm:$0xff] %vm4607_vm2, %v6219_v32 }
 0x39f   : > { %v6221_v38 = vpop.eup %6220 }
 0x3a0   : > { %4621 = vst.msk [vmem:[%s7888_s22 + $0x68] sm:$0xff] %vm4607_vm2, %v6221_v38 }
 0x3a5   : > { %v6223_v18 = vpop.eup %6222 }
 0x3a6   : > { %4622 = vst.msk [vmem:[%s7888_s22 + $0x70] sm:$0xff] %vm4607_vm2, %v6223_v18 }
 0x3a7   : > { %v6225_v13 = vpop.eup %6224 }
 0x3a8   : > { %4623 = vst.msk [vmem:[%s7888_s22 + $0x78] sm:$0xff] %vm4607_vm2, %v6225_v13 }
 0x3a9 PF: > { %s17_s20 = sadd.s32 1, %s6232_s20  }
 0x3aa   : > { %p14_p4 = scmp.ge.s32.totalorder %s17_s20, 4  }
 0x3ac   :  { %16 = sbr.rel (!%p14_p4) target bundleno = 3 (0x3), region = 70 }

</bundles_post_ra>
